<compile_context>
chip_gen: v6e
topology: v6e:2x2x1
jax: 0.10.0
libtpu: 0.0.40
codegen_flags: <defaults>
</compile_context>

<pallas_src>
import functools

import jax
import jax.numpy as jnp
from jax.experimental import pallas as pl
from jax.experimental.pallas import tpu as pltpu

# ---------------- config ----------------
VOCAB = 100           # ids sampled in [0, VOCAB)
VOCAB_PAD = 128       # embedding table rows padded to a sublane-friendly size
MAX_POS = 64
HIDDEN = 128          # stands in for 768
N_LAYERS = 2          # stands in for 6
N_HEADS = 4           # stands in for 12
HEAD_DIM = HIDDEN // N_HEADS
FFN = 256             # stands in for 3072
LABELS = 2
CLS_MID = 64          # classifier Linear(768->64) mid width
HEAD_PAD = 128        # lane-padded classifier mid/output width
LN_EPS = 1e-12


# ---------------- in-kernel helpers ----------------
def _bf16(x):
    return x.astype(jnp.bfloat16)


def _ln(x, g, b):
    # LayerNorm statistics in f32.
    mean = jnp.mean(x, axis=-1, keepdims=True)
    var = jnp.mean(jnp.square(x - mean), axis=-1, keepdims=True)
    inv = jax.lax.rsqrt(var + LN_EPS)
    return (x - mean) * inv * g + b


def _gelu(x):
    # TODO(synk): HF DistilBERT uses exact erf GELU; tanh approximation here.
    return 0.5 * x * (1.0 + jnp.tanh(0.7978845608028654 * (x + 0.044715 * x * x * x)))


# ---------------- fully fused forward kernel ----------------
def _fused_forward_kernel(
    ids_ref,                                            # SMEM (B, S) int32 (scalar prefetch)
    word_emb_ref, pos_emb_ref, embg_ref, embb_ref,      # embeddings + embed LN
    wqkv_ref, bqkv_ref, wo_ref, bo_ref,                 # attention (stacked over layers)
    ln1g_ref, ln1b_ref,
    w1_ref, b1_ref, w2_ref, b2_ref,                     # FFN (stacked over layers)
    ln2g_ref, ln2b_ref,
    cw1_ref, cb1_ref, cw2_ref, cb2_ref,                 # classifier head (lane-padded)
    logits_ref,                                         # out block (1, 1, HEAD_PAD)
    x_scr,                                              # VMEM scratch (S, H) f32
    *, n_layers, n_heads, head_dim, seq,
):
    hidden = n_heads * head_dim
    b = pl.program_id(0)

    # ---- in-kernel embedding gather + position add (rows of VMEM-resident table) ----
    for t in range(seq):
        tok = ids_ref[b, t]
        x_scr[pl.ds(t, 1), :] = (
            word_emb_ref[pl.ds(tok, 1), :] + pos_emb_ref[pl.ds(t, 1), :]
        )
    x = _ln(x_scr[...], embg_ref[...], embb_ref[...])            # (S, H) f32

    # ---- transformer layers (unrolled; stacked weights indexed statically) ----
    for l in range(n_layers):
        # fused Q|K|V projection: one (S,H)@(H,3H) MXU matmul, f32 accumulation.
        qkv = jnp.dot(_bf16(x), wqkv_ref[l],
                      preferred_element_type=jnp.float32) + bqkv_ref[l]
        q = qkv[:, :hidden]                   # 1/sqrt(d) pre-folded into weights
        k = qkv[:, hidden:2 * hidden]
        v = qkv[:, 2 * hidden:]

        # per-head attention; each head's context is folded directly into the
        # output projection (no ctx materialization, no concatenate).
        # TODO(synk): no attention mask (padded key positions are attended).
        attn = jnp.zeros((seq, hidden), jnp.float32)
        for h in range(n_heads):
            lo = h * head_dim
            qh = _bf16(q[:, lo:lo + head_dim])
            kh = _bf16(k[:, lo:lo + head_dim])
            vh = _bf16(v[:, lo:lo + head_dim])
            s = jax.lax.dot_general(qh, kh, (((1,), (1,)), ((), ())),
                                    preferred_element_type=jnp.float32)  # (S, S)
            s = s - jnp.max(s, axis=-1, keepdims=True)
            p = jnp.exp(s)
            p = p * pl.reciprocal(jnp.sum(p, axis=-1, keepdims=True), approx=True)
            ctx_h = jnp.dot(_bf16(p), vh, preferred_element_type=jnp.float32)
            attn = attn + jnp.dot(_bf16(ctx_h), wo_ref[l, lo:lo + head_dim, :],
                                  preferred_element_type=jnp.float32)
        attn = attn + bo_ref[l]

        # residual + LayerNorm (fused)
        h1 = _ln(x + attn, ln1g_ref[l], ln1b_ref[l])

        # feed-forward (GELU)
        ff = jnp.dot(_bf16(h1), w1_ref[l],
                     preferred_element_type=jnp.float32) + b1_ref[l]
        ff = _gelu(ff)
        ff = jnp.dot(_bf16(ff), w2_ref[l],
                     preferred_element_type=jnp.float32) + b2_ref[l]

        # residual + LayerNorm (fused)
        x = _ln(h1 + ff, ln2g_ref[l], ln2b_ref[l])

    # ---- classifier head on the CLS row only (dropout = identity at inference) ----
    cls = x[0:1, :]                                              # (1, H)
    hcls = jnp.dot(_bf16(cls), cw1_ref[...],
                   preferred_element_type=jnp.float32) + cb1_ref[...]
    hcls = jnp.maximum(hcls, 0.0)                                # ReLU
    y = jnp.dot(_bf16(hcls), cw2_ref[...],
                preferred_element_type=jnp.float32) + cb2_ref[...]
    logits_ref[0, :, :] = y.astype(logits_ref.dtype)             # lane-dense (1, 128)


# ---------------- wrapper ----------------
def distilbert_classification_forward(params, input_ids):
    B, S = input_ids.shape
    H = HIDDEN

    kernel = functools.partial(
        _fused_forward_kernel,
        n_layers=N_LAYERS, n_heads=N_HEADS, head_dim=HEAD_DIM, seq=S)

    # Constant index_maps -> weights/tables stay VMEM-resident across grid steps.
    full2 = lambda b, ids: (0, 0)
    full3 = lambda b, ids: (0, 0, 0)

    grid_spec = pltpu.PrefetchScalarGridSpec(
        num_scalar_prefetch=1,              # input_ids -> SMEM
        grid=(B,),
        in_specs=[
            pl.BlockSpec((VOCAB_PAD, H), full2),           # word_emb (padded rows)
            pl.BlockSpec((S, H), full2),                   # pos_emb (first S rows)
            pl.BlockSpec((1, H), full2),                   # emb_ln_g
            pl.BlockSpec((1, H), full2),                   # emb_ln_b
            pl.BlockSpec((N_LAYERS, H, 3 * H), full3),     # wqkv (bf16, scale folded)
            pl.BlockSpec((N_LAYERS, 1, 3 * H), full3),     # bqkv
            pl.BlockSpec((N_LAYERS, H, H), full3),         # wo   (bf16)
            pl.BlockSpec((N_LAYERS, 1, H), full3),         # bo
            pl.BlockSpec((N_LAYERS, 1, H), full3),         # sa_ln_g
            pl.BlockSpec((N_LAYERS, 1, H), full3),         # sa_ln_b
            pl.BlockSpec((N_LAYERS, H, FFN), full3),       # w1   (bf16)
            pl.BlockSpec((N_LAYERS, 1, FFN), full3),       # b1
            pl.BlockSpec((N_LAYERS, FFN, H), full3),       # w2   (bf16)
            pl.BlockSpec((N_LAYERS, 1, H), full3),         # b2
            pl.BlockSpec((N_LAYERS, 1, H), full3),         # out_ln_g
            pl.BlockSpec((N_LAYERS, 1, H), full3),         # out_ln_b
            pl.BlockSpec((H, HEAD_PAD), full2),            # cls_w1 (lane-padded)
            pl.BlockSpec((1, HEAD_PAD), full2),            # cls_b1
            pl.BlockSpec((HEAD_PAD, HEAD_PAD), full2),     # cls_w2 (lane-padded)
            pl.BlockSpec((1, HEAD_PAD), full2),            # cls_b2
        ],
        out_specs=pl.BlockSpec((1, 1, HEAD_PAD), lambda b, ids: (b, 0, 0)),
        scratch_shapes=[pltpu.VMEM((S, H), jnp.float32)],
    )

    logits_pad = pl.pallas_call(
        kernel,
        out_shape=jax.ShapeDtypeStruct((B, 1, HEAD_PAD), jnp.float32),
        grid_spec=grid_spec,
        compiler_params=pltpu.CompilerParams(
            dimension_semantics=("parallel",),      # B=2 -> both v7x TensorCores busy
            vmem_limit_bytes=32 * 1024 * 1024,
        ),
    )(
        input_ids,
        params["word_emb"], params["pos_emb"],
        params["emb_ln_g"], params["emb_ln_b"],
        params["wqkv"], params["bqkv"], params["wo"], params["bo"],
        params["sa_ln_g"], params["sa_ln_b"],
        params["w1"], params["b1"], params["w2"], params["b2"],
        params["out_ln_g"], params["out_ln_b"],
        params["cls_w1"], params["cls_b1"], params["cls_w2"], params["cls_b2"],
    )
    # lane-dense (B, 1, 128) slab stored in-kernel; slice to the real 2 labels here.
    return logits_pad.reshape(B, HEAD_PAD)[:, :LABELS]


# ---------------- parameters ----------------
def init_params(key):
    def normal(k, shape):
        return jax.random.normal(k, shape, jnp.float32) * 0.02

    keys = iter(jax.random.split(key, 4 + 4 * N_LAYERS + 4))
    scale = 1.0 / float(HEAD_DIM) ** 0.5

    wqkv, wo, w1, w2 = [], [], [], []
    for _ in range(N_LAYERS):
        wq = normal(next(keys), (HIDDEN, 3 * HIDDEN))
        wq = wq.at[:, :HIDDEN].multiply(scale)     # fold 1/sqrt(d) into Q columns
        wqkv.append(wq)
        wo.append(normal(next(keys), (HIDDEN, HIDDEN)))
        w1.append(normal(next(keys), (HIDDEN, FFN)))
        w2.append(normal(next(keys), (FFN, HIDDEN)))

    bqkv = jnp.zeros((N_LAYERS, 1, 3 * HIDDEN), jnp.float32)
    bqkv = bqkv.at[:, :, :HIDDEN].multiply(scale)  # fold scale into Q bias too

    # word embedding table, rows padded to VOCAB_PAD (ids only index < VOCAB)
    word_emb = normal(next(keys), (VOCAB, HIDDEN))
    word_emb = jnp.pad(word_emb, ((0, VOCAB_PAD - VOCAB), (0, 0)))

    # classifier: Linear(H->64) -> ReLU -> Linear(64->2); mid and output widths
    # zero-padded to 128 lanes (padding contributes exactly zero to the logits).
    cw1 = jnp.pad(normal(next(keys), (HIDDEN, CLS_MID)),
                  ((0, 0), (0, HEAD_PAD - CLS_MID)))
    cw2 = jnp.pad(normal(next(keys), (CLS_MID, LABELS)),
                  ((0, HEAD_PAD - CLS_MID), (0, HEAD_PAD - LABELS)))

    return {
        "word_emb": word_emb,
        "pos_emb": normal(next(keys), (MAX_POS, HIDDEN)),
        "emb_ln_g": jnp.ones((1, HIDDEN), jnp.float32),
        "emb_ln_b": jnp.zeros((1, HIDDEN), jnp.float32),
        "wqkv": jnp.stack(wqkv).astype(jnp.bfloat16),
        "bqkv": bqkv,
        "wo": jnp.stack(wo).astype(jnp.bfloat16),
        "bo": jnp.zeros((N_LAYERS, 1, HIDDEN), jnp.float32),
        "sa_ln_g": jnp.ones((N_LAYERS, 1, HIDDEN), jnp.float32),
        "sa_ln_b": jnp.zeros((N_LAYERS, 1, HIDDEN), jnp.float32),
        "w1": jnp.stack(w1).astype(jnp.bfloat16),
        "b1": jnp.zeros((N_LAYERS, 1, FFN), jnp.float32),
        "w2": jnp.stack(w2).astype(jnp.bfloat16),
        "b2": jnp.zeros((N_LAYERS, 1, HIDDEN), jnp.float32),
        "out_ln_g": jnp.ones((N_LAYERS, 1, HIDDEN), jnp.float32),
        "out_ln_b": jnp.zeros((N_LAYERS, 1, HIDDEN), jnp.float32),
        "cls_w1": cw1.astype(jnp.bfloat16),
        "cls_b1": jnp.zeros((1, HEAD_PAD), jnp.float32),
        "cls_w2": cw2.astype(jnp.bfloat16),
        "cls_b2": jnp.zeros((1, HEAD_PAD), jnp.float32),
    }


if __name__ == "__main__":
    key = jax.random.PRNGKey(0)
    pkey, ikey = jax.random.split(key)
    params = init_params(pkey)

    B, S = 2, 8
    input_ids = jax.random.randint(ikey, (B, S), 0, VOCAB, dtype=jnp.int32)

    fwd = jax.jit(distilbert_classification_forward)
    logits = jax.block_until_ready(fwd(params, input_ids))
    assert logits.shape == (B, LABELS), logits.shape
    print("KERNEL_OK")
</pallas_src>

<mosaic_0001>
module attributes {stable_mosaic.version = 11 : i64} {
  func.func @_fused_forward_kernel(%arg0: i32, %arg1: memref<2x8xi32, #tpu.memory_space<smem>>, %arg2: memref<128x128xf32, #tpu.memory_space<vmem>>, %arg3: memref<8x128xf32, #tpu.memory_space<vmem>>, %arg4: memref<1x128xf32, #tpu.memory_space<vmem>>, %arg5: memref<1x128xf32, #tpu.memory_space<vmem>>, %arg6: memref<2x128x384xbf16, #tpu.memory_space<vmem>>, %arg7: memref<2x1x384xf32, #tpu.memory_space<vmem>>, %arg8: memref<2x128x128xbf16, #tpu.memory_space<vmem>>, %arg9: memref<2x1x128xf32, #tpu.memory_space<vmem>>, %arg10: memref<2x1x128xf32, #tpu.memory_space<vmem>>, %arg11: memref<2x1x128xf32, #tpu.memory_space<vmem>>, %arg12: memref<2x128x256xbf16, #tpu.memory_space<vmem>>, %arg13: memref<2x1x256xf32, #tpu.memory_space<vmem>>, %arg14: memref<2x256x128xbf16, #tpu.memory_space<vmem>>, %arg15: memref<2x1x128xf32, #tpu.memory_space<vmem>>, %arg16: memref<2x1x128xf32, #tpu.memory_space<vmem>>, %arg17: memref<2x1x128xf32, #tpu.memory_space<vmem>>, %arg18: memref<128x128xbf16, #tpu.memory_space<vmem>>, %arg19: memref<1x128xf32, #tpu.memory_space<vmem>>, %arg20: memref<128x128xbf16, #tpu.memory_space<vmem>>, %arg21: memref<1x128xf32, #tpu.memory_space<vmem>>, %arg22: memref<1x1x128xf32, #tpu.memory_space<vmem>>, %arg23: memref<8x128xf32, #tpu.memory_space<vmem>>) attributes {dimension_semantics = [#tpu.dimension_semantics<parallel>], iteration_bounds = array<i64: 2>, scalar_prefetch = 1 : i64, scratch_operands = 1 : i64, tpu.core_type = #tpu.core_type<tc>, window_params = [{pipeline_mode = #tpu.pipeline_mode<synchronous>, transform_indices = @transform_0, window_bounds = array<i64: 128, 128>}, {transform_indices = @transform_1, window_bounds = array<i64: 8, 128>}, {pipeline_mode = #tpu.pipeline_mode<synchronous>, transform_indices = @transform_2, window_bounds = array<i64: 1, 128>}, {pipeline_mode = #tpu.pipeline_mode<synchronous>, transform_indices = @transform_3, window_bounds = array<i64: 1, 128>}, {pipeline_mode = #tpu.pipeline_mode<synchronous>, transform_indices = @transform_4, window_bounds = array<i64: 2, 128, 384>}, {pipeline_mode = #tpu.pipeline_mode<synchronous>, transform_indices = @transform_5, window_bounds = array<i64: 2, 1, 384>}, {pipeline_mode = #tpu.pipeline_mode<synchronous>, transform_indices = @transform_6, window_bounds = array<i64: 2, 128, 128>}, {pipeline_mode = #tpu.pipeline_mode<synchronous>, transform_indices = @transform_7, window_bounds = array<i64: 2, 1, 128>}, {pipeline_mode = #tpu.pipeline_mode<synchronous>, transform_indices = @transform_8, window_bounds = array<i64: 2, 1, 128>}, {pipeline_mode = #tpu.pipeline_mode<synchronous>, transform_indices = @transform_9, window_bounds = array<i64: 2, 1, 128>}, {pipeline_mode = #tpu.pipeline_mode<synchronous>, transform_indices = @transform_10, window_bounds = array<i64: 2, 128, 256>}, {pipeline_mode = #tpu.pipeline_mode<synchronous>, transform_indices = @transform_11, window_bounds = array<i64: 2, 1, 256>}, {pipeline_mode = #tpu.pipeline_mode<synchronous>, transform_indices = @transform_12, window_bounds = array<i64: 2, 256, 128>}, {pipeline_mode = #tpu.pipeline_mode<synchronous>, transform_indices = @transform_13, window_bounds = array<i64: 2, 1, 128>}, {pipeline_mode = #tpu.pipeline_mode<synchronous>, transform_indices = @transform_14, window_bounds = array<i64: 2, 1, 128>}, {pipeline_mode = #tpu.pipeline_mode<synchronous>, transform_indices = @transform_15, window_bounds = array<i64: 2, 1, 128>}, {pipeline_mode = #tpu.pipeline_mode<synchronous>, transform_indices = @transform_16, window_bounds = array<i64: 128, 128>}, {pipeline_mode = #tpu.pipeline_mode<synchronous>, transform_indices = @transform_17, window_bounds = array<i64: 1, 128>}, {pipeline_mode = #tpu.pipeline_mode<synchronous>, transform_indices = @transform_18, window_bounds = array<i64: 128, 128>}, {pipeline_mode = #tpu.pipeline_mode<synchronous>, transform_indices = @transform_19, window_bounds = array<i64: 1, 128>}, {transform_indices = @transform_20, window_bounds = array<i64: 1, 1, 128>}]} {
    %0 = arith.index_cast %arg0 : i32 to index
    %c0 = arith.constant 0 : index
    %1 = memref.load %arg1[%0, %c0] : memref<2x8xi32, #tpu.memory_space<smem>>
    %2 = arith.index_cast %1 : i32 to index
    %c0_0 = arith.constant 0 : index
    %3 = vector.load %arg2[%2, %c0_0] : memref<128x128xf32, #tpu.memory_space<vmem>>, vector<1x128xf32>
    %c0_1 = arith.constant 0 : index
    %c0_2 = arith.constant 0 : index
    %4 = vector.load %arg3[%c0_1, %c0_2] : memref<8x128xf32, #tpu.memory_space<vmem>>, vector<1x128xf32>
    %5 = arith.addf %3, %4 : vector<1x128xf32>
    %c0_3 = arith.constant 0 : index
    %c0_4 = arith.constant 0 : index
    %6 = vector.load %arg23[%c0_3, %c0_4] : memref<8x128xf32, #tpu.memory_space<vmem>>, vector<1x128xf32>
    tpu.vector_store %arg23[%c0_3, %c0_4], %5 {strides = array<i32>} : memref<8x128xf32, #tpu.memory_space<vmem>>, vector<1x128xf32>,
    %7 = arith.index_cast %arg0 : i32 to index
    %c1 = arith.constant 1 : index
    %8 = memref.load %arg1[%7, %c1] : memref<2x8xi32, #tpu.memory_space<smem>>
    %9 = arith.index_cast %8 : i32 to index
    %c0_5 = arith.constant 0 : index
    %10 = vector.load %arg2[%9, %c0_5] : memref<128x128xf32, #tpu.memory_space<vmem>>, vector<1x128xf32>
    %c1_6 = arith.constant 1 : index
    %c0_7 = arith.constant 0 : index
    %11 = vector.load %arg3[%c1_6, %c0_7] : memref<8x128xf32, #tpu.memory_space<vmem>>, vector<1x128xf32>
    %12 = arith.addf %10, %11 : vector<1x128xf32>
    %c1_8 = arith.constant 1 : index
    %c0_9 = arith.constant 0 : index
    %13 = vector.load %arg23[%c1_8, %c0_9] : memref<8x128xf32, #tpu.memory_space<vmem>>, vector<1x128xf32>
    tpu.vector_store %arg23[%c1_8, %c0_9], %12 {strides = array<i32>} : memref<8x128xf32, #tpu.memory_space<vmem>>, vector<1x128xf32>,
    %14 = arith.index_cast %arg0 : i32 to index
    %c2 = arith.constant 2 : index
    %15 = memref.load %arg1[%14, %c2] : memref<2x8xi32, #tpu.memory_space<smem>>
    %16 = arith.index_cast %15 : i32 to index
    %c0_10 = arith.constant 0 : index
    %17 = vector.load %arg2[%16, %c0_10] : memref<128x128xf32, #tpu.memory_space<vmem>>, vector<1x128xf32>
    %c2_11 = arith.constant 2 : index
    %c0_12 = arith.constant 0 : index
    %18 = vector.load %arg3[%c2_11, %c0_12] : memref<8x128xf32, #tpu.memory_space<vmem>>, vector<1x128xf32>
    %19 = arith.addf %17, %18 : vector<1x128xf32>
    %c2_13 = arith.constant 2 : index
    %c0_14 = arith.constant 0 : index
    %20 = vector.load %arg23[%c2_13, %c0_14] : memref<8x128xf32, #tpu.memory_space<vmem>>, vector<1x128xf32>
    tpu.vector_store %arg23[%c2_13, %c0_14], %19 {strides = array<i32>} : memref<8x128xf32, #tpu.memory_space<vmem>>, vector<1x128xf32>,
    %21 = arith.index_cast %arg0 : i32 to index
    %c3 = arith.constant 3 : index
    %22 = memref.load %arg1[%21, %c3] : memref<2x8xi32, #tpu.memory_space<smem>>
    %23 = arith.index_cast %22 : i32 to index
    %c0_15 = arith.constant 0 : index
    %24 = vector.load %arg2[%23, %c0_15] : memref<128x128xf32, #tpu.memory_space<vmem>>, vector<1x128xf32>
    %c3_16 = arith.constant 3 : index
    %c0_17 = arith.constant 0 : index
    %25 = vector.load %arg3[%c3_16, %c0_17] : memref<8x128xf32, #tpu.memory_space<vmem>>, vector<1x128xf32>
    %26 = arith.addf %24, %25 : vector<1x128xf32>
    %c3_18 = arith.constant 3 : index
    %c0_19 = arith.constant 0 : index
    %27 = vector.load %arg23[%c3_18, %c0_19] : memref<8x128xf32, #tpu.memory_space<vmem>>, vector<1x128xf32>
    tpu.vector_store %arg23[%c3_18, %c0_19], %26 {strides = array<i32>} : memref<8x128xf32, #tpu.memory_space<vmem>>, vector<1x128xf32>,
    %28 = arith.index_cast %arg0 : i32 to index
    %c4 = arith.constant 4 : index
    %29 = memref.load %arg1[%28, %c4] : memref<2x8xi32, #tpu.memory_space<smem>>
    %30 = arith.index_cast %29 : i32 to index
    %c0_20 = arith.constant 0 : index
    %31 = vector.load %arg2[%30, %c0_20] : memref<128x128xf32, #tpu.memory_space<vmem>>, vector<1x128xf32>
    %c4_21 = arith.constant 4 : index
    %c0_22 = arith.constant 0 : index
    %32 = vector.load %arg3[%c4_21, %c0_22] : memref<8x128xf32, #tpu.memory_space<vmem>>, vector<1x128xf32>
    %33 = arith.addf %31, %32 : vector<1x128xf32>
    %c4_23 = arith.constant 4 : index
    %c0_24 = arith.constant 0 : index
    %34 = vector.load %arg23[%c4_23, %c0_24] : memref<8x128xf32, #tpu.memory_space<vmem>>, vector<1x128xf32>
    tpu.vector_store %arg23[%c4_23, %c0_24], %33 {strides = array<i32>} : memref<8x128xf32, #tpu.memory_space<vmem>>, vector<1x128xf32>,
    %35 = arith.index_cast %arg0 : i32 to index
    %c5 = arith.constant 5 : index
    %36 = memref.load %arg1[%35, %c5] : memref<2x8xi32, #tpu.memory_space<smem>>
    %37 = arith.index_cast %36 : i32 to index
    %c0_25 = arith.constant 0 : index
    %38 = vector.load %arg2[%37, %c0_25] : memref<128x128xf32, #tpu.memory_space<vmem>>, vector<1x128xf32>
    %c5_26 = arith.constant 5 : index
    %c0_27 = arith.constant 0 : index
    %39 = vector.load %arg3[%c5_26, %c0_27] : memref<8x128xf32, #tpu.memory_space<vmem>>, vector<1x128xf32>
    %40 = arith.addf %38, %39 : vector<1x128xf32>
    %c5_28 = arith.constant 5 : index
    %c0_29 = arith.constant 0 : index
    %41 = vector.load %arg23[%c5_28, %c0_29] : memref<8x128xf32, #tpu.memory_space<vmem>>, vector<1x128xf32>
    tpu.vector_store %arg23[%c5_28, %c0_29], %40 {strides = array<i32>} : memref<8x128xf32, #tpu.memory_space<vmem>>, vector<1x128xf32>,
    %42 = arith.index_cast %arg0 : i32 to index
    %c6 = arith.constant 6 : index
    %43 = memref.load %arg1[%42, %c6] : memref<2x8xi32, #tpu.memory_space<smem>>
    %44 = arith.index_cast %43 : i32 to index
    %c0_30 = arith.constant 0 : index
    %45 = vector.load %arg2[%44, %c0_30] : memref<128x128xf32, #tpu.memory_space<vmem>>, vector<1x128xf32>
    %c6_31 = arith.constant 6 : index
    %c0_32 = arith.constant 0 : index
    %46 = vector.load %arg3[%c6_31, %c0_32] : memref<8x128xf32, #tpu.memory_space<vmem>>, vector<1x128xf32>
    %47 = arith.addf %45, %46 : vector<1x128xf32>
    %c6_33 = arith.constant 6 : index
    %c0_34 = arith.constant 0 : index
    %48 = vector.load %arg23[%c6_33, %c0_34] : memref<8x128xf32, #tpu.memory_space<vmem>>, vector<1x128xf32>
    tpu.vector_store %arg23[%c6_33, %c0_34], %47 {strides = array<i32>} : memref<8x128xf32, #tpu.memory_space<vmem>>, vector<1x128xf32>,
    %49 = arith.index_cast %arg0 : i32 to index
    %c7 = arith.constant 7 : index
    %50 = memref.load %arg1[%49, %c7] : memref<2x8xi32, #tpu.memory_space<smem>>
    %51 = arith.index_cast %50 : i32 to index
    %c0_35 = arith.constant 0 : index
    %52 = vector.load %arg2[%51, %c0_35] : memref<128x128xf32, #tpu.memory_space<vmem>>, vector<1x128xf32>
    %c7_36 = arith.constant 7 : index
    %c0_37 = arith.constant 0 : index
    %53 = vector.load %arg3[%c7_36, %c0_37] : memref<8x128xf32, #tpu.memory_space<vmem>>, vector<1x128xf32>
    %54 = arith.addf %52, %53 : vector<1x128xf32>
    %c7_38 = arith.constant 7 : index
    %c0_39 = arith.constant 0 : index
    %55 = vector.load %arg23[%c7_38, %c0_39] : memref<8x128xf32, #tpu.memory_space<vmem>>, vector<1x128xf32>
    tpu.vector_store %arg23[%c7_38, %c0_39], %54 {strides = array<i32>} : memref<8x128xf32, #tpu.memory_space<vmem>>, vector<1x128xf32>,
    %c0_40 = arith.constant 0 : index
    %c0_41 = arith.constant 0 : index
    %56 = vector.load %arg23[%c0_40, %c0_41] : memref<8x128xf32, #tpu.memory_space<vmem>>, vector<8x128xf32>
    %c0_42 = arith.constant 0 : index
    %c0_43 = arith.constant 0 : index
    %57 = vector.load %arg4[%c0_42, %c0_43] : memref<1x128xf32, #tpu.memory_space<vmem>>, vector<1x128xf32>
    %c0_44 = arith.constant 0 : index
    %c0_45 = arith.constant 0 : index
    %58 = vector.load %arg5[%c0_44, %c0_45] : memref<1x128xf32, #tpu.memory_space<vmem>>, vector<1x128xf32>
    %cst = arith.constant dense<0.000000e+00> : vector<8xf32>
    %59 = vector.multi_reduction <add>, %56, %cst [1] : vector<8x128xf32> to vector<8xf32>
    %60 = vector.shape_cast %59 : vector<8xf32> to vector<8x1xf32>
    %cst_46 = arith.constant 1.280000e+02 : f32
    %61 = vector.broadcast %cst_46 : f32 to vector<8x1xf32>
    %62 = arith.divf %60, %61 : vector<8x1xf32>
    %63 = vector.broadcast %62 : vector<8x1xf32> to vector<8x128xf32>
    %64 = arith.subf %56, %63 : vector<8x128xf32>
    %65 = arith.mulf %64, %64 : vector<8x128xf32>
    %cst_47 = arith.constant dense<0.000000e+00> : vector<8xf32>
    %66 = vector.multi_reduction <add>, %65, %cst_47 [1] : vector<8x128xf32> to vector<8xf32>
    %67 = vector.shape_cast %66 : vector<8xf32> to vector<8x1xf32>
    %cst_48 = arith.constant 1.280000e+02 : f32
    %68 = vector.broadcast %cst_48 : f32 to vector<8x1xf32>
    %69 = arith.divf %67, %68 : vector<8x1xf32>
    %cst_49 = arith.constant 9.99999996E-13 : f32
    %70 = vector.broadcast %cst_49 : f32 to vector<8x1xf32>
    %71 = arith.addf %69, %70 : vector<8x1xf32>
    %72 = math.rsqrt %71 : vector<8x1xf32>
    %73 = vector.broadcast %62 : vector<8x1xf32> to vector<8x128xf32>
    %74 = arith.subf %56, %73 : vector<8x128xf32>
    %75 = vector.broadcast %72 : vector<8x1xf32> to vector<8x128xf32>
    %76 = arith.mulf %74, %75 : vector<8x128xf32>
    %77 = vector.broadcast %57 : vector<1x128xf32> to vector<8x128xf32>
    %78 = arith.mulf %76, %77 : vector<8x128xf32>
    %79 = vector.broadcast %58 : vector<1x128xf32> to vector<8x128xf32>
    %80 = arith.addf %78, %79 : vector<8x128xf32>
    %81 = arith.truncf %80 : vector<8x128xf32> to vector<8x128xbf16>
    %c0_50 = arith.constant 0 : index
    %c0_51 = arith.constant 0 : index
    %c0_52 = arith.constant 0 : index
    %82 = vector.load %arg6[%c0_50, %c0_51, %c0_52] : memref<2x128x384xbf16, #tpu.memory_space<vmem>>, vector<1x128x384xbf16>
    %83 = vector.shape_cast %82 : vector<1x128x384xbf16> to vector<128x384xbf16>
    %cst_53 = arith.constant dense<0.000000e+00> : vector<8x384xf32>
    %84 = tpu.matmul %81, %83, %cst_53 {dimension_numbers = #tpu.dot_dimension_numbers<[1], [0], [0], [1], [0, 0, 1, 1], [], []>} : vector<8x128xbf16>, vector<128x384xbf16>, vector<8x384xf32> -> vector<8x384xf32>
    %c0_54 = arith.constant 0 : index
    %c0_55 = arith.constant 0 : index
    %c0_56 = arith.constant 0 : index
    %85 = vector.load %arg7[%c0_54, %c0_55, %c0_56] : memref<2x1x384xf32, #tpu.memory_space<vmem>>, vector<1x1x384xf32>
    %86 = vector.shape_cast %85 : vector<1x1x384xf32> to vector<1x384xf32>
    %87 = vector.broadcast %86 : vector<1x384xf32> to vector<8x384xf32>
    %88 = arith.addf %84, %87 : vector<8x384xf32>
    %89 = vector.extract_strided_slice %88 {offsets = [0, 0], sizes = [8, 128], strides = [1, 1]} : vector<8x384xf32> to vector<8x128xf32>
    %90 = vector.extract_strided_slice %88 {offsets = [0, 128], sizes = [8, 128], strides = [1, 1]} : vector<8x384xf32> to vector<8x128xf32>
    %91 = vector.extract_strided_slice %88 {offsets = [0, 256], sizes = [8, 128], strides = [1, 1]} : vector<8x384xf32> to vector<8x128xf32>
    %cst_57 = arith.constant 0.000000e+00 : f32
    %92 = vector.broadcast %cst_57 : f32 to vector<8x128xf32>
    %93 = vector.extract_strided_slice %89 {offsets = [0, 0], sizes = [8, 32], strides = [1, 1]} : vector<8x128xf32> to vector<8x32xf32>
    %94 = arith.truncf %93 : vector<8x32xf32> to vector<8x32xbf16>
    %95 = vector.extract_strided_slice %90 {offsets = [0, 0], sizes = [8, 32], strides = [1, 1]} : vector<8x128xf32> to vector<8x32xf32>
    %96 = arith.truncf %95 : vector<8x32xf32> to vector<8x32xbf16>
    %97 = vector.extract_strided_slice %91 {offsets = [0, 0], sizes = [8, 32], strides = [1, 1]} : vector<8x128xf32> to vector<8x32xf32>
    %98 = arith.truncf %97 : vector<8x32xf32> to vector<8x32xbf16>
    %cst_58 = arith.constant dense<0.000000e+00> : vector<8x8xf32>
    %99 = tpu.matmul %94, %96, %cst_58 {dimension_numbers = #tpu.dot_dimension_numbers<[1], [1], [0], [0], [0, 0, 1, 0], [], []>} : vector<8x32xbf16>, vector<8x32xbf16>, vector<8x8xf32> -> vector<8x8xf32>
    %cst_59 = arith.constant dense<0xFF800000> : vector<8xf32>
    %100 = vector.multi_reduction <maximumf>, %99, %cst_59 [1] : vector<8x8xf32> to vector<8xf32>
    %101 = vector.shape_cast %100 : vector<8xf32> to vector<8x1xf32>
    %102 = vector.broadcast %101 : vector<8x1xf32> to vector<8x8xf32>
    %103 = arith.subf %99, %102 : vector<8x8xf32>
    %104 = math.exp %103 : vector<8x8xf32>
    %cst_60 = arith.constant dense<0.000000e+00> : vector<8xf32>
    %105 = vector.multi_reduction <add>, %104, %cst_60 [1] : vector<8x8xf32> to vector<8xf32>
    %106 = vector.shape_cast %105 : vector<8xf32> to vector<8x1xf32>
    %107 = tpu.reciprocal %106 {approx = true} : vector<8x1xf32> -> vector<8x1xf32>
    %108 = vector.broadcast %107 : vector<8x1xf32> to vector<8x8xf32>
    %109 = arith.mulf %104, %108 : vector<8x8xf32>
    %110 = arith.truncf %109 : vector<8x8xf32> to vector<8x8xbf16>
    %cst_61 = arith.constant dense<0.000000e+00> : vector<8x32xf32>
    %111 = tpu.matmul %110, %98, %cst_61 {dimension_numbers = #tpu.dot_dimension_numbers<[1], [0], [0], [1], [0, 0, 1, 1], [], []>} : vector<8x8xbf16>, vector<8x32xbf16>, vector<8x32xf32> -> vector<8x32xf32>
    %112 = arith.truncf %111 : vector<8x32xf32> to vector<8x32xbf16>
    %c0_62 = arith.constant 0 : index
    %c0_63 = arith.constant 0 : index
    %c0_64 = arith.constant 0 : index
    %113 = vector.load %arg8[%c0_62, %c0_63, %c0_64] : memref<2x128x128xbf16, #tpu.memory_space<vmem>>, vector<1x32x128xbf16>
    %114 = vector.shape_cast %113 : vector<1x32x128xbf16> to vector<32x128xbf16>
    %cst_65 = arith.constant dense<0.000000e+00> : vector<8x128xf32>
    %115 = tpu.matmul %112, %114, %cst_65 {dimension_numbers = #tpu.dot_dimension_numbers<[1], [0], [0], [1], [0, 0, 1, 1], [], []>} : vector<8x32xbf16>, vector<32x128xbf16>, vector<8x128xf32> -> vector<8x128xf32>
    %116 = arith.addf %92, %115 : vector<8x128xf32>
    %117 = vector.extract_strided_slice %89 {offsets = [0, 32], sizes = [8, 32], strides = [1, 1]} : vector<8x128xf32> to vector<8x32xf32>
    %118 = arith.truncf %117 : vector<8x32xf32> to vector<8x32xbf16>
    %119 = vector.extract_strided_slice %90 {offsets = [0, 32], sizes = [8, 32], strides = [1, 1]} : vector<8x128xf32> to vector<8x32xf32>
    %120 = arith.truncf %119 : vector<8x32xf32> to vector<8x32xbf16>
    %121 = vector.extract_strided_slice %91 {offsets = [0, 32], sizes = [8, 32], strides = [1, 1]} : vector<8x128xf32> to vector<8x32xf32>
    %122 = arith.truncf %121 : vector<8x32xf32> to vector<8x32xbf16>
    %cst_66 = arith.constant dense<0.000000e+00> : vector<8x8xf32>
    %123 = tpu.matmul %118, %120, %cst_66 {dimension_numbers = #tpu.dot_dimension_numbers<[1], [1], [0], [0], [0, 0, 1, 0], [], []>} : vector<8x32xbf16>, vector<8x32xbf16>, vector<8x8xf32> -> vector<8x8xf32>
    %cst_67 = arith.constant dense<0xFF800000> : vector<8xf32>
    %124 = vector.multi_reduction <maximumf>, %123, %cst_67 [1] : vector<8x8xf32> to vector<8xf32>
    %125 = vector.shape_cast %124 : vector<8xf32> to vector<8x1xf32>
    %126 = vector.broadcast %125 : vector<8x1xf32> to vector<8x8xf32>
    %127 = arith.subf %123, %126 : vector<8x8xf32>
    %128 = math.exp %127 : vector<8x8xf32>
    %cst_68 = arith.constant dense<0.000000e+00> : vector<8xf32>
    %129 = vector.multi_reduction <add>, %128, %cst_68 [1] : vector<8x8xf32> to vector<8xf32>
    %130 = vector.shape_cast %129 : vector<8xf32> to vector<8x1xf32>
    %131 = tpu.reciprocal %130 {approx = true} : vector<8x1xf32> -> vector<8x1xf32>
    %132 = vector.broadcast %131 : vector<8x1xf32> to vector<8x8xf32>
    %133 = arith.mulf %128, %132 : vector<8x8xf32>
    %134 = arith.truncf %133 : vector<8x8xf32> to vector<8x8xbf16>
    %cst_69 = arith.constant dense<0.000000e+00> : vector<8x32xf32>
    %135 = tpu.matmul %134, %122, %cst_69 {dimension_numbers = #tpu.dot_dimension_numbers<[1], [0], [0], [1], [0, 0, 1, 1], [], []>} : vector<8x8xbf16>, vector<8x32xbf16>, vector<8x32xf32> -> vector<8x32xf32>
    %136 = arith.truncf %135 : vector<8x32xf32> to vector<8x32xbf16>
    %c0_70 = arith.constant 0 : index
    %c32 = arith.constant 32 : index
    %c0_71 = arith.constant 0 : index
    %137 = vector.load %arg8[%c0_70, %c32, %c0_71] : memref<2x128x128xbf16, #tpu.memory_space<vmem>>, vector<1x32x128xbf16>
    %138 = vector.shape_cast %137 : vector<1x32x128xbf16> to vector<32x128xbf16>
    %cst_72 = arith.constant dense<0.000000e+00> : vector<8x128xf32>
    %139 = tpu.matmul %136, %138, %cst_72 {dimension_numbers = #tpu.dot_dimension_numbers<[1], [0], [0], [1], [0, 0, 1, 1], [], []>} : vector<8x32xbf16>, vector<32x128xbf16>, vector<8x128xf32> -> vector<8x128xf32>
    %140 = arith.addf %116, %139 : vector<8x128xf32>
    %141 = vector.extract_strided_slice %89 {offsets = [0, 64], sizes = [8, 32], strides = [1, 1]} : vector<8x128xf32> to vector<8x32xf32>
    %142 = arith.truncf %141 : vector<8x32xf32> to vector<8x32xbf16>
    %143 = vector.extract_strided_slice %90 {offsets = [0, 64], sizes = [8, 32], strides = [1, 1]} : vector<8x128xf32> to vector<8x32xf32>
    %144 = arith.truncf %143 : vector<8x32xf32> to vector<8x32xbf16>
    %145 = vector.extract_strided_slice %91 {offsets = [0, 64], sizes = [8, 32], strides = [1, 1]} : vector<8x128xf32> to vector<8x32xf32>
    %146 = arith.truncf %145 : vector<8x32xf32> to vector<8x32xbf16>
    %cst_73 = arith.constant dense<0.000000e+00> : vector<8x8xf32>
    %147 = tpu.matmul %142, %144, %cst_73 {dimension_numbers = #tpu.dot_dimension_numbers<[1], [1], [0], [0], [0, 0, 1, 0], [], []>} : vector<8x32xbf16>, vector<8x32xbf16>, vector<8x8xf32> -> vector<8x8xf32>
    %cst_74 = arith.constant dense<0xFF800000> : vector<8xf32>
    %148 = vector.multi_reduction <maximumf>, %147, %cst_74 [1] : vector<8x8xf32> to vector<8xf32>
    %149 = vector.shape_cast %148 : vector<8xf32> to vector<8x1xf32>
    %150 = vector.broadcast %149 : vector<8x1xf32> to vector<8x8xf32>
    %151 = arith.subf %147, %150 : vector<8x8xf32>
    %152 = math.exp %151 : vector<8x8xf32>
    %cst_75 = arith.constant dense<0.000000e+00> : vector<8xf32>
    %153 = vector.multi_reduction <add>, %152, %cst_75 [1] : vector<8x8xf32> to vector<8xf32>
    %154 = vector.shape_cast %153 : vector<8xf32> to vector<8x1xf32>
    %155 = tpu.reciprocal %154 {approx = true} : vector<8x1xf32> -> vector<8x1xf32>
    %156 = vector.broadcast %155 : vector<8x1xf32> to vector<8x8xf32>
    %157 = arith.mulf %152, %156 : vector<8x8xf32>
    %158 = arith.truncf %157 : vector<8x8xf32> to vector<8x8xbf16>
    %cst_76 = arith.constant dense<0.000000e+00> : vector<8x32xf32>
    %159 = tpu.matmul %158, %146, %cst_76 {dimension_numbers = #tpu.dot_dimension_numbers<[1], [0], [0], [1], [0, 0, 1, 1], [], []>} : vector<8x8xbf16>, vector<8x32xbf16>, vector<8x32xf32> -> vector<8x32xf32>
    %160 = arith.truncf %159 : vector<8x32xf32> to vector<8x32xbf16>
    %c0_77 = arith.constant 0 : index
    %c64 = arith.constant 64 : index
    %c0_78 = arith.constant 0 : index
    %161 = vector.load %arg8[%c0_77, %c64, %c0_78] : memref<2x128x128xbf16, #tpu.memory_space<vmem>>, vector<1x32x128xbf16>
    %162 = vector.shape_cast %161 : vector<1x32x128xbf16> to vector<32x128xbf16>
    %cst_79 = arith.constant dense<0.000000e+00> : vector<8x128xf32>
    %163 = tpu.matmul %160, %162, %cst_79 {dimension_numbers = #tpu.dot_dimension_numbers<[1], [0], [0], [1], [0, 0, 1, 1], [], []>} : vector<8x32xbf16>, vector<32x128xbf16>, vector<8x128xf32> -> vector<8x128xf32>
    %164 = arith.addf %140, %163 : vector<8x128xf32>
    %165 = vector.extract_strided_slice %89 {offsets = [0, 96], sizes = [8, 32], strides = [1, 1]} : vector<8x128xf32> to vector<8x32xf32>
    %166 = arith.truncf %165 : vector<8x32xf32> to vector<8x32xbf16>
    %167 = vector.extract_strided_slice %90 {offsets = [0, 96], sizes = [8, 32], strides = [1, 1]} : vector<8x128xf32> to vector<8x32xf32>
    %168 = arith.truncf %167 : vector<8x32xf32> to vector<8x32xbf16>
    %169 = vector.extract_strided_slice %91 {offsets = [0, 96], sizes = [8, 32], strides = [1, 1]} : vector<8x128xf32> to vector<8x32xf32>
    %170 = arith.truncf %169 : vector<8x32xf32> to vector<8x32xbf16>
    %cst_80 = arith.constant dense<0.000000e+00> : vector<8x8xf32>
    %171 = tpu.matmul %166, %168, %cst_80 {dimension_numbers = #tpu.dot_dimension_numbers<[1], [1], [0], [0], [0, 0, 1, 0], [], []>} : vector<8x32xbf16>, vector<8x32xbf16>, vector<8x8xf32> -> vector<8x8xf32>
    %cst_81 = arith.constant dense<0xFF800000> : vector<8xf32>
    %172 = vector.multi_reduction <maximumf>, %171, %cst_81 [1] : vector<8x8xf32> to vector<8xf32>
    %173 = vector.shape_cast %172 : vector<8xf32> to vector<8x1xf32>
    %174 = vector.broadcast %173 : vector<8x1xf32> to vector<8x8xf32>
    %175 = arith.subf %171, %174 : vector<8x8xf32>
    %176 = math.exp %175 : vector<8x8xf32>
    %cst_82 = arith.constant dense<0.000000e+00> : vector<8xf32>
    %177 = vector.multi_reduction <add>, %176, %cst_82 [1] : vector<8x8xf32> to vector<8xf32>
    %178 = vector.shape_cast %177 : vector<8xf32> to vector<8x1xf32>
    %179 = tpu.reciprocal %178 {approx = true} : vector<8x1xf32> -> vector<8x1xf32>
    %180 = vector.broadcast %179 : vector<8x1xf32> to vector<8x8xf32>
    %181 = arith.mulf %176, %180 : vector<8x8xf32>
    %182 = arith.truncf %181 : vector<8x8xf32> to vector<8x8xbf16>
    %cst_83 = arith.constant dense<0.000000e+00> : vector<8x32xf32>
    %183 = tpu.matmul %182, %170, %cst_83 {dimension_numbers = #tpu.dot_dimension_numbers<[1], [0], [0], [1], [0, 0, 1, 1], [], []>} : vector<8x8xbf16>, vector<8x32xbf16>, vector<8x32xf32> -> vector<8x32xf32>
    %184 = arith.truncf %183 : vector<8x32xf32> to vector<8x32xbf16>
    %c0_84 = arith.constant 0 : index
    %c96 = arith.constant 96 : index
    %c0_85 = arith.constant 0 : index
    %185 = vector.load %arg8[%c0_84, %c96, %c0_85] : memref<2x128x128xbf16, #tpu.memory_space<vmem>>, vector<1x32x128xbf16>
    %186 = vector.shape_cast %185 : vector<1x32x128xbf16> to vector<32x128xbf16>
    %cst_86 = arith.constant dense<0.000000e+00> : vector<8x128xf32>
    %187 = tpu.matmul %184, %186, %cst_86 {dimension_numbers = #tpu.dot_dimension_numbers<[1], [0], [0], [1], [0, 0, 1, 1], [], []>} : vector<8x32xbf16>, vector<32x128xbf16>, vector<8x128xf32> -> vector<8x128xf32>
    %188 = arith.addf %164, %187 : vector<8x128xf32>
    %c0_87 = arith.constant 0 : index
    %c0_88 = arith.constant 0 : index
    %c0_89 = arith.constant 0 : index
    %189 = vector.load %arg9[%c0_87, %c0_88, %c0_89] : memref<2x1x128xf32, #tpu.memory_space<vmem>>, vector<1x1x128xf32>
    %190 = vector.shape_cast %189 : vector<1x1x128xf32> to vector<1x128xf32>
    %191 = vector.broadcast %190 : vector<1x128xf32> to vector<8x128xf32>
    %192 = arith.addf %188, %191 : vector<8x128xf32>
    %193 = arith.addf %80, %192 : vector<8x128xf32>
    %c0_90 = arith.constant 0 : index
    %c0_91 = arith.constant 0 : index
    %c0_92 = arith.constant 0 : index
    %194 = vector.load %arg10[%c0_90, %c0_91, %c0_92] : memref<2x1x128xf32, #tpu.memory_space<vmem>>, vector<1x1x128xf32>
    %195 = vector.shape_cast %194 : vector<1x1x128xf32> to vector<1x128xf32>
    %c0_93 = arith.constant 0 : index
    %c0_94 = arith.constant 0 : index
    %c0_95 = arith.constant 0 : index
    %196 = vector.load %arg11[%c0_93, %c0_94, %c0_95] : memref<2x1x128xf32, #tpu.memory_space<vmem>>, vector<1x1x128xf32>
    %197 = vector.shape_cast %196 : vector<1x1x128xf32> to vector<1x128xf32>
    %cst_96 = arith.constant dense<0.000000e+00> : vector<8xf32>
    %198 = vector.multi_reduction <add>, %193, %cst_96 [1] : vector<8x128xf32> to vector<8xf32>
    %199 = vector.shape_cast %198 : vector<8xf32> to vector<8x1xf32>
    %cst_97 = arith.constant 1.280000e+02 : f32
    %200 = vector.broadcast %cst_97 : f32 to vector<8x1xf32>
    %201 = arith.divf %199, %200 : vector<8x1xf32>
    %202 = vector.broadcast %201 : vector<8x1xf32> to vector<8x128xf32>
    %203 = arith.subf %193, %202 : vector<8x128xf32>
    %204 = arith.mulf %203, %203 : vector<8x128xf32>
    %cst_98 = arith.constant dense<0.000000e+00> : vector<8xf32>
    %205 = vector.multi_reduction <add>, %204, %cst_98 [1] : vector<8x128xf32> to vector<8xf32>
    %206 = vector.shape_cast %205 : vector<8xf32> to vector<8x1xf32>
    %cst_99 = arith.constant 1.280000e+02 : f32
    %207 = vector.broadcast %cst_99 : f32 to vector<8x1xf32>
    %208 = arith.divf %206, %207 : vector<8x1xf32>
    %cst_100 = arith.constant 9.99999996E-13 : f32
    %209 = vector.broadcast %cst_100 : f32 to vector<8x1xf32>
    %210 = arith.addf %208, %209 : vector<8x1xf32>
    %211 = math.rsqrt %210 : vector<8x1xf32>
    %212 = vector.broadcast %201 : vector<8x1xf32> to vector<8x128xf32>
    %213 = arith.subf %193, %212 : vector<8x128xf32>
    %214 = vector.broadcast %211 : vector<8x1xf32> to vector<8x128xf32>
    %215 = arith.mulf %213, %214 : vector<8x128xf32>
    %216 = vector.broadcast %195 : vector<1x128xf32> to vector<8x128xf32>
    %217 = arith.mulf %215, %216 : vector<8x128xf32>
    %218 = vector.broadcast %197 : vector<1x128xf32> to vector<8x128xf32>
    %219 = arith.addf %217, %218 : vector<8x128xf32>
    %220 = arith.truncf %219 : vector<8x128xf32> to vector<8x128xbf16>
    %c0_101 = arith.constant 0 : index
    %c0_102 = arith.constant 0 : index
    %c0_103 = arith.constant 0 : index
    %221 = vector.load %arg12[%c0_101, %c0_102, %c0_103] : memref<2x128x256xbf16, #tpu.memory_space<vmem>>, vector<1x128x256xbf16>
    %222 = vector.shape_cast %221 : vector<1x128x256xbf16> to vector<128x256xbf16>
    %cst_104 = arith.constant dense<0.000000e+00> : vector<8x256xf32>
    %223 = tpu.matmul %220, %222, %cst_104 {dimension_numbers = #tpu.dot_dimension_numbers<[1], [0], [0], [1], [0, 0, 1, 1], [], []>} : vector<8x128xbf16>, vector<128x256xbf16>, vector<8x256xf32> -> vector<8x256xf32>
    %c0_105 = arith.constant 0 : index
    %c0_106 = arith.constant 0 : index
    %c0_107 = arith.constant 0 : index
    %224 = vector.load %arg13[%c0_105, %c0_106, %c0_107] : memref<2x1x256xf32, #tpu.memory_space<vmem>>, vector<1x1x256xf32>
    %225 = vector.shape_cast %224 : vector<1x1x256xf32> to vector<1x256xf32>
    %226 = vector.broadcast %225 : vector<1x256xf32> to vector<8x256xf32>
    %227 = arith.addf %223, %226 : vector<8x256xf32>
    %cst_108 = arith.constant 5.000000e-01 : f32
    %228 = vector.broadcast %cst_108 : f32 to vector<8x256xf32>
    %229 = arith.mulf %228, %227 : vector<8x256xf32>
    %cst_109 = arith.constant 4.471500e-02 : f32
    %230 = vector.broadcast %cst_109 : f32 to vector<8x256xf32>
    %231 = arith.mulf %230, %227 : vector<8x256xf32>
    %232 = arith.mulf %231, %227 : vector<8x256xf32>
    %233 = arith.mulf %232, %227 : vector<8x256xf32>
    %234 = arith.addf %227, %233 : vector<8x256xf32>
    %cst_110 = arith.constant 0.797884583 : f32
    %235 = vector.broadcast %cst_110 : f32 to vector<8x256xf32>
    %236 = arith.mulf %235, %234 : vector<8x256xf32>
    %237 = math.tanh %236 : vector<8x256xf32>
    %cst_111 = arith.constant 1.000000e+00 : f32
    %238 = vector.broadcast %cst_111 : f32 to vector<8x256xf32>
    %239 = arith.addf %238, %237 : vector<8x256xf32>
    %240 = arith.mulf %229, %239 : vector<8x256xf32>
    %241 = arith.truncf %240 : vector<8x256xf32> to vector<8x256xbf16>
    %c0_112 = arith.constant 0 : index
    %c0_113 = arith.constant 0 : index
    %c0_114 = arith.constant 0 : index
    %242 = vector.load %arg14[%c0_112, %c0_113, %c0_114] : memref<2x256x128xbf16, #tpu.memory_space<vmem>>, vector<1x256x128xbf16>
    %243 = vector.shape_cast %242 : vector<1x256x128xbf16> to vector<256x128xbf16>
    %cst_115 = arith.constant dense<0.000000e+00> : vector<8x128xf32>
    %244 = tpu.matmul %241, %243, %cst_115 {dimension_numbers = #tpu.dot_dimension_numbers<[1], [0], [0], [1], [0, 0, 1, 1], [], []>} : vector<8x256xbf16>, vector<256x128xbf16>, vector<8x128xf32> -> vector<8x128xf32>
    %c0_116 = arith.constant 0 : index
    %c0_117 = arith.constant 0 : index
    %c0_118 = arith.constant 0 : index
    %245 = vector.load %arg15[%c0_116, %c0_117, %c0_118] : memref<2x1x128xf32, #tpu.memory_space<vmem>>, vector<1x1x128xf32>
    %246 = vector.shape_cast %245 : vector<1x1x128xf32> to vector<1x128xf32>
    %247 = vector.broadcast %246 : vector<1x128xf32> to vector<8x128xf32>
    %248 = arith.addf %244, %247 : vector<8x128xf32>
    %249 = arith.addf %219, %248 : vector<8x128xf32>
    %c0_119 = arith.constant 0 : index
    %c0_120 = arith.constant 0 : index
    %c0_121 = arith.constant 0 : index
    %250 = vector.load %arg16[%c0_119, %c0_120, %c0_121] : memref<2x1x128xf32, #tpu.memory_space<vmem>>, vector<1x1x128xf32>
    %251 = vector.shape_cast %250 : vector<1x1x128xf32> to vector<1x128xf32>
    %c0_122 = arith.constant 0 : index
    %c0_123 = arith.constant 0 : index
    %c0_124 = arith.constant 0 : index
    %252 = vector.load %arg17[%c0_122, %c0_123, %c0_124] : memref<2x1x128xf32, #tpu.memory_space<vmem>>, vector<1x1x128xf32>
    %253 = vector.shape_cast %252 : vector<1x1x128xf32> to vector<1x128xf32>
    %cst_125 = arith.constant dense<0.000000e+00> : vector<8xf32>
    %254 = vector.multi_reduction <add>, %249, %cst_125 [1] : vector<8x128xf32> to vector<8xf32>
    %255 = vector.shape_cast %254 : vector<8xf32> to vector<8x1xf32>
    %cst_126 = arith.constant 1.280000e+02 : f32
    %256 = vector.broadcast %cst_126 : f32 to vector<8x1xf32>
    %257 = arith.divf %255, %256 : vector<8x1xf32>
    %258 = vector.broadcast %257 : vector<8x1xf32> to vector<8x128xf32>
    %259 = arith.subf %249, %258 : vector<8x128xf32>
    %260 = arith.mulf %259, %259 : vector<8x128xf32>
    %cst_127 = arith.constant dense<0.000000e+00> : vector<8xf32>
    %261 = vector.multi_reduction <add>, %260, %cst_127 [1] : vector<8x128xf32> to vector<8xf32>
    %262 = vector.shape_cast %261 : vector<8xf32> to vector<8x1xf32>
    %cst_128 = arith.constant 1.280000e+02 : f32
    %263 = vector.broadcast %cst_128 : f32 to vector<8x1xf32>
    %264 = arith.divf %262, %263 : vector<8x1xf32>
    %cst_129 = arith.constant 9.99999996E-13 : f32
    %265 = vector.broadcast %cst_129 : f32 to vector<8x1xf32>
    %266 = arith.addf %264, %265 : vector<8x1xf32>
    %267 = math.rsqrt %266 : vector<8x1xf32>
    %268 = vector.broadcast %257 : vector<8x1xf32> to vector<8x128xf32>
    %269 = arith.subf %249, %268 : vector<8x128xf32>
    %270 = vector.broadcast %267 : vector<8x1xf32> to vector<8x128xf32>
    %271 = arith.mulf %269, %270 : vector<8x128xf32>
    %272 = vector.broadcast %251 : vector<1x128xf32> to vector<8x128xf32>
    %273 = arith.mulf %271, %272 : vector<8x128xf32>
    %274 = vector.broadcast %253 : vector<1x128xf32> to vector<8x128xf32>
    %275 = arith.addf %273, %274 : vector<8x128xf32>
    %276 = arith.truncf %275 : vector<8x128xf32> to vector<8x128xbf16>
    %c1_130 = arith.constant 1 : index
    %c0_131 = arith.constant 0 : index
    %c0_132 = arith.constant 0 : index
    %277 = vector.load %arg6[%c1_130, %c0_131, %c0_132] : memref<2x128x384xbf16, #tpu.memory_space<vmem>>, vector<1x128x384xbf16>
    %278 = vector.shape_cast %277 : vector<1x128x384xbf16> to vector<128x384xbf16>
    %cst_133 = arith.constant dense<0.000000e+00> : vector<8x384xf32>
    %279 = tpu.matmul %276, %278, %cst_133 {dimension_numbers = #tpu.dot_dimension_numbers<[1], [0], [0], [1], [0, 0, 1, 1], [], []>} : vector<8x128xbf16>, vector<128x384xbf16>, vector<8x384xf32> -> vector<8x384xf32>
    %c1_134 = arith.constant 1 : index
    %c0_135 = arith.constant 0 : index
    %c0_136 = arith.constant 0 : index
    %280 = vector.load %arg7[%c1_134, %c0_135, %c0_136] : memref<2x1x384xf32, #tpu.memory_space<vmem>>, vector<1x1x384xf32>
    %281 = vector.shape_cast %280 : vector<1x1x384xf32> to vector<1x384xf32>
    %282 = vector.broadcast %281 : vector<1x384xf32> to vector<8x384xf32>
    %283 = arith.addf %279, %282 : vector<8x384xf32>
    %284 = vector.extract_strided_slice %283 {offsets = [0, 0], sizes = [8, 128], strides = [1, 1]} : vector<8x384xf32> to vector<8x128xf32>
    %285 = vector.extract_strided_slice %283 {offsets = [0, 128], sizes = [8, 128], strides = [1, 1]} : vector<8x384xf32> to vector<8x128xf32>
    %286 = vector.extract_strided_slice %283 {offsets = [0, 256], sizes = [8, 128], strides = [1, 1]} : vector<8x384xf32> to vector<8x128xf32>
    %cst_137 = arith.constant 0.000000e+00 : f32
    %287 = vector.broadcast %cst_137 : f32 to vector<8x128xf32>
    %288 = vector.extract_strided_slice %284 {offsets = [0, 0], sizes = [8, 32], strides = [1, 1]} : vector<8x128xf32> to vector<8x32xf32>
    %289 = arith.truncf %288 : vector<8x32xf32> to vector<8x32xbf16>
    %290 = vector.extract_strided_slice %285 {offsets = [0, 0], sizes = [8, 32], strides = [1, 1]} : vector<8x128xf32> to vector<8x32xf32>
    %291 = arith.truncf %290 : vector<8x32xf32> to vector<8x32xbf16>
    %292 = vector.extract_strided_slice %286 {offsets = [0, 0], sizes = [8, 32], strides = [1, 1]} : vector<8x128xf32> to vector<8x32xf32>
    %293 = arith.truncf %292 : vector<8x32xf32> to vector<8x32xbf16>
    %cst_138 = arith.constant dense<0.000000e+00> : vector<8x8xf32>
    %294 = tpu.matmul %289, %291, %cst_138 {dimension_numbers = #tpu.dot_dimension_numbers<[1], [1], [0], [0], [0, 0, 1, 0], [], []>} : vector<8x32xbf16>, vector<8x32xbf16>, vector<8x8xf32> -> vector<8x8xf32>
    %cst_139 = arith.constant dense<0xFF800000> : vector<8xf32>
    %295 = vector.multi_reduction <maximumf>, %294, %cst_139 [1] : vector<8x8xf32> to vector<8xf32>
    %296 = vector.shape_cast %295 : vector<8xf32> to vector<8x1xf32>
    %297 = vector.broadcast %296 : vector<8x1xf32> to vector<8x8xf32>
    %298 = arith.subf %294, %297 : vector<8x8xf32>
    %299 = math.exp %298 : vector<8x8xf32>
    %cst_140 = arith.constant dense<0.000000e+00> : vector<8xf32>
    %300 = vector.multi_reduction <add>, %299, %cst_140 [1] : vector<8x8xf32> to vector<8xf32>
    %301 = vector.shape_cast %300 : vector<8xf32> to vector<8x1xf32>
    %302 = tpu.reciprocal %301 {approx = true} : vector<8x1xf32> -> vector<8x1xf32>
    %303 = vector.broadcast %302 : vector<8x1xf32> to vector<8x8xf32>
    %304 = arith.mulf %299, %303 : vector<8x8xf32>
    %305 = arith.truncf %304 : vector<8x8xf32> to vector<8x8xbf16>
    %cst_141 = arith.constant dense<0.000000e+00> : vector<8x32xf32>
    %306 = tpu.matmul %305, %293, %cst_141 {dimension_numbers = #tpu.dot_dimension_numbers<[1], [0], [0], [1], [0, 0, 1, 1], [], []>} : vector<8x8xbf16>, vector<8x32xbf16>, vector<8x32xf32> -> vector<8x32xf32>
    %307 = arith.truncf %306 : vector<8x32xf32> to vector<8x32xbf16>
    %c1_142 = arith.constant 1 : index
    %c0_143 = arith.constant 0 : index
    %c0_144 = arith.constant 0 : index
    %308 = vector.load %arg8[%c1_142, %c0_143, %c0_144] : memref<2x128x128xbf16, #tpu.memory_space<vmem>>, vector<1x32x128xbf16>
    %309 = vector.shape_cast %308 : vector<1x32x128xbf16> to vector<32x128xbf16>
    %cst_145 = arith.constant dense<0.000000e+00> : vector<8x128xf32>
    %310 = tpu.matmul %307, %309, %cst_145 {dimension_numbers = #tpu.dot_dimension_numbers<[1], [0], [0], [1], [0, 0, 1, 1], [], []>} : vector<8x32xbf16>, vector<32x128xbf16>, vector<8x128xf32> -> vector<8x128xf32>
    %311 = arith.addf %287, %310 : vector<8x128xf32>
    %312 = vector.extract_strided_slice %284 {offsets = [0, 32], sizes = [8, 32], strides = [1, 1]} : vector<8x128xf32> to vector<8x32xf32>
    %313 = arith.truncf %312 : vector<8x32xf32> to vector<8x32xbf16>
    %314 = vector.extract_strided_slice %285 {offsets = [0, 32], sizes = [8, 32], strides = [1, 1]} : vector<8x128xf32> to vector<8x32xf32>
    %315 = arith.truncf %314 : vector<8x32xf32> to vector<8x32xbf16>
    %316 = vector.extract_strided_slice %286 {offsets = [0, 32], sizes = [8, 32], strides = [1, 1]} : vector<8x128xf32> to vector<8x32xf32>
    %317 = arith.truncf %316 : vector<8x32xf32> to vector<8x32xbf16>
    %cst_146 = arith.constant dense<0.000000e+00> : vector<8x8xf32>
    %318 = tpu.matmul %313, %315, %cst_146 {dimension_numbers = #tpu.dot_dimension_numbers<[1], [1], [0], [0], [0, 0, 1, 0], [], []>} : vector<8x32xbf16>, vector<8x32xbf16>, vector<8x8xf32> -> vector<8x8xf32>
    %cst_147 = arith.constant dense<0xFF800000> : vector<8xf32>
    %319 = vector.multi_reduction <maximumf>, %318, %cst_147 [1] : vector<8x8xf32> to vector<8xf32>
    %320 = vector.shape_cast %319 : vector<8xf32> to vector<8x1xf32>
    %321 = vector.broadcast %320 : vector<8x1xf32> to vector<8x8xf32>
    %322 = arith.subf %318, %321 : vector<8x8xf32>
    %323 = math.exp %322 : vector<8x8xf32>
    %cst_148 = arith.constant dense<0.000000e+00> : vector<8xf32>
    %324 = vector.multi_reduction <add>, %323, %cst_148 [1] : vector<8x8xf32> to vector<8xf32>
    %325 = vector.shape_cast %324 : vector<8xf32> to vector<8x1xf32>
    %326 = tpu.reciprocal %325 {approx = true} : vector<8x1xf32> -> vector<8x1xf32>
    %327 = vector.broadcast %326 : vector<8x1xf32> to vector<8x8xf32>
    %328 = arith.mulf %323, %327 : vector<8x8xf32>
    %329 = arith.truncf %328 : vector<8x8xf32> to vector<8x8xbf16>
    %cst_149 = arith.constant dense<0.000000e+00> : vector<8x32xf32>
    %330 = tpu.matmul %329, %317, %cst_149 {dimension_numbers = #tpu.dot_dimension_numbers<[1], [0], [0], [1], [0, 0, 1, 1], [], []>} : vector<8x8xbf16>, vector<8x32xbf16>, vector<8x32xf32> -> vector<8x32xf32>
    %331 = arith.truncf %330 : vector<8x32xf32> to vector<8x32xbf16>
    %c1_150 = arith.constant 1 : index
    %c32_151 = arith.constant 32 : index
    %c0_152 = arith.constant 0 : index
    %332 = vector.load %arg8[%c1_150, %c32_151, %c0_152] : memref<2x128x128xbf16, #tpu.memory_space<vmem>>, vector<1x32x128xbf16>
    %333 = vector.shape_cast %332 : vector<1x32x128xbf16> to vector<32x128xbf16>
    %cst_153 = arith.constant dense<0.000000e+00> : vector<8x128xf32>
    %334 = tpu.matmul %331, %333, %cst_153 {dimension_numbers = #tpu.dot_dimension_numbers<[1], [0], [0], [1], [0, 0, 1, 1], [], []>} : vector<8x32xbf16>, vector<32x128xbf16>, vector<8x128xf32> -> vector<8x128xf32>
    %335 = arith.addf %311, %334 : vector<8x128xf32>
    %336 = vector.extract_strided_slice %284 {offsets = [0, 64], sizes = [8, 32], strides = [1, 1]} : vector<8x128xf32> to vector<8x32xf32>
    %337 = arith.truncf %336 : vector<8x32xf32> to vector<8x32xbf16>
    %338 = vector.extract_strided_slice %285 {offsets = [0, 64], sizes = [8, 32], strides = [1, 1]} : vector<8x128xf32> to vector<8x32xf32>
    %339 = arith.truncf %338 : vector<8x32xf32> to vector<8x32xbf16>
    %340 = vector.extract_strided_slice %286 {offsets = [0, 64], sizes = [8, 32], strides = [1, 1]} : vector<8x128xf32> to vector<8x32xf32>
    %341 = arith.truncf %340 : vector<8x32xf32> to vector<8x32xbf16>
    %cst_154 = arith.constant dense<0.000000e+00> : vector<8x8xf32>
    %342 = tpu.matmul %337, %339, %cst_154 {dimension_numbers = #tpu.dot_dimension_numbers<[1], [1], [0], [0], [0, 0, 1, 0], [], []>} : vector<8x32xbf16>, vector<8x32xbf16>, vector<8x8xf32> -> vector<8x8xf32>
    %cst_155 = arith.constant dense<0xFF800000> : vector<8xf32>
    %343 = vector.multi_reduction <maximumf>, %342, %cst_155 [1] : vector<8x8xf32> to vector<8xf32>
    %344 = vector.shape_cast %343 : vector<8xf32> to vector<8x1xf32>
    %345 = vector.broadcast %344 : vector<8x1xf32> to vector<8x8xf32>
    %346 = arith.subf %342, %345 : vector<8x8xf32>
    %347 = math.exp %346 : vector<8x8xf32>
    %cst_156 = arith.constant dense<0.000000e+00> : vector<8xf32>
    %348 = vector.multi_reduction <add>, %347, %cst_156 [1] : vector<8x8xf32> to vector<8xf32>
    %349 = vector.shape_cast %348 : vector<8xf32> to vector<8x1xf32>
    %350 = tpu.reciprocal %349 {approx = true} : vector<8x1xf32> -> vector<8x1xf32>
    %351 = vector.broadcast %350 : vector<8x1xf32> to vector<8x8xf32>
    %352 = arith.mulf %347, %351 : vector<8x8xf32>
    %353 = arith.truncf %352 : vector<8x8xf32> to vector<8x8xbf16>
    %cst_157 = arith.constant dense<0.000000e+00> : vector<8x32xf32>
    %354 = tpu.matmul %353, %341, %cst_157 {dimension_numbers = #tpu.dot_dimension_numbers<[1], [0], [0], [1], [0, 0, 1, 1], [], []>} : vector<8x8xbf16>, vector<8x32xbf16>, vector<8x32xf32> -> vector<8x32xf32>
    %355 = arith.truncf %354 : vector<8x32xf32> to vector<8x32xbf16>
    %c1_158 = arith.constant 1 : index
    %c64_159 = arith.constant 64 : index
    %c0_160 = arith.constant 0 : index
    %356 = vector.load %arg8[%c1_158, %c64_159, %c0_160] : memref<2x128x128xbf16, #tpu.memory_space<vmem>>, vector<1x32x128xbf16>
    %357 = vector.shape_cast %356 : vector<1x32x128xbf16> to vector<32x128xbf16>
    %cst_161 = arith.constant dense<0.000000e+00> : vector<8x128xf32>
    %358 = tpu.matmul %355, %357, %cst_161 {dimension_numbers = #tpu.dot_dimension_numbers<[1], [0], [0], [1], [0, 0, 1, 1], [], []>} : vector<8x32xbf16>, vector<32x128xbf16>, vector<8x128xf32> -> vector<8x128xf32>
    %359 = arith.addf %335, %358 : vector<8x128xf32>
    %360 = vector.extract_strided_slice %284 {offsets = [0, 96], sizes = [8, 32], strides = [1, 1]} : vector<8x128xf32> to vector<8x32xf32>
    %361 = arith.truncf %360 : vector<8x32xf32> to vector<8x32xbf16>
    %362 = vector.extract_strided_slice %285 {offsets = [0, 96], sizes = [8, 32], strides = [1, 1]} : vector<8x128xf32> to vector<8x32xf32>
    %363 = arith.truncf %362 : vector<8x32xf32> to vector<8x32xbf16>
    %364 = vector.extract_strided_slice %286 {offsets = [0, 96], sizes = [8, 32], strides = [1, 1]} : vector<8x128xf32> to vector<8x32xf32>
    %365 = arith.truncf %364 : vector<8x32xf32> to vector<8x32xbf16>
    %cst_162 = arith.constant dense<0.000000e+00> : vector<8x8xf32>
    %366 = tpu.matmul %361, %363, %cst_162 {dimension_numbers = #tpu.dot_dimension_numbers<[1], [1], [0], [0], [0, 0, 1, 0], [], []>} : vector<8x32xbf16>, vector<8x32xbf16>, vector<8x8xf32> -> vector<8x8xf32>
    %cst_163 = arith.constant dense<0xFF800000> : vector<8xf32>
    %367 = vector.multi_reduction <maximumf>, %366, %cst_163 [1] : vector<8x8xf32> to vector<8xf32>
    %368 = vector.shape_cast %367 : vector<8xf32> to vector<8x1xf32>
    %369 = vector.broadcast %368 : vector<8x1xf32> to vector<8x8xf32>
    %370 = arith.subf %366, %369 : vector<8x8xf32>
    %371 = math.exp %370 : vector<8x8xf32>
    %cst_164 = arith.constant dense<0.000000e+00> : vector<8xf32>
    %372 = vector.multi_reduction <add>, %371, %cst_164 [1] : vector<8x8xf32> to vector<8xf32>
    %373 = vector.shape_cast %372 : vector<8xf32> to vector<8x1xf32>
    %374 = tpu.reciprocal %373 {approx = true} : vector<8x1xf32> -> vector<8x1xf32>
    %375 = vector.broadcast %374 : vector<8x1xf32> to vector<8x8xf32>
    %376 = arith.mulf %371, %375 : vector<8x8xf32>
    %377 = arith.truncf %376 : vector<8x8xf32> to vector<8x8xbf16>
    %cst_165 = arith.constant dense<0.000000e+00> : vector<8x32xf32>
    %378 = tpu.matmul %377, %365, %cst_165 {dimension_numbers = #tpu.dot_dimension_numbers<[1], [0], [0], [1], [0, 0, 1, 1], [], []>} : vector<8x8xbf16>, vector<8x32xbf16>, vector<8x32xf32> -> vector<8x32xf32>
    %379 = arith.truncf %378 : vector<8x32xf32> to vector<8x32xbf16>
    %c1_166 = arith.constant 1 : index
    %c96_167 = arith.constant 96 : index
    %c0_168 = arith.constant 0 : index
    %380 = vector.load %arg8[%c1_166, %c96_167, %c0_168] : memref<2x128x128xbf16, #tpu.memory_space<vmem>>, vector<1x32x128xbf16>
    %381 = vector.shape_cast %380 : vector<1x32x128xbf16> to vector<32x128xbf16>
    %cst_169 = arith.constant dense<0.000000e+00> : vector<8x128xf32>
    %382 = tpu.matmul %379, %381, %cst_169 {dimension_numbers = #tpu.dot_dimension_numbers<[1], [0], [0], [1], [0, 0, 1, 1], [], []>} : vector<8x32xbf16>, vector<32x128xbf16>, vector<8x128xf32> -> vector<8x128xf32>
    %383 = arith.addf %359, %382 : vector<8x128xf32>
    %c1_170 = arith.constant 1 : index
    %c0_171 = arith.constant 0 : index
    %c0_172 = arith.constant 0 : index
    %384 = vector.load %arg9[%c1_170, %c0_171, %c0_172] : memref<2x1x128xf32, #tpu.memory_space<vmem>>, vector<1x1x128xf32>
    %385 = vector.shape_cast %384 : vector<1x1x128xf32> to vector<1x128xf32>
    %386 = vector.broadcast %385 : vector<1x128xf32> to vector<8x128xf32>
    %387 = arith.addf %383, %386 : vector<8x128xf32>
    %388 = arith.addf %275, %387 : vector<8x128xf32>
    %c1_173 = arith.constant 1 : index
    %c0_174 = arith.constant 0 : index
    %c0_175 = arith.constant 0 : index
    %389 = vector.load %arg10[%c1_173, %c0_174, %c0_175] : memref<2x1x128xf32, #tpu.memory_space<vmem>>, vector<1x1x128xf32>
    %390 = vector.shape_cast %389 : vector<1x1x128xf32> to vector<1x128xf32>
    %c1_176 = arith.constant 1 : index
    %c0_177 = arith.constant 0 : index
    %c0_178 = arith.constant 0 : index
    %391 = vector.load %arg11[%c1_176, %c0_177, %c0_178] : memref<2x1x128xf32, #tpu.memory_space<vmem>>, vector<1x1x128xf32>
    %392 = vector.shape_cast %391 : vector<1x1x128xf32> to vector<1x128xf32>
    %cst_179 = arith.constant dense<0.000000e+00> : vector<8xf32>
    %393 = vector.multi_reduction <add>, %388, %cst_179 [1] : vector<8x128xf32> to vector<8xf32>
    %394 = vector.shape_cast %393 : vector<8xf32> to vector<8x1xf32>
    %cst_180 = arith.constant 1.280000e+02 : f32
    %395 = vector.broadcast %cst_180 : f32 to vector<8x1xf32>
    %396 = arith.divf %394, %395 : vector<8x1xf32>
    %397 = vector.broadcast %396 : vector<8x1xf32> to vector<8x128xf32>
    %398 = arith.subf %388, %397 : vector<8x128xf32>
    %399 = arith.mulf %398, %398 : vector<8x128xf32>
    %cst_181 = arith.constant dense<0.000000e+00> : vector<8xf32>
    %400 = vector.multi_reduction <add>, %399, %cst_181 [1] : vector<8x128xf32> to vector<8xf32>
    %401 = vector.shape_cast %400 : vector<8xf32> to vector<8x1xf32>
    %cst_182 = arith.constant 1.280000e+02 : f32
    %402 = vector.broadcast %cst_182 : f32 to vector<8x1xf32>
    %403 = arith.divf %401, %402 : vector<8x1xf32>
    %cst_183 = arith.constant 9.99999996E-13 : f32
    %404 = vector.broadcast %cst_183 : f32 to vector<8x1xf32>
    %405 = arith.addf %403, %404 : vector<8x1xf32>
    %406 = math.rsqrt %405 : vector<8x1xf32>
    %407 = vector.broadcast %396 : vector<8x1xf32> to vector<8x128xf32>
    %408 = arith.subf %388, %407 : vector<8x128xf32>
    %409 = vector.broadcast %406 : vector<8x1xf32> to vector<8x128xf32>
    %410 = arith.mulf %408, %409 : vector<8x128xf32>
    %411 = vector.broadcast %390 : vector<1x128xf32> to vector<8x128xf32>
    %412 = arith.mulf %410, %411 : vector<8x128xf32>
    %413 = vector.broadcast %392 : vector<1x128xf32> to vector<8x128xf32>
    %414 = arith.addf %412, %413 : vector<8x128xf32>
    %415 = arith.truncf %414 : vector<8x128xf32> to vector<8x128xbf16>
    %c1_184 = arith.constant 1 : index
    %c0_185 = arith.constant 0 : index
    %c0_186 = arith.constant 0 : index
    %416 = vector.load %arg12[%c1_184, %c0_185, %c0_186] : memref<2x128x256xbf16, #tpu.memory_space<vmem>>, vector<1x128x256xbf16>
    %417 = vector.shape_cast %416 : vector<1x128x256xbf16> to vector<128x256xbf16>
    %cst_187 = arith.constant dense<0.000000e+00> : vector<8x256xf32>
    %418 = tpu.matmul %415, %417, %cst_187 {dimension_numbers = #tpu.dot_dimension_numbers<[1], [0], [0], [1], [0, 0, 1, 1], [], []>} : vector<8x128xbf16>, vector<128x256xbf16>, vector<8x256xf32> -> vector<8x256xf32>
    %c1_188 = arith.constant 1 : index
    %c0_189 = arith.constant 0 : index
    %c0_190 = arith.constant 0 : index
    %419 = vector.load %arg13[%c1_188, %c0_189, %c0_190] : memref<2x1x256xf32, #tpu.memory_space<vmem>>, vector<1x1x256xf32>
    %420 = vector.shape_cast %419 : vector<1x1x256xf32> to vector<1x256xf32>
    %421 = vector.broadcast %420 : vector<1x256xf32> to vector<8x256xf32>
    %422 = arith.addf %418, %421 : vector<8x256xf32>
    %cst_191 = arith.constant 5.000000e-01 : f32
    %423 = vector.broadcast %cst_191 : f32 to vector<8x256xf32>
    %424 = arith.mulf %423, %422 : vector<8x256xf32>
    %cst_192 = arith.constant 4.471500e-02 : f32
    %425 = vector.broadcast %cst_192 : f32 to vector<8x256xf32>
    %426 = arith.mulf %425, %422 : vector<8x256xf32>
    %427 = arith.mulf %426, %422 : vector<8x256xf32>
    %428 = arith.mulf %427, %422 : vector<8x256xf32>
    %429 = arith.addf %422, %428 : vector<8x256xf32>
    %cst_193 = arith.constant 0.797884583 : f32
    %430 = vector.broadcast %cst_193 : f32 to vector<8x256xf32>
    %431 = arith.mulf %430, %429 : vector<8x256xf32>
    %432 = math.tanh %431 : vector<8x256xf32>
    %cst_194 = arith.constant 1.000000e+00 : f32
    %433 = vector.broadcast %cst_194 : f32 to vector<8x256xf32>
    %434 = arith.addf %433, %432 : vector<8x256xf32>
    %435 = arith.mulf %424, %434 : vector<8x256xf32>
    %436 = arith.truncf %435 : vector<8x256xf32> to vector<8x256xbf16>
    %c1_195 = arith.constant 1 : index
    %c0_196 = arith.constant 0 : index
    %c0_197 = arith.constant 0 : index
    %437 = vector.load %arg14[%c1_195, %c0_196, %c0_197] : memref<2x256x128xbf16, #tpu.memory_space<vmem>>, vector<1x256x128xbf16>
    %438 = vector.shape_cast %437 : vector<1x256x128xbf16> to vector<256x128xbf16>
    %cst_198 = arith.constant dense<0.000000e+00> : vector<8x128xf32>
    %439 = tpu.matmul %436, %438, %cst_198 {dimension_numbers = #tpu.dot_dimension_numbers<[1], [0], [0], [1], [0, 0, 1, 1], [], []>} : vector<8x256xbf16>, vector<256x128xbf16>, vector<8x128xf32> -> vector<8x128xf32>
    %c1_199 = arith.constant 1 : index
    %c0_200 = arith.constant 0 : index
    %c0_201 = arith.constant 0 : index
    %440 = vector.load %arg15[%c1_199, %c0_200, %c0_201] : memref<2x1x128xf32, #tpu.memory_space<vmem>>, vector<1x1x128xf32>
    %441 = vector.shape_cast %440 : vector<1x1x128xf32> to vector<1x128xf32>
    %442 = vector.broadcast %441 : vector<1x128xf32> to vector<8x128xf32>
    %443 = arith.addf %439, %442 : vector<8x128xf32>
    %444 = arith.addf %414, %443 : vector<8x128xf32>
    %c1_202 = arith.constant 1 : index
    %c0_203 = arith.constant 0 : index
    %c0_204 = arith.constant 0 : index
    %445 = vector.load %arg16[%c1_202, %c0_203, %c0_204] : memref<2x1x128xf32, #tpu.memory_space<vmem>>, vector<1x1x128xf32>
    %446 = vector.shape_cast %445 : vector<1x1x128xf32> to vector<1x128xf32>
    %c1_205 = arith.constant 1 : index
    %c0_206 = arith.constant 0 : index
    %c0_207 = arith.constant 0 : index
    %447 = vector.load %arg17[%c1_205, %c0_206, %c0_207] : memref<2x1x128xf32, #tpu.memory_space<vmem>>, vector<1x1x128xf32>
    %448 = vector.shape_cast %447 : vector<1x1x128xf32> to vector<1x128xf32>
    %cst_208 = arith.constant dense<0.000000e+00> : vector<8xf32>
    %449 = vector.multi_reduction <add>, %444, %cst_208 [1] : vector<8x128xf32> to vector<8xf32>
    %450 = vector.shape_cast %449 : vector<8xf32> to vector<8x1xf32>
    %cst_209 = arith.constant 1.280000e+02 : f32
    %451 = vector.broadcast %cst_209 : f32 to vector<8x1xf32>
    %452 = arith.divf %450, %451 : vector<8x1xf32>
    %453 = vector.broadcast %452 : vector<8x1xf32> to vector<8x128xf32>
    %454 = arith.subf %444, %453 : vector<8x128xf32>
    %455 = arith.mulf %454, %454 : vector<8x128xf32>
    %cst_210 = arith.constant dense<0.000000e+00> : vector<8xf32>
    %456 = vector.multi_reduction <add>, %455, %cst_210 [1] : vector<8x128xf32> to vector<8xf32>
    %457 = vector.shape_cast %456 : vector<8xf32> to vector<8x1xf32>
    %cst_211 = arith.constant 1.280000e+02 : f32
    %458 = vector.broadcast %cst_211 : f32 to vector<8x1xf32>
    %459 = arith.divf %457, %458 : vector<8x1xf32>
    %cst_212 = arith.constant 9.99999996E-13 : f32
    %460 = vector.broadcast %cst_212 : f32 to vector<8x1xf32>
    %461 = arith.addf %459, %460 : vector<8x1xf32>
    %462 = math.rsqrt %461 : vector<8x1xf32>
    %463 = vector.broadcast %452 : vector<8x1xf32> to vector<8x128xf32>
    %464 = arith.subf %444, %463 : vector<8x128xf32>
    %465 = vector.broadcast %462 : vector<8x1xf32> to vector<8x128xf32>
    %466 = arith.mulf %464, %465 : vector<8x128xf32>
    %467 = vector.broadcast %446 : vector<1x128xf32> to vector<8x128xf32>
    %468 = arith.mulf %466, %467 : vector<8x128xf32>
    %469 = vector.broadcast %448 : vector<1x128xf32> to vector<8x128xf32>
    %470 = arith.addf %468, %469 : vector<8x128xf32>
    %471 = vector.extract_strided_slice %470 {offsets = [0, 0], sizes = [1, 128], strides = [1, 1]} : vector<8x128xf32> to vector<1x128xf32>
    %472 = arith.truncf %471 : vector<1x128xf32> to vector<1x128xbf16>
    %c0_213 = arith.constant 0 : index
    %c0_214 = arith.constant 0 : index
    %473 = vector.load %arg18[%c0_213, %c0_214] : memref<128x128xbf16, #tpu.memory_space<vmem>>, vector<128x128xbf16>
    %cst_215 = arith.constant dense<0.000000e+00> : vector<1x128xf32>
    %474 = tpu.matmul %472, %473, %cst_215 {dimension_numbers = #tpu.dot_dimension_numbers<[1], [0], [0], [1], [0, 0, 1, 1], [], []>} : vector<1x128xbf16>, vector<128x128xbf16>, vector<1x128xf32> -> vector<1x128xf32>
    %c0_216 = arith.constant 0 : index
    %c0_217 = arith.constant 0 : index
    %475 = vector.load %arg19[%c0_216, %c0_217] : memref<1x128xf32, #tpu.memory_space<vmem>>, vector<1x128xf32>
    %476 = arith.addf %474, %475 : vector<1x128xf32>
    %cst_218 = arith.constant 0.000000e+00 : f32
    %477 = vector.broadcast %cst_218 : f32 to vector<1x128xf32>
    %478 = arith.maximumf %476, %477 : vector<1x128xf32>
    %479 = arith.truncf %478 : vector<1x128xf32> to vector<1x128xbf16>
    %c0_219 = arith.constant 0 : index
    %c0_220 = arith.constant 0 : index
    %480 = vector.load %arg20[%c0_219, %c0_220] : memref<128x128xbf16, #tpu.memory_space<vmem>>, vector<128x128xbf16>
    %cst_221 = arith.constant dense<0.000000e+00> : vector<1x128xf32>
    %481 = tpu.matmul %479, %480, %cst_221 {dimension_numbers = #tpu.dot_dimension_numbers<[1], [0], [0], [1], [0, 0, 1, 1], [], []>} : vector<1x128xbf16>, vector<128x128xbf16>, vector<1x128xf32> -> vector<1x128xf32>
    %c0_222 = arith.constant 0 : index
    %c0_223 = arith.constant 0 : index
    %482 = vector.load %arg21[%c0_222, %c0_223] : memref<1x128xf32, #tpu.memory_space<vmem>>, vector<1x128xf32>
    %483 = arith.addf %481, %482 : vector<1x128xf32>
    %c0_224 = arith.constant 0 : index
    %c0_225 = arith.constant 0 : index
    %c0_226 = arith.constant 0 : index
    %484 = vector.load %arg22[%c0_224, %c0_225, %c0_226] : memref<1x1x128xf32, #tpu.memory_space<vmem>>, vector<1x1x128xf32>
    %485 = vector.shape_cast %484 : vector<1x1x128xf32> to vector<1x128xf32>
    %486 = vector.shape_cast %483 : vector<1x128xf32> to vector<1x1x128xf32>
    tpu.vector_store %arg22[%c0_224, %c0_225, %c0_226], %486 {strides = array<i32>} : memref<1x1x128xf32, #tpu.memory_space<vmem>>, vector<1x1x128xf32>,
    return
  }
  func.func @transform_0(%arg0: i32, %arg1: memref<2x8xi32, #tpu.memory_space<smem>>) -> (i32, i32) {
    %c0_i32 = arith.constant 0 : i32
    %c0_i32_0 = arith.constant 0 : i32
    %c0_i32_1 = arith.constant 0 : i32
    return %c0_i32, %c0_i32_0 : i32, i32
  }
  func.func @transform_1(%arg0: i32, %arg1: memref<2x8xi32, #tpu.memory_space<smem>>) -> (i32, i32) {
    %c0_i32 = arith.constant 0 : i32
    %c0_i32_0 = arith.constant 0 : i32
    %c0_i32_1 = arith.constant 0 : i32
    return %c0_i32, %c0_i32_0 : i32, i32
  }
  func.func @transform_2(%arg0: i32, %arg1: memref<2x8xi32, #tpu.memory_space<smem>>) -> (i32, i32) {
    %c0_i32 = arith.constant 0 : i32
    %c0_i32_0 = arith.constant 0 : i32
    %c0_i32_1 = arith.constant 0 : i32
    return %c0_i32, %c0_i32_0 : i32, i32
  }
  func.func @transform_3(%arg0: i32, %arg1: memref<2x8xi32, #tpu.memory_space<smem>>) -> (i32, i32) {
    %c0_i32 = arith.constant 0 : i32
    %c0_i32_0 = arith.constant 0 : i32
    %c0_i32_1 = arith.constant 0 : i32
    return %c0_i32, %c0_i32_0 : i32, i32
  }
  func.func @transform_4(%arg0: i32, %arg1: memref<2x8xi32, #tpu.memory_space<smem>>) -> (i32, i32, i32) {
    %c0_i32 = arith.constant 0 : i32
    %c0_i32_0 = arith.constant 0 : i32
    %c0_i32_1 = arith.constant 0 : i32
    %c0_i32_2 = arith.constant 0 : i32
    return %c0_i32, %c0_i32_0, %c0_i32_1 : i32, i32, i32
  }
  func.func @transform_5(%arg0: i32, %arg1: memref<2x8xi32, #tpu.memory_space<smem>>) -> (i32, i32, i32) {
    %c0_i32 = arith.constant 0 : i32
    %c0_i32_0 = arith.constant 0 : i32
    %c0_i32_1 = arith.constant 0 : i32
    %c0_i32_2 = arith.constant 0 : i32
    return %c0_i32, %c0_i32_0, %c0_i32_1 : i32, i32, i32
  }
  func.func @transform_6(%arg0: i32, %arg1: memref<2x8xi32, #tpu.memory_space<smem>>) -> (i32, i32, i32) {
    %c0_i32 = arith.constant 0 : i32
    %c0_i32_0 = arith.constant 0 : i32
    %c0_i32_1 = arith.constant 0 : i32
    %c0_i32_2 = arith.constant 0 : i32
    return %c0_i32, %c0_i32_0, %c0_i32_1 : i32, i32, i32
  }
  func.func @transform_7(%arg0: i32, %arg1: memref<2x8xi32, #tpu.memory_space<smem>>) -> (i32, i32, i32) {
    %c0_i32 = arith.constant 0 : i32
    %c0_i32_0 = arith.constant 0 : i32
    %c0_i32_1 = arith.constant 0 : i32
    %c0_i32_2 = arith.constant 0 : i32
    return %c0_i32, %c0_i32_0, %c0_i32_1 : i32, i32, i32
  }
  func.func @transform_8(%arg0: i32, %arg1: memref<2x8xi32, #tpu.memory_space<smem>>) -> (i32, i32, i32) {
    %c0_i32 = arith.constant 0 : i32
    %c0_i32_0 = arith.constant 0 : i32
    %c0_i32_1 = arith.constant 0 : i32
    %c0_i32_2 = arith.constant 0 : i32
    return %c0_i32, %c0_i32_0, %c0_i32_1 : i32, i32, i32
  }
  func.func @transform_9(%arg0: i32, %arg1: memref<2x8xi32, #tpu.memory_space<smem>>) -> (i32, i32, i32) {
    %c0_i32 = arith.constant 0 : i32
    %c0_i32_0 = arith.constant 0 : i32
    %c0_i32_1 = arith.constant 0 : i32
    %c0_i32_2 = arith.constant 0 : i32
    return %c0_i32, %c0_i32_0, %c0_i32_1 : i32, i32, i32
  }
  func.func @transform_10(%arg0: i32, %arg1: memref<2x8xi32, #tpu.memory_space<smem>>) -> (i32, i32, i32) {
    %c0_i32 = arith.constant 0 : i32
    %c0_i32_0 = arith.constant 0 : i32
    %c0_i32_1 = arith.constant 0 : i32
    %c0_i32_2 = arith.constant 0 : i32
    return %c0_i32, %c0_i32_0, %c0_i32_1 : i32, i32, i32
  }
  func.func @transform_11(%arg0: i32, %arg1: memref<2x8xi32, #tpu.memory_space<smem>>) -> (i32, i32, i32) {
    %c0_i32 = arith.constant 0 : i32
    %c0_i32_0 = arith.constant 0 : i32
    %c0_i32_1 = arith.constant 0 : i32
    %c0_i32_2 = arith.constant 0 : i32
    return %c0_i32, %c0_i32_0, %c0_i32_1 : i32, i32, i32
  }
  func.func @transform_12(%arg0: i32, %arg1: memref<2x8xi32, #tpu.memory_space<smem>>) -> (i32, i32, i32) {
    %c0_i32 = arith.constant 0 : i32
    %c0_i32_0 = arith.constant 0 : i32
    %c0_i32_1 = arith.constant 0 : i32
    %c0_i32_2 = arith.constant 0 : i32
    return %c0_i32, %c0_i32_0, %c0_i32_1 : i32, i32, i32
  }
  func.func @transform_13(%arg0: i32, %arg1: memref<2x8xi32, #tpu.memory_space<smem>>) -> (i32, i32, i32) {
    %c0_i32 = arith.constant 0 : i32
    %c0_i32_0 = arith.constant 0 : i32
    %c0_i32_1 = arith.constant 0 : i32
    %c0_i32_2 = arith.constant 0 : i32
    return %c0_i32, %c0_i32_0, %c0_i32_1 : i32, i32, i32
  }
  func.func @transform_14(%arg0: i32, %arg1: memref<2x8xi32, #tpu.memory_space<smem>>) -> (i32, i32, i32) {
    %c0_i32 = arith.constant 0 : i32
    %c0_i32_0 = arith.constant 0 : i32
    %c0_i32_1 = arith.constant 0 : i32
    %c0_i32_2 = arith.constant 0 : i32
    return %c0_i32, %c0_i32_0, %c0_i32_1 : i32, i32, i32
  }
  func.func @transform_15(%arg0: i32, %arg1: memref<2x8xi32, #tpu.memory_space<smem>>) -> (i32, i32, i32) {
    %c0_i32 = arith.constant 0 : i32
    %c0_i32_0 = arith.constant 0 : i32
    %c0_i32_1 = arith.constant 0 : i32
    %c0_i32_2 = arith.constant 0 : i32
    return %c0_i32, %c0_i32_0, %c0_i32_1 : i32, i32, i32
  }
  func.func @transform_16(%arg0: i32, %arg1: memref<2x8xi32, #tpu.memory_space<smem>>) -> (i32, i32) {
    %c0_i32 = arith.constant 0 : i32
    %c0_i32_0 = arith.constant 0 : i32
    %c0_i32_1 = arith.constant 0 : i32
    return %c0_i32, %c0_i32_0 : i32, i32
  }
  func.func @transform_17(%arg0: i32, %arg1: memref<2x8xi32, #tpu.memory_space<smem>>) -> (i32, i32) {
    %c0_i32 = arith.constant 0 : i32
    %c0_i32_0 = arith.constant 0 : i32
    %c0_i32_1 = arith.constant 0 : i32
    return %c0_i32, %c0_i32_0 : i32, i32
  }
  func.func @transform_18(%arg0: i32, %arg1: memref<2x8xi32, #tpu.memory_space<smem>>) -> (i32, i32) {
    %c0_i32 = arith.constant 0 : i32
    %c0_i32_0 = arith.constant 0 : i32
    %c0_i32_1 = arith.constant 0 : i32
    return %c0_i32, %c0_i32_0 : i32, i32
  }
  func.func @transform_19(%arg0: i32, %arg1: memref<2x8xi32, #tpu.memory_space<smem>>) -> (i32, i32) {
    %c0_i32 = arith.constant 0 : i32
    %c0_i32_0 = arith.constant 0 : i32
    %c0_i32_1 = arith.constant 0 : i32
    return %c0_i32, %c0_i32_0 : i32, i32
  }
  func.func @transform_20(%arg0: i32, %arg1: memref<2x8xi32, #tpu.memory_space<smem>>) -> (i32, i32, i32) {
    %c0_i32 = arith.constant 0 : i32
    %c0_i32_0 = arith.constant 0 : i32
    %c0_i32_1 = arith.constant 0 : i32
    return %arg0, %c0_i32, %c0_i32_0 : i32, i32, i32
  }
}

</mosaic_0001>

<bundles_post_ra>
// kernel: distilbert_classification_forward.1
= control target key start
LH: loop header
LB: loop body
LE: loop exit
PB: predicated region body
PF: predicated region fallthrough
CT: control target
= control target key end

     0   :  { %s6261_s0 = inlined_call_operand.vmem [shape: s32[2,8], index: 0, kind: input, shape index: {}]   ;;  %s6262_s1 = inlined_call_operand.hbm [shape: f32[128,128], index: 1, kind: input, shape index: {}]   ;;  %s6263_s2 = inlined_call_operand.hbm [shape: f32[64,128], index: 2, kind: input, shape index: {}]   ;;  %s6264_s3 = inlined_call_operand.vmem [shape: f32[1,128], index: 3, kind: input, shape index: {}]   ;;  %s6265_s4 = inlined_call_operand.vmem [shape: f32[1,128], index: 4, kind: input, shape index: {}]   ;;  %s6266_s5 = inlined_call_operand.hbm [shape: bf16[2,128,384], index: 5, kind: input, shape index: {}]   ;;  %s6267_s6 = inlined_call_operand.hbm [shape: f32[2,1,384], index: 6, kind: input, shape index: {}]   ;;  %s6268_s7 = inlined_call_operand.hbm [shape: bf16[2,128,128], index: 7, kind: input, shape index: {}]   ;;  %s6269_s8 = inlined_call_operand.hbm [shape: f32[2,1,128], index: 8, kind: input, shape index: {}]   ;;  %s6270_s9 = inlined_call_operand.vmem [shape: f32[2,1,128], index: 9, kind: input, shape index: {}]   ;;  %s6271_s10 = inlined_call_operand.vmem [shape: f32[2,1,128], index: 10, kind: input, shape index: {}]   ;;  %s6272_s11 = inlined_call_operand.hbm [shape: bf16[2,128,256], index: 11, kind: input, shape index: {}]   ;;  %s6273_s12 = inlined_call_operand.hbm [shape: f32[2,1,256], index: 12, kind: input, shape index: {}]   ;;  %s6274_s13 = inlined_call_operand.hbm [shape: bf16[2,256,128], index: 13, kind: input, shape index: {}]   ;;  %s6275_s14 = inlined_call_operand.hbm [shape: f32[2,1,128], index: 14, kind: input, shape index: {}]   ;;  %s6276_s15 = inlined_call_operand.vmem [shape: f32[2,1,128], index: 15, kind: input, shape index: {}]   ;;  %s6277_s16 = inlined_call_operand.vmem [shape: f32[2,1,128], index: 16, kind: input, shape index: {}]   ;;  %s6278_s17 = inlined_call_operand.hbm [shape: bf16[128,128], index: 17, kind: input, shape index: {}]   ;;  %s6279_s18 = inlined_call_operand.hbm [shape: f32[1,128], index: 18, kind: input, shape index: {}]   ;;  %s6280_s19 = inlined_call_operand.hbm [shape: bf16[128,128], index: 19, kind: input, shape index: {}]   ;;  %s6281_s20 = inlined_call_operand.hbm [shape: f32[1,128], index: 20, kind: input, shape index: {}]   ;;  %s6282_s21 = inlined_call_operand.hbm [shape: f32[2,1,128], index: 21, kind: output, shape index: {}]  }
   0x1   :  { %6298 = sst [smem:[#allocation45_spill]] %s6261_s0 }
   0x2   :  { %6299 = sst [smem:[#allocation46_spill]] %s6262_s1 }
   0x3   :  { %6300 = sst [smem:[#allocation47_spill]] %s6263_s2 }
   0x4   :  { %6301 = sst [smem:[#allocation48_spill]] %s6264_s3 }
   0x5   :  { %6302 = sst [smem:[#allocation49_spill]] %s6265_s4 }
   0x6   :  { %6303 = sst [smem:[#allocation50_spill]] %s6266_s5 }
   0x7   :  { %6304 = sst [smem:[#allocation51_spill]] %s6267_s6 }
   0x8   :  { %6305 = sst [smem:[#allocation52_spill]] %s6268_s7 }
   0x9   :  { %6306 = sst [smem:[#allocation53_spill]] %s6276_s15 }
   0xa   :  { %6307 = sst [smem:[#allocation54_spill]] %s6282_s21 }
   0xb   :  { %s6308_s26 = sld [smem:[#allocation45_spill]] }
  0x11   :  { %s26_s15 = sshll.u32 %s6308_s26, 4  ;;  %s27_s15 = int_to_ptr.vmem [resolvable:$true] %s26_s15 }
  0x12   :  { %s5049_s27 = scalar_lea.vmem %s27_s15, 32  ;;  %p5054_p1 = scmp.lt.s32.totalorder %s27_s15, %s27_s15 }
  0x13   :  { %p5050_p0 = scmp.ne.s32.totalorder %s27_s15, %s5049_s27  ;;  %p5055_p2 = scmp.lt.s32.totalorder %s5049_s27, %s5049_s27 }
  0x15   :  { %p5056_p3 = por %p5055_p2, %p5054_p1 }
  0x17   :  { %p5057_p4 = pnand %p5056_p3, %p5050_p0 }
  0x19   :  { %5060 = shalt.err (!%p5057_p4)  }
  0x1a   :  { %s5521_s3 = smov [#allocation4]  }
  0x1b   :  { %29 = dma.vmem_to_smem %s27_s15, 32, %s5521_s3, [#allocation3] }
  0x1c   :  { %5467 = dma.done.wait [#allocation3], 32 }
  0x1d   :  { %5468 = vsyncadd [#allocation3], 4294967264 }
  0x1e   :  { %31 = sfence }
  0x1f   :  { %32 = vsyncpa [#allocation6], 0 }
  0x20   :  { %33 = vsyncpa [#allocation9], 0 }
  0x21   :  { %34 = vsyncpa [#allocation12], 0 }
  0x22   :  { %35 = vsyncpa [#allocation15], 0 }
  0x23   :  { %36 = vsyncpa [#allocation18], 0 }
  0x24   :  { %37 = vsyncpa [#allocation21], 0 }
  0x25   :  { %38 = vsyncpa [#allocation24], 0 }
  0x26   :  { %39 = vsyncpa [#allocation27], 0 }
  0x27   :  { %40 = vsyncpa [#allocation7], 0 }
  0x28   :  { %42 = vsyncpa [#allocation7 + $0x1], 0  ;;  %s5668_s28 = smov 0   ;;  %s5670_s29 = smov 0  }
  0x29   :  { %s5672_s0 = smov 0   ;;  %s5674_s15 = smov 0  }
  0x2a LB: > { %6309 = sst [smem:[#allocation39_spill]] %s5507_s28  ;;  %s5689_s4 = sadd.s32 4294967295, %s5519_s15   ;;  %s5519_s15 = sphi %s5674_s15, %s6355_s15   ;;  %s5515_s0 = sphi %s5672_s0, %s6357_s0   ;;  %s5511_s29 = sphi %s5670_s29, %s6359_s29   ;;  %s5507_s28 = sphi %s5668_s28, %s6358_s28  }
  0x2b   : > { %6310 = sst [smem:[#allocation40_spill]] %s5515_s0  ;;  %s4027_s30 = sadd.s32 4294967294, %s5519_s15  }
  0x2c   : > { %6311 = sst [smem:[#allocation41_spill]] %s5519_s15  ;;  %s5693_s5 = sadd.s32 1, %s5519_s15  }
  0x2d   : > { %6312 = sst [smem:[#allocation42_spill]] %s5693_s5  ;;  %s475_s22 = sadd.s32 1, %s5515_s0 }
  0x2e   : > { %s472_s23 = ssub.s32 %s5519_s15, %s5693_s5  ;;  %p485_p5 = scmp.ne.s32.totalorder %s5515_s0, %s5511_s29 }
  0x2f   : > { %p473_p6 = scmp.eq.s32.totalorder %s472_s23, 0  ;;  %p486_p7 = scmp.eq.s32.totalorder %s5689_s4, 1 }
  0x30   : > { %p491_p8 = scmp.ne.s32.totalorder %s5511_s29, %s5507_s28  ;;  %p492_p9 = scmp.eq.s32.totalorder %s4027_s30, 1 }
  0x31   : > { %s5704_s1 = scalar_select %p473_p6, %s5515_s0, %s475_s22  }
  0x32   : > { %p5706_p10 = por %p486_p7, %p485_p5  ;;  %p5710_p11 = por %p492_p9, %p491_p8 }
  0x33   : > { %6313 = sst [smem:[#allocation43_spill]] %s5704_s1  ;;  %p4028_p12 = scmp.ge.s32.totalorder %s5519_s15, 1 }
  0x34   : > { %s6314_s24 = scalar_select %p5706_p10, 1, 0 }
  0x35   : > { %s6315_s2 = scalar_select %p5710_p11, 1, 0 }
  0x36   : > { %p499_p13 = scmp.lt.s32.totalorder %s5519_s15, 3  ;;  %p6288_p0 = scmp.eq.s32.totalorder %s5689_s4, 0 }
  0x37   : > { %6316 = sst [smem:[#allocation44_spill]] %s6315_s2  ;;  %s5522_s26 = smov [#allocation8]  }
  0x38   : > { %p5717_p1 = pnand %p4028_p12, %p499_p13  ;;  %s525_s27 = sshll.u32 %s5522_s26, 4  ;;  %s526_s27 = int_to_ptr.vmem [resolvable:$true] %s525_s27 }
  0x39   : > { %s5523_s3 = smov [#allocation11]   ;;  %s5524_s23 = smov [#allocation14]  }
  0x3a   : > { %s6317_s25 = scalar_select %p5717_p1, 1, 0 }
  0x3b   : > { %p4682_p2 = pneg %p5717_p1  ;;  %s554_s30 = sshll.u32 %s5523_s3, 4  ;;  %s555_s30 = int_to_ptr.vmem [resolvable:$true] %s554_s30 }
  0x3c   : > { %s580_s1 = sshll.u32 %s5524_s23, 4  ;;  %s5072_s26 = scalar_lea.vmem %s526_s27, 128  ;;  %s581_s1 = int_to_ptr.vmem [resolvable:$true] %s580_s1 }
  0x3d   : > { %p5725_p3 = pnand %p6288_p0, %p4682_p2  ;;  %p5073_p5 = scmp.ne.s32.totalorder %s526_s27, %s5072_s26 }
  0x3e   : > { %p5080_p8 = scmp.lt.s32.totalorder %s526_s27, %s526_s27  ;;  %p5081_p9 = scmp.lt.s32.totalorder %s5072_s26, %s5072_s26 }
  0x3f   : > { %p5731_p4 = pneg %p5725_p3 }
  0x40   : > { %p5082_p12 = por %p5081_p9, %p5080_p8 }
  0x41   : > { %p5075_p6 = pnand %p5073_p5, %p5731_p4 }
  0x43   : > { %p5076_p7 = pneg %p5075_p6 }
  0x45   : > { %p5083_p13 = pnand %p5082_p12, %p5076_p7 }
  0x47   : > { %5086 = shalt.err (!%p5083_p13)
}
  0x48   : > { %s6320_s5 = sld [smem:[#allocation47_spill]]  ;;  %s5098_s2 = scalar_lea.vmem %s555_s30, 96 }
  0x49   : > { %p5099_p2 = scmp.ne.s32.totalorder %s555_s30, %s5098_s2  ;;  %p5106_p10 = scmp.lt.s32.totalorder %s555_s30, %s555_s30 }
  0x4a   : > { %p5107_p5 = scmp.lt.s32.totalorder %s5098_s2, %s5098_s2 }
  0x4b   : > { %p5101_p0 = pnand %p5099_p2, %p5731_p4 }
  0x4c   : > { %p5108_p6 = por %p5107_p5, %p5106_p10 }
  0x4d   : > { %p5102_p11 = pneg %p5101_p0 }
  0x4e   : > { %4688 = dma.hbm_to_vmem [thread:$0]  (!%p5725_p3), %s6320_s5, 128, %s526_s27, [#allocation9]  }
  0x4f   : > { %p5109_p1 = pnand %p5108_p6, %p5102_p11 }
  0x51   : > { %5112 = shalt.err (!%p5109_p1)
}
  0x52   : > { %s5525_s26 = smov 48   ;;  %s5526_s28 = smov 3  }
  0x53   : > { %s6321_s6 = sld [smem:[#allocation51_spill]]  ;;  %s5124_s5 = scalar_lea.vmem %s581_s1, 32 }
  0x54   : > { %p5125_p7 = scmp.ne.s32.totalorder %s581_s1, %s5124_s5  ;;  %p5132_p9 = scmp.lt.s32.totalorder %s581_s1, %s581_s1 }
  0x55   : > { %p5133_p12 = scmp.lt.s32.totalorder %s5124_s5, %s5124_s5 }
  0x56   : > { %p5127_p8 = pnand %p5125_p7, %p5731_p4 }
  0x57   : > { %p5134_p10 = por %p5133_p12, %p5132_p9 }
  0x58   : > { %p5128_p0 = pneg %p5127_p8 }
  0x59   : > { %4694 = dma.hbm_to_vmem [thread:$0]  (!%p5725_p3), %s6321_s6, 96, %s555_s30, [#allocation12], %s5525_s26, %s5525_s26, %s5526_s28  }
  0x5a   : > { %p5135_p11 = pnand %p5134_p10, %p5128_p0 }
  0x5c   : > { %5138 = shalt.err (!%p5135_p11)
}
  0x5d   : > { %s6294_s2 = smov 16   ;;  %s6295_s27 = smov 1  }
  0x5e   : > { %4700 = dma.hbm_to_vmem [thread:$0]  (!%p5725_p3), %s6269_s8, 32, %s581_s1, [#allocation15], %s6294_s2, %s6294_s2, %s6295_s27  }
  0x5f   : > { %s5529_s15 = smov [#allocation17]  }
  0x60   : > { %s612_s30 = sshll.u32 %s5529_s15, 4  ;;  %s613_s30 = int_to_ptr.vmem [resolvable:$true] %s612_s30 }
  0x61   : > { %s5150_s3 = scalar_lea.vmem %s613_s30, 64  ;;  %p5158_p5 = scmp.lt.s32.totalorder %s613_s30, %s613_s30 }
  0x62   : > { %p5151_p1 = scmp.ne.s32.totalorder %s613_s30, %s5150_s3  ;;  %p5159_p6 = scmp.lt.s32.totalorder %s5150_s3, %s5150_s3 }
  0x64   : > { %p5153_p13 = pnand %p5151_p1, %p5731_p4  ;;  %p5160_p7 = por %p5159_p6, %p5158_p5 }
  0x66   : > { %p5154_p2 = pneg %p5153_p13 }
  0x68   : > { %p5161_p8 = pnand %p5160_p7, %p5154_p2 }
  0x6a   : > { %5164 = shalt.err (!%p5161_p8)
}
  0x6b   : > { %s5530_s23 = smov 32   ;;  %s5531_s26 = smov 2  }
  0x6c   : > { %4706 = dma.hbm_to_vmem [thread:$0]  (!%p5725_p3), %s6273_s12, 64, %s613_s30, [#allocation18], %s5530_s23, %s5530_s23, %s5531_s26  }
  0x6d   : > { %s5532_s21 = smov [#allocation20]   ;;  %s5533_s15 = smov [#allocation23]  }
  0x6e   : > { %s638_s28 = sshll.u32 %s5532_s21, 4  ;;  %s671_s2 = sshll.u32 %s5533_s15, 4  ;;  %s639_s28 = int_to_ptr.vmem [resolvable:$true] %s638_s28  ;;  %s672_s2 = int_to_ptr.vmem [resolvable:$true] %s671_s2 }
  0x6f   : > { %s5176_s27 = scalar_lea.vmem %s639_s28, 32  ;;  %p5184_p10 = scmp.lt.s32.totalorder %s639_s28, %s639_s28 }
  0x70   : > { %p5177_p0 = scmp.ne.s32.totalorder %s639_s28, %s5176_s27  ;;  %p5185_p11 = scmp.lt.s32.totalorder %s5176_s27, %s5176_s27 }
  0x72   : > { %p5179_p9 = pnand %p5177_p0, %p5731_p4  ;;  %p5186_p1 = por %p5185_p11, %p5184_p10 }
  0x74   : > { %p5180_p12 = pneg %p5179_p9 }
  0x76   : > { %p5187_p13 = pnand %p5186_p1, %p5180_p12 }
  0x78   : > { %5190 = shalt.err (!%p5187_p13)
}
  0x79   : > { %s6322_s3 = smov 1   ;;  %s6323_s30 = smov 16  }
  0x7a   : > { %4712 = dma.hbm_to_vmem [thread:$0]  (!%p5725_p3), %s6275_s14, 32, %s639_s28, [#allocation21], %s6323_s30, %s6323_s30, %s6322_s3  }
  0x7b   : > { %s5202_s5 = scalar_lea.vmem %s672_s2, 16  ;;  %s5209_s1 = scalar_lea.vmem %s672_s2, 32 }
  0x7c   : > { %p5203_p2 = scmp.ne.s32.totalorder %s672_s2, %s5202_s5  ;;  %p5210_p7 = scmp.lt.s32.totalorder %s672_s2, %s672_s2 }
  0x7d   : > { %p5211_p8 = scmp.lt.s32.totalorder %s5209_s1, %s5202_s5 }
  0x7e   : > { %p5205_p5 = pnand %p5203_p2, %p5731_p4 }
  0x7f   : > { %p5212_p0 = por %p5211_p8, %p5210_p7 }
  0x80   : > { %p5206_p6 = pneg %p5205_p5 }
  0x82   : > { %p5213_p9 = pnand %p5212_p0, %p5206_p6 }
  0x84   : > { %5216 = shalt.err (!%p5213_p9)
}
  0x85   : > { %4718 = dma.hbm_to_vmem [thread:$0]  (!%p5725_p3), %s6279_s18, 16, %s672_s2, [#allocation24]  }
  0x86   : > { %s5534_s15 = smov [#allocation5]  }
  0x87   : > { %s511_s28 = sshll.u32 %s5534_s15, 4  ;;  %s512_s28 = int_to_ptr.vmem [resolvable:$true] %s511_s28 }
  0x88   : > { %s5228_s3 = scalar_lea.vmem %s512_s28, 2048  ;;  %p5236_p1 = scmp.lt.s32.totalorder %s512_s28, %s512_s28 }
  0x89   : > { %p5229_p12 = scmp.ne.s32.totalorder %s512_s28, %s5228_s3  ;;  %p5237_p13 = scmp.lt.s32.totalorder %s5228_s3, %s5228_s3 }
  0x8b   : > { %p5231_p10 = pnand %p5229_p12, %p5731_p4  ;;  %p5238_p2 = por %p5237_p13, %p5236_p1 }
  0x8d   : > { %p5232_p11 = pneg %p5231_p10 }
  0x8f   : > { %p5239_p5 = pnand %p5238_p2, %p5232_p11 }
  0x91   : > { %5242 = shalt.err (!%p5239_p5)
}
  0x92   : > { %s6296_s30 = smov 128   ;;  %s6297_s23 = smov 8  }
  0x93   : > { %s6324_s5 = sld [smem:[#allocation46_spill]]  ;;  %s5537_s1 = smov [#allocation10]  }
  0x94   : > { %s541_s27 = sshll.u32 %s5537_s1, 4  ;;  %s542_s27 = int_to_ptr.vmem [resolvable:$true] %s541_s27 }
  0x95   : > { %s5254_s21 = scalar_lea.vmem %s542_s27, 6144  ;;  %p5262_p0 = scmp.lt.s32.totalorder %s542_s27, %s542_s27 }
  0x96   : > { %p5255_p6 = scmp.ne.s32.totalorder %s542_s27, %s5254_s21  ;;  %p5263_p9 = scmp.lt.s32.totalorder %s5254_s21, %s5254_s21 }
  0x98   : > { %p5257_p7 = pnand %p5255_p6, %p5731_p4  ;;  %p5264_p12 = por %p5263_p9, %p5262_p0 }
  0x99   : > { %4685 = dma.hbm_to_vmem [thread:$0]  (!%p5725_p3), %s6324_s5, 2048, %s512_s28, [#allocation6], %s6296_s30, %s6296_s30, %s6297_s23  }
  0x9a   : > { %p5258_p8 = pneg %p5257_p7 }
  0x9c   : > { %p5265_p10 = pnand %p5264_p12, %p5258_p8 }
  0x9e   : > { %5268 = shalt.err (!%p5265_p10)
}
  0x9f   : > { %s5538_s15 = smov 192   ;;  %s5539_s3 = smov 12  }
  0xa0   : > { %s6325_s26 = sld [smem:[#allocation50_spill]]  ;;  %s5540_s5 = smov [#allocation13]  }
  0xa1   : > { %s567_s1 = sshll.u32 %s5540_s5, 4  ;;  %s568_s1 = int_to_ptr.vmem [resolvable:$true] %s567_s1 }
  0xa2   : > { %s5280_s30 = scalar_lea.vmem %s568_s1, 2048  ;;  %p5288_p2 = scmp.lt.s32.totalorder %s568_s1, %s568_s1 }
  0xa3   : > { %p5281_p11 = scmp.ne.s32.totalorder %s568_s1, %s5280_s30  ;;  %p5289_p5 = scmp.lt.s32.totalorder %s5280_s30, %s5280_s30 }
  0xa5   : > { %p5283_p1 = pnand %p5281_p11, %p5731_p4  ;;  %p5290_p6 = por %p5289_p5, %p5288_p2 }
  0xa6   : > { %4691 = dma.hbm_to_vmem [thread:$0]  (!%p5725_p3), %s6325_s26, 6144, %s542_s27, [#allocation9], %s5538_s15, %s5538_s15, %s5539_s3  }
  0xa7   : > { %p5284_p13 = pneg %p5283_p1 }
  0xa9   : > { %p5291_p7 = pnand %p5290_p6, %p5284_p13 }
  0xab   : > { %5294 = shalt.err (!%p5291_p7)
}
  0xac   : > { %s5541_s21 = smov 64   ;;  %s5542_s23 = smov 4  }
  0xad   : > { %s6326_s7 = sld [smem:[#allocation52_spill]]  ;;  %s5543_s3 = smov [#allocation16]  }
  0xae   : > { %s599_s2 = sshll.u32 %s5543_s3, 4  ;;  %s5544_s28 = smov [#allocation19]   ;;  %s600_s2 = int_to_ptr.vmem [resolvable:$true] %s599_s2 }
  0xaf   : > { %s625_s30 = sshll.u32 %s5544_s28, 4  ;;  %s5306_s26 = scalar_lea.vmem %s600_s2, 4096  ;;  %s626_s30 = int_to_ptr.vmem [resolvable:$true] %s625_s30 }
  0xb0   : > { %p5307_p8 = scmp.ne.s32.totalorder %s600_s2, %s5306_s26  ;;  %p5314_p12 = scmp.lt.s32.totalorder %s600_s2, %s600_s2 }
  0xb1   : > { %p5315_p10 = scmp.lt.s32.totalorder %s5306_s26, %s5306_s26 }
  0xb2   : > { %p5309_p0 = pnand %p5307_p8, %p5731_p4 }
  0xb3   : > { %4697 = dma.hbm_to_vmem [thread:$0]  (!%p5725_p3), %s6326_s7, 2048, %s568_s1, [#allocation12], %s5541_s21, %s5541_s21, %s5542_s23  }
  0xb4   : > { %p5310_p9 = pneg %p5309_p0  ;;  %p5316_p11 = por %p5315_p10, %p5314_p12 }
  0xb6   : > { %p5317_p1 = pnand %p5316_p11, %p5310_p9 }
  0xb8   : > { %5320 = shalt.err (!%p5317_p1)
}
  0xb9   : > { %s6327_s5 = smov 8   ;;  %s6328_s27 = smov 128  }
  0xba   : > { %4703 = dma.hbm_to_vmem [thread:$0]  (!%p5725_p3), %s6272_s11, 4096, %s600_s2, [#allocation15], %s6328_s27, %s6328_s27, %s6327_s5  }
  0xbb   : > { %s5332_s3 = scalar_lea.vmem %s626_s30, 4096  ;;  %p5340_p6 = scmp.lt.s32.totalorder %s626_s30, %s626_s30 }
  0xbc   : > { %p5333_p13 = scmp.ne.s32.totalorder %s626_s30, %s5332_s3  ;;  %p5341_p7 = scmp.lt.s32.totalorder %s5332_s3, %s5332_s3 }
  0xbe   : > { %p5335_p2 = pnand %p5333_p13, %p5731_p4  ;;  %p5342_p8 = por %p5341_p7, %p5340_p6 }
  0xc0   : > { %p5336_p5 = pneg %p5335_p2 }
  0xc2   : > { %p5343_p0 = pnand %p5342_p8, %p5336_p5 }
  0xc4   : > { %5346 = shalt.err (!%p5343_p0)
}
  0xc5   : > { %4709 = dma.hbm_to_vmem [thread:$0]  (!%p5725_p3), %s6274_s13, 4096, %s626_s30, [#allocation18], %s5541_s21, %s5541_s21, %s5542_s23  }
  0xc6   : > { %s5545_s2 = smov [#allocation22]   ;;  %s5546_s27 = smov [#allocation25]  }
  0xc7   : > { %s657_s5 = sshll.u32 %s5545_s2, 4  ;;  %s681_s1 = sshll.u32 %s5546_s27, 4  ;;  %s658_s5 = int_to_ptr.vmem [resolvable:$true] %s657_s5  ;;  %s682_s1 = int_to_ptr.vmem [resolvable:$true] %s681_s1 }
  0xc8   : > { %s5358_s15 = scalar_lea.vmem %s658_s5, 1024  ;;  %p5366_p11 = scmp.lt.s32.totalorder %s658_s5, %s658_s5 }
  0xc9   : > { %p5359_p9 = scmp.ne.s32.totalorder %s658_s5, %s5358_s15  ;;  %p5367_p1 = scmp.lt.s32.totalorder %s5358_s15, %s5358_s15 }
  0xcb   : > { %p5361_p12 = pnand %p5359_p9, %p5731_p4  ;;  %p5368_p13 = por %p5367_p1, %p5366_p11 }
  0xcd   : > { %p5362_p10 = pneg %p5361_p12 }
  0xcf   : > { %p5369_p2 = pnand %p5368_p13, %p5362_p10 }
  0xd1   : > { %5372 = shalt.err (!%p5369_p2)
}
  0xd2   : > { %4715 = dma.hbm_to_vmem [thread:$0]  (!%p5725_p3), %s6278_s17, 1024, %s658_s5, [#allocation21], %s5541_s21, %s5541_s21, %s5542_s23  }
  0xd3   : > { %s5384_s28 = scalar_lea.vmem %s682_s1, 1024  ;;  %p5392_p8 = scmp.lt.s32.totalorder %s682_s1, %s682_s1 }
  0xd4   : > { %p5385_p5 = scmp.ne.s32.totalorder %s682_s1, %s5384_s28  ;;  %p5393_p0 = scmp.lt.s32.totalorder %s5384_s28, %s5384_s28 }
  0xd6   : > { %p5387_p6 = pnand %p5385_p5, %p5731_p4  ;;  %p5394_p9 = por %p5393_p0, %p5392_p8 }
  0xd8   : > { %p5388_p7 = pneg %p5387_p6 }
  0xda   : > { %p5395_p12 = pnand %p5394_p9, %p5388_p7 }
  0xdc   : > { %5398 = shalt.err (!%p5395_p12)
}
  0xdd   : > { %4721 = dma.hbm_to_vmem [thread:$0]  (!%p5725_p3), %s6280_s19, 1024, %s682_s1, [#allocation24], %s5541_s21, %s5541_s21, %s5542_s23  }
  0xde   : > { %s5547_s5 = smov [#allocation26]  }
  0xdf   : > { %s695_s27 = sshll.u32 %s5547_s5, 4  ;;  %s696_s27 = int_to_ptr.vmem [resolvable:$true] %s695_s27 }
  0xe0   : > { %s5410_s15 = scalar_lea.vmem %s696_s27, 16  ;;  %s5417_s30 = scalar_lea.vmem %s696_s27, 32 }
  0xe1   : > { %p5411_p10 = scmp.ne.s32.totalorder %s696_s27, %s5410_s15  ;;  %p5418_p13 = scmp.lt.s32.totalorder %s696_s27, %s696_s27 }
  0xe2   : > { %p5419_p2 = scmp.lt.s32.totalorder %s5417_s30, %s5410_s15 }
  0xe3   : > { %p5413_p11 = pnand %p5411_p10, %p5731_p4 }
  0xe4   : > { %p5420_p5 = por %p5419_p2, %p5418_p13 }
  0xe5   : > { %p5414_p1 = pneg %p5413_p11 }
  0xe7   : > { %p5421_p6 = pnand %p5420_p5, %p5414_p1 }
  0xe9   : > { %5424 = shalt.err (!%p5421_p6)
}
  0xea   : > { %4724 = dma.hbm_to_vmem [thread:$0]  (!%p5725_p3), %s6281_s20, 16, %s696_s27, [#allocation27]  }
  0xeb   : > { %p6329_p7 = scmp.ne.s32.totalorder %s6317_s25, 0 }
  0xec   : > { %p6330_p8 = scmp.eq.s32.totalorder (!%p6329_p7), %s5689_s4, 0 }
  0xed   : > { %708 = sbr.rel (%p6329_p7) target bundleno = 7994 (0x1f3a), region = 100 }
  0xf2   : > { %5470 = dma.done.wait (%p6330_p8), [#allocation6], 2048   ;;  %p6331_p4 = pmov %p6330_p8 }
  0xf4   : > { %5472 = vsyncadd (%p6331_p4), [#allocation6], 4294965248  ;;  %p6332_p0 = pmov %p6331_p4 }
  0xf6   : > { %5474 = dma.done.wait (%p6332_p0), [#allocation9], 6272   ;;  %p6333_p9 = pmov %p6332_p0 }
  0xf7   : > { %p6334_p12 = pmov %p6332_p0 }
  0xf8   : > { %5476 = vsyncadd (%p6333_p9), [#allocation9], 4294961024 }
  0xf9   : > { %5478 = dma.done.wait (%p6334_p12), [#allocation12], 2144   ;;  %p6335_p3 = pmov %p6332_p0 }
  0xfa   : > { %p6336_p10 = pmov %p6332_p0 }
  0xfb   : > { %5480 = vsyncadd (%p6335_p3), [#allocation12], 4294965152 }
  0xfc   : > { %5482 = dma.done.wait (%p6336_p10), [#allocation15], 4128   ;;  %p6337_p11 = pmov %p6332_p0 }
  0xfd   : > { %p6338_p1 = pmov %p6332_p0 }
  0xfe   : > { %5484 = vsyncadd (%p6337_p11), [#allocation15], 4294963168 }
  0xff   : > { %5486 = dma.done.wait (%p6338_p1), [#allocation18], 4160   ;;  %p6339_p13 = pmov %p6332_p0 }
 0x100   : > { %p6340_p2 = pmov %p6332_p0 }
 0x101   : > { %5488 = vsyncadd (%p6339_p13), [#allocation18], 4294963136 }
 0x102   : > { %5490 = dma.done.wait (%p6340_p2), [#allocation21], 1056   ;;  %p6341_p5 = pmov %p6332_p0 }
 0x103   : > { %p6342_p6 = pmov %p6332_p0 }
 0x104   : > { %5492 = vsyncadd (%p6341_p5), [#allocation21], 4294966240 }
 0x105   : > { %5494 = dma.done.wait (%p6342_p6), [#allocation24], 1040   ;;  %p6343_p7 = pmov %p6332_p0 }
 0x106   : > { %p6344_p8 = pmov %p6332_p0 }
 0x107   : > { %5496 = vsyncadd (%p6343_p7), [#allocation24], 4294966256 }
 0x108   : > { %5498 = dma.done.wait (%p6344_p8), [#allocation27], 16   ;;  %p6345_p4 = pmov %p6332_p0 }
 0x109   : > { %s4058_s0 = sshll.u32 %s5689_s4, 7  ;;  %v817_v0 = vld [vmem:[#allocation8] sm:$0x1]  ;;  %v824_v1 = vld [vmem:[#allocation8 + $0x1] sm:$0x1]  ;;  %v5548_v27 = vmov 0.0  }
 0x10a   : > { %5500 = vsyncadd (%p6345_p4), [#allocation27], 4294967280  ;;  %s814_s25 = sld [smem:[#allocation4 + %s4058_s0]]  ;;  %s820_s22 = sadd.s32 1, %s4058_s0  ;;  %v831_v3 = vld [vmem:[#allocation8 + $0x2] sm:$0x1]  ;;  %4384 = vmatprep.subr.bf16.mxu1 %v5548_v27 }
 0x10b   : > { %s821_s23 = sld [smem:[#allocation4 + %s820_s22]]  ;;  %s827_s21 = sadd.s32 2, %s4058_s0  ;;  %v838_v6 = vld [vmem:[#allocation8 + $0x3] sm:$0x1]  ;;  %v845_v9 = vld [vmem:[#allocation8 + $0x4] sm:$0x1] }
 0x10c   : > { %s828_s1 = sld [smem:[#allocation4 + %s827_s21]]  ;;  %s834_s26 = sadd.s32 3, %s4058_s0  ;;  %v852_v12 = vld [vmem:[#allocation8 + $0x5] sm:$0x1]  ;;  %v859_v15 = vld [vmem:[#allocation8 + $0x6] sm:$0x1] }
 0x10d   : > { %s835_s2 = sld [smem:[#allocation4 + %s834_s26]]  ;;  %s841_s5 = sadd.s32 4, %s4058_s0  ;;  %v866_v18 = vld [vmem:[#allocation8 + $0x7] sm:$0x1]  ;;  %v4823_v25 = vld [vmem:[#allocation10 + $0xac] ss:$12 sps:$4 sm:$0xff]  }
 0x10e   : > { %s842_s27 = sld [smem:[#allocation4 + %s841_s5]]  ;;  %s848_s15 = sadd.s32 5, %s4058_s0  ;;  %v4825_v26 = vld [vmem:[#allocation10 + $0xa8] ss:$12 sps:$4 sm:$0xff]   ;;  %v4826_v28 = vld [vmem:[#allocation10 + $0xb0] ss:$12 sps:$4 sm:$0xff]   ;;  %1076 = vmatprep.subr.bf16.mxu0 %v4823_v25 }
 0x10f   : > { %s5892_s30 = sld [smem:[#allocation4 + %s848_s15]]  ;;  %s855_s3 = sadd.s32 6, %s4058_s0  ;;  %v4827_v29 = vld [vmem:[#allocation10 + $0x94] ss:$12 sps:$4 sm:$0xff]   ;;  %v4829_v30 = vld [vmem:[#allocation10 + $0x90] ss:$12 sps:$4 sm:$0xff]   ;;  %1077 = vmatpush1.bf16.msra.mxu0 %v4825_v26  ;;  %4385 = vmatpush3.bf16.msra.mxu1 %v4826_v28 }
 0x110   : > { %s5894_s28 = sld [smem:[#allocation4 + %s855_s3]]  ;;  %s815_s6 = scalar_lea.vmem [#allocation5], %s814_s25  ;;  %v4830_v31 = vld [vmem:[#allocation10 + $0x98] ss:$12 sps:$4 sm:$0xff]   ;;  %1078 = vmatprep.subr.bf16.mxu0 %v4827_v29  ;;  %4386 = vmatprep.subr.bf16.mxu1 %v5548_v27  ;;  %v4831_v36 = vld [vmem:[#allocation10 + $0x7c] ss:$12 sps:$4 sm:$0xff]  }
 0x111   : > { %v816_v2 = vld [vmem:[%s815_s6] sm:$0x1]  ;;  %s862_s7 = sadd.s32 7, %s4058_s0  ;;  %s822_s22 = scalar_lea.vmem [#allocation5], %s821_s23  ;;  %v4833_v37 = vld [vmem:[#allocation10 + $0x78] ss:$12 sps:$4 sm:$0xff]  }
 0x112   : > { %v818_v4 = vadd.f32 %v817_v0, %v816_v2  ;;  %v823_v5 = vld [vmem:[%s822_s22] sm:$0x1]  ;;  %s863_s21 = sld [smem:[#allocation4 + %s862_s7]]  ;;  %s829_s26 = scalar_lea.vmem [#allocation5], %s828_s1  ;;  %v4834_v38 = vld [vmem:[#allocation10 + $0x80] ss:$12 sps:$4 sm:$0xff]  }
 0x113   : > { %v825_v7 = vadd.f32 %v824_v1, %v823_v5  ;;  %v830_v8 = vld [vmem:[%s829_s26] sm:$0x1]  ;;  %s836_s5 = scalar_lea.vmem [#allocation5], %s835_s2  ;;  %1079 = vmatpush1.bf16.msra.mxu0 %v4829_v30  ;;  %4387 = vmatpush3.bf16.msra.mxu1 %v4830_v31  ;;  %v4837_v40 = vld [vmem:[#allocation10 + $0x60] ss:$12 sps:$4 sm:$0xff]   ;;  %v5549_v46 = vmov 0   ;;  %v933_v1 = vlaneseq }
 0x114   : > { %819 = vst [vmem:[#allocation2] sm:$0x1] %v818_v4  ;;  %v832_v10 = vadd.f32 %v831_v3, %v830_v8  ;;  %v837_v11 = vld [vmem:[%s836_s5] sm:$0x1]  ;;  %s843_s6 = scalar_lea.vmem [#allocation5], %s842_s27  ;;  %4388 = vmatprep.subr.bf16.mxu1 %v5548_v27  ;;  %1080 = vmatprep.subr.bf16.mxu0 %v4831_v36  ;;  %vm5550_vm0 = vmmov 0  }
 0x115   : > { %826 = vst [vmem:[#allocation2 + $0x1] sm:$0x1] %v825_v7  ;;  %v839_v13 = vadd.f32 %v838_v6, %v837_v11  ;;  %v844_v14 = vld [vmem:[%s843_s6] sm:$0x1]  ;;  %s850_s0 = scalar_lea.vmem [#allocation5], %s5892_s30  ;;  %1108 = vmatprep.mubr.bf16.mxu0 %v5549_v46  ;;  %4400 = vmatprep.mubr.msk.bf16.mxu1 %vm5550_vm0, %v5548_v27  ;;  %s6346_s2 = sld [smem:[#allocation48_spill]] }
 0x116   : > { %833 = vst [vmem:[#allocation2 + $0x2] sm:$0x1] %v832_v10  ;;  %v846_v16 = vadd.f32 %v845_v9, %v844_v14  ;;  %v851_v17 = vld [vmem:[%s850_s0] sm:$0x1]  ;;  %s857_s7 = scalar_lea.vmem [#allocation5], %s5894_s28  ;;  %s6347_s30 = sld [smem:[#allocation49_spill]] }
 0x117   : > { %840 = vst [vmem:[#allocation2 + $0x3] sm:$0x1] %v839_v13  ;;  %v853_v19 = vadd.f32 %v852_v12, %v851_v17  ;;  %v858_v20 = vld [vmem:[%s857_s7] sm:$0x1]  ;;  %1081 = vmatpush1.bf16.msra.mxu0 %v4833_v37  ;;  %4389 = vmatpush3.bf16.msra.mxu1 %v4834_v38  ;;  %v4838_v41 = vld [vmem:[#allocation10 + $0x68] ss:$12 sps:$4 sm:$0xff]  }
 0x118   : > { %847 = vst [vmem:[#allocation2 + $0x4] sm:$0x1] %v846_v16  ;;  %v860_v21 = vadd.f32 %v859_v15, %v858_v20  ;;  %s864_s25 = scalar_lea.vmem [#allocation5], %s863_s21  ;;  %v4835_v39 = vld [vmem:[#allocation10 + $0x64] ss:$12 sps:$4 sm:$0xff]   ;;  %4390 = vmatprep.subr.bf16.mxu1 %v5548_v27  ;;  %v5925_v2 = vshrl.u32 %v933_v1, 7 }
 0x119   : > { %854 = vst [vmem:[#allocation2 + $0x5] sm:$0x1] %v853_v19  ;;  %v865_v22 = vld [vmem:[%s864_s25] sm:$0x1]  ;;  %v4839_v42 = vld [vmem:[#allocation10 + $0x4c] ss:$12 sps:$4 sm:$0xff]   ;;  %1082 = vmatprep.subr.bf16.mxu0 %v4835_v39 }
 0x11a   : > { %861 = vst [vmem:[#allocation2 + $0x6] sm:$0x1] %v860_v21  ;;  %v867_v23 = vadd.f32 %v866_v18, %v865_v22  ;;  %v4841_v43 = vld [vmem:[#allocation10 + $0x48] ss:$12 sps:$4 sm:$0xff]   ;;  %v4842_v44 = vld [vmem:[#allocation10 + $0x50] ss:$12 sps:$4 sm:$0xff]  }
 0x11b   : > { %1083 = vmatpush1.bf16.msra.mxu0 %v4837_v40  ;;  %4391 = vmatpush3.bf16.msra.mxu1 %v4838_v41  ;;  %v4843_v45 = vld [vmem:[#allocation10 + $0x34] ss:$12 sps:$4 sm:$0xff]   ;;  %v4845_v47 = vld [vmem:[#allocation10 + $0x30] ss:$12 sps:$4 sm:$0xff]   ;;  %v4846_v48 = vld [vmem:[#allocation10 + $0x38] ss:$12 sps:$4 sm:$0xff]  }
 0x11c   : > { %868 = vst [vmem:[#allocation2 + $0x7] sm:$0x1] %v867_v23  ;;  %1084 = vmatprep.subr.bf16.mxu0 %v4839_v42  ;;  %4392 = vmatprep.subr.bf16.mxu1 %v5548_v27  ;;  %v4847_v49 = vld [vmem:[#allocation10 + $0x1c] ss:$12 sps:$4 sm:$0xff]   ;;  %v4849_v50 = vld [vmem:[#allocation10 + $0x18] ss:$12 sps:$4 sm:$0xff]  }
 0x11d   : > { %v4850_v51 = vld [vmem:[#allocation10 + $0x20] ss:$12 sps:$4 sm:$0xff]   ;;  %v4851_v52 = vld [vmem:[#allocation10 + $0x4] ss:$12 sps:$4 sm:$0xff]   ;;  %v4854_v54 = vld [vmem:[#allocation10 + $0x8] ss:$12 sps:$4 sm:$0xff]  }
 0x11e   : > { %v4853_v53 = vld [vmem:[#allocation10] ss:$12 sps:$4 sm:$0xff]   ;;  %v4059_v59 = vld [vmem:[%s6346_s2] ss:$0 sm:$0xff]  ;;  %v943_v3 = vsub.s32 2, %v5925_v2  ;;  %v5929_v5 = vsub.s32 1, %v5925_v2 }
 0x11f   : > { %1085 = vmatpush1.bf16.msra.mxu0 %v4841_v43  ;;  %4393 = vmatpush3.bf16.msra.mxu1 %v4842_v44  ;;  %v4060_v61 = vld [vmem:[%s6347_s30] ss:$0 sm:$0xff]  ;;  %v931_v4 = vld [vmem:[#allocation11] sm:$0x7]  ;;  %v5932_v6 = vsub.s32 0, %v5925_v2  ;;  %vm1223_vm1 = vcmask 1043456  }
 0x120   : > { %1086 = vmatprep.subr.bf16.mxu0 %v4843_v45  ;;  %4394 = vmatprep.subr.bf16.mxu1 %v5548_v27  ;;  %v944_v7 = vrot.slane %v931_v4, %v943_v3  ;;  %v940_v8 = vrot.slane %v931_v4, %v5929_v5  ;;  %vm1160_vm2 = vcmask 261120   ;;  %s5551_s3 = smov 96   ;;  %vm1207_vm3 = vcmask 64512   ;;  %s5552_s28 = smov 64   ;;  %v4856_v1 = vld [vmem:[#allocation13] sm:$0xff]  }
 0x121   : > { %v936_v11 = vrot.slane %v931_v4, %v5932_v6  ;;  %s5553_s22 = smov 32   ;;  %s6348_s25 = sld [smem:[#allocation53_spill]] }
 0x122   : > { %s810_s26 = sand.u32 1, %s5511_s29   ;;  %s4245_s5 = sshll.u32 %s5689_s4, 4 }
 0x123   : > { %v869_v24 = vld [vmem:[#allocation2] sm:$0xff]  ;;  %1087 = vmatpush1.bf16.msra.mxu0 %v4845_v47  ;;  %4395 = vmatpush3.bf16.msra.mxu1 %v4846_v48  ;;  %s811_s6 = scalar_lea.vmem [#allocation28], %s810_s26  ;;  %s6349_s1 = sld [smem:[#allocation54_spill]] }
 0x124   : > { %872 = vadd.xlane.f32.xlu0 %v869_v24  ;;  %1088 = vmatprep.subr.bf16.mxu0 %v4847_v49  ;;  %s3840_s0 = sshll.u32 %s811_s6, 4  ;;  %s3828_s27 = scalar_lea.sflag [#allocation7], %s810_s26  ;;  %s6222_s0 = int_to_ptr.vmem [resolvable:$true] %s3840_s0 }
 0x125   : > { %4396 = vmatprep.subr.bf16.mxu1 %v5548_v27  ;;  %s5425_s15 = scalar_lea.vmem %s6222_s0, 16  ;;  %p6350_p9 = scmp.ne.s32.totalorder %s6314_s24, 0 }
 0x126   : > { %p5426_p0 = scmp.ne.s32.totalorder %s6222_s0, %s5425_s15  ;;  %s5554_s4 = smov [#allocation28]  }
 0x127   : > { %1089 = vmatpush1.bf16.msra.mxu0 %v4849_v50  ;;  %4397 = vmatpush3.bf16.msra.mxu1 %v4850_v51  ;;  %s5429_s30 = sshll.u32 %s5554_s4, 4  ;;  %s5430_s30 = int_to_ptr.vmem [resolvable:$false] %s5429_s30 }
 0x128   : > { %1090 = vmatprep.subr.bf16.mxu0 %v4851_v52  ;;  %4398 = vmatprep.subr.bf16.mxu1 %v5548_v27  ;;  %p5427_p12 = pnand %p5426_p0, %p6350_p9  ;;  %p5432_p10 = scmp.lt.s32.totalorder %s6222_s0, %s5430_s30 }
 0x129   : > { %s6220_s2 = scalar_lea.hbm %s6349_s1, %s4245_s5 }
 0x12a   : > { %p5428_p3 = pneg %p5427_p12 }
 0x12b   : > { %1091 = vmatpush1.bf16.msra.mxu0 %v4853_v53  ;;  %4399 = vmatpush3.bf16.msra.mxu1 %v4854_v54 }
 0x12c   : > { %4410 = vmatprep.subr.bf16.mxu1 %v5548_v27  ;;  %4404 = vmatprep.subr.bf16.mxu0 %v5548_v27 }
 0x1ad   : > { %v873_v32 = vpop.xlane.xlu0 %872 }
 0x1ae   : > { %v875_v33 = vmul.f32 0.0078125, %v873_v32 }
 0x1b0   : > { %v876_v34 = vsub.f32 %v869_v24, %v875_v33 }
 0x1b2   : > { %v877_v35 = vmul.f32 %v876_v34, %v876_v34 }
 0x1b4   : > { %878 = vadd.xlane.f32.xlu0 %v877_v35 }
 0x23d   : > { %v879_v55 = vpop.xlane.xlu0 %878 }
 0x23e   : > { %v880_v56 = vmul.f32 0.0078125, %v879_v55  ;;  %v4857_v55 = vld [vmem:[#allocation13 + $0x18] sm:$0xff]  }
 0x240   : > { %v881_v57 = vadd.f32 1e-12, %v880_v56  ;;  %v4858_v56 = vld [vmem:[#allocation13 + $0x10] sm:$0xff]  }
 0x242   : > { %4999 = vrsqrt.f32 %v881_v57 }
 0x24f   : > { %v5000_v58 = vpop.eup %4999 }
 0x250   : > { %v883_v60 = vmul.f32 %v5000_v58, %v876_v34 }
 0x252   : > { %v890_v62 = vmul.f32 %v4059_v59, %v883_v60 }
 0x254   : > { %v5917_v63 = vadd.f32 %v4060_v61, %v890_v62  ;;  %v4855_v62 = vld [vmem:[#allocation13 + $0x8] sm:$0xff]  }
 0x256   : > { %v898_v0 = vpack.c.bf16 %v5917_v63, %v5917_v63 }
 0x258   : > { %1109 = vmatmul.mubr.bf16.vlgmr.msra.gmra.mxu0 %v898_v0  ;;  %4401 = vmatmul.mubr.bf16.vlgmr.msra.gmra.mxu1 %v898_v0 }
 0x259   : > { %4406 = vmatprep.mubr.msk.bf16.mxu0 %vm5550_vm0, %v5548_v27  ;;  %4412 = vmatprep.mubr.msk.bf16.mxu1 %vm5550_vm0, %v5548_v27 }
 0x318   : > { %v1110_v9 = vpop.f32.mrf.mxu0  ;;  %v1151_v10 = vpop.f32.mrf.mxu1 }
 0x319   : > { %v1152_v12 = vadd.f32 %v1151_v10, %v944_v7  ;;  %v1111_v19 = vadd.f32 %v1110_v9, %v936_v11 }
 0x31a   : > { %v1112_v13 = vpop.f32.mrf.mxu0  ;;  %v4402_v14 = vpop.f32.mrf.mxu1 }
 0x31b   : > { %v5938_v15 = vpack.c.bf16 %v1152_v12, %v1152_v12  ;;  %v1113_v16 = vadd.f32 %v1112_v13, %v940_v8  ;;  %v5949_v25 = vpack.c.bf16 %v1111_v19, %v1111_v19 }
 0x31c   : > { %v1114_v17 = vpop.f32.mrf.mxu0  ;;  %v1154_v18 = vpop.f32.mrf.mxu1 }
 0x31d   : > { %v5940_v20 = vpack.c.bf16 %v1113_v16, %v1113_v16  ;;  %v1225_v21 = vsel %vm1223_vm1, %v5938_v15, 0 }
 0x31e   : > { %v1115_v22 = vpop.f32.mrf.mxu0  ;;  %v4403_v23 = vpop.f32.mrf.mxu1  ;;  %4411 = vmatpush3.bf16.msra.mxu1 %v1225_v21 }
 0x31f   : > { %1276 = vrot.lane.b32.xlu1 %v5940_v20, %s5551_s3  ;;  %v1165_v24 = vsel %vm1160_vm2, %v5940_v20, 0  ;;  %4422 = vmatprep.subr.bf16.mxu1 %v5548_v27 }
 0x320   : > { %4405 = vmatpush3.bf16.xpose.msra.mxu0 %v1165_v24 }
 0x321   : > { %4416 = vmatprep.subr.bf16.mxu0 %v5548_v27 }
 0x323   : > { %1273 = vrot.lane.b32.xlu1 %v5949_v25, %s5551_s3 }
 0x327   : > { %4407 = vmatmul.mubr.msk.bf16.vlgmr.msra.gmra.mxu0 %vm1160_vm2, %v5949_v25 }
 0x328   : > { %4418 = vmatprep.mubr.msk.bf16.mxu0 %vm5550_vm0, %v5548_v27 }
 0x391   : > { %v1277_v26 = vpop.permute.xlu1 %1276 }
 0x392   : > { %v1282_v28 = vsel %vm1160_vm2, %v1277_v26, 0 }
 0x393   : > { %4417 = vmatpush3.bf16.xpose.msra.mxu0 %v1282_v28 }
 0x394   : > { %4428 = vmatprep.subr.bf16.mxu0 %v5548_v27 }
 0x395   : > { %v1274_v29 = vpop.permute.xlu1 %1273 }
 0x39a   : > { %4419 = vmatmul.mubr.msk.bf16.vlgmr.msra.gmra.mxu0 %vm1160_vm2, %v1274_v29 }
 0x39b   : > { %4432 = vmatprep.mubr.msk.bf16.mxu0 %vm5550_vm0, %v5548_v27  ;;  %4429 = vmatpush3.bf16.msra.mxu0 %v4857_v55 }
 0x39c   : > { %4430 = vmatprep.subr.bf16.mxu0 %v5548_v27 }
 0x39f   : > { %4431 = vmatpush3.bf16.msra.mxu0 %v4858_v56 }
 0x3a0   : > { %4444 = vmatprep.subr.bf16.mxu0 %v5548_v27 }
 0x3e7   : > { %v1201_v30 = vpop.f32.mrf.mxu0 }
 0x3e8   : > { %v1208_v31 = vsel %vm1207_vm3, %v1201_v30, -inf }
 0x3e9   : > { %1209 = vmax.xlane.f32.xlu0 %v1208_v31  ;;  %v4408_v32 = vpop.f32.mrf.mxu0 }
 0x3eb   : > { %v1204_v33 = vpop.f32.mrf.mxu0 }
 0x3ed   : > { %v4409_v34 = vpop.f32.mrf.mxu0 }
 0x45a   : > { %v1318_v35 = vpop.f32.mrf.mxu0 }
 0x45b   : > { %v1324_v36 = vsel %vm1207_vm3, %v1318_v35, -inf }
 0x45c   : > { %1325 = vmax.xlane.f32.xlu1 %v1324_v36  ;;  %v4420_v37 = vpop.f32.mrf.mxu0 }
 0x45e   : > { %v1321_v38 = vpop.f32.mrf.mxu0 }
 0x460   : > { %v4421_v39 = vpop.f32.mrf.mxu0 }
 0x46d   : > { %1500 = vrot.lane.b32.xlu1 %v5949_v25, %s5552_s28 }
 0x472   : > { %v1210_v40 = vpop.xlane.xlu0 %1209 }
 0x473   : > { %v1211_v41 = vsub.f32 %v1201_v30, %v1210_v40 }
 0x475   : > { %v1212_v42 = vmul.f32 1.442695, %v1211_v41 }
 0x477   : > { %5001 = vpow2.f32 %v1212_v42 }
 0x484   : > { %v5002_v43 = vpop.eup %5001 }
 0x485   : > { %v1214_v44 = vsel %vm1207_vm3, %v5002_v43, 0.0 }
 0x486   : > { %1215 = vadd.xlane.f32.xlu0 %v1214_v44 }
 0x4e5   : > { %v1326_v45 = vpop.xlane.xlu1 %1325 }
 0x4e6   : > { %v1327_v47 = vsub.f32 %v1318_v35, %v1326_v45 }
 0x4e8   : > { %v1328_v48 = vmul.f32 1.442695, %v1327_v47 }
 0x4e9   : > { %v1501_v19 = vpop.permute.xlu1 %1500 }
 0x4ea   : > { %5003 = vpow2.f32 %v1328_v48 }
 0x4f7   : > { %v5004_v49 = vpop.eup %5003 }
 0x4f8   : > { %v1330_v50 = vsel %vm1207_vm3, %v5004_v49, 0.0 }
 0x4f9   : > { %1331 = vadd.xlane.f32.xlu0 %v1330_v50  ;;  %v4860_v50 = vld [vmem:[#allocation13 + $0x20] sm:$0xff]  }
 0x50f   : > { %v1216_v51 = vpop.xlane.xlu0 %1215  ;;  %1337 = vrot.lane.b32.xlu0 %v5938_v15, %s5551_s3 }
 0x510   : > { %5005 = vrcp.f32 %v1216_v51 }
 0x513   : > { %1502 = vrot.lane.b32.xlu0 %v5940_v20, %s5552_s28 }
 0x51d   : > { %v5006_v52 = vpop.eup %5005 }
 0x51e   : > { %v1218_v53 = vmul.f32 %v5006_v52, %v5002_v43  ;;  %v4859_v43 = vld [vmem:[#allocation13 + $0x28] sm:$0xff]  }
 0x520   : > { %v1219_v54 = vpack.c.bf16 %v1218_v53, %v1218_v53 }
 0x522   : > { %4413 = vmatmul.mubr.msk.bf16.vlgmr.msra.gmra.mxu1 %vm1207_vm3, %v1219_v54 }
 0x523   : > { %4424 = vmatprep.mubr.msk.bf16.mxu1 %vm5550_vm0, %v5548_v27 }
 0x582   : > { %v1332_v57 = vpop.xlane.xlu0 %1331 }
 0x583   : > { %5007 = vrcp.f32 %v1332_v57 }
 0x586   : > { %v1338_v58 = vpop.permute.xlu0 %1337 }
 0x587   : > { %v1343_v59 = vsel %vm1223_vm1, %v1338_v58, 0 }
 0x588   : > { %4423 = vmatpush3.bf16.msra.mxu1 %v1343_v59 }
 0x589   : > { %4436 = vmatprep.subr.bf16.mxu1 %v5548_v27 }
 0x58a   : > { %v1503_v11 = vpop.permute.xlu0 %1502 }
 0x58b   : > { %v1508_v16 = vsel %vm1160_vm2, %v1503_v11, 0  ;;  %v4861_v11 = vld [vmem:[#allocation13 + $0x38] sm:$0xff]  }
 0x590   : > { %v5008_v60 = vpop.eup %5007 }
 0x591   : > { %v1334_v61 = vmul.f32 %v5008_v60, %v5004_v49 }
 0x593   : > { %v1335_v0 = vpack.c.bf16 %v1334_v61, %v1334_v61 }
 0x595   : > { %4425 = vmatmul.mubr.msk.bf16.vlgmr.msra.gmra.mxu1 %vm1207_vm3, %v1335_v0 }
 0x596   : > { %4437 = vmatpush3.bf16.msra.mxu1 %v4855_v62  ;;  %4440 = vmatprep.mubr.msk.bf16.mxu1 %vm5550_vm0, %v5548_v27 }
 0x597   : > { %4438 = vmatprep.subr.bf16.mxu1 %v5548_v27 }
 0x59a   : > { %4439 = vmatpush3.bf16.msra.mxu1 %v4856_v1 }
 0x59b   : > { %4450 = vmatprep.subr.bf16.mxu1 %v5548_v27 }
 0x5e2   : > { %v1261_v4 = vpop.f32.mrf.mxu1 }
 0x5e3   : > { %v1267_v7 = vpack.c.bf16 %v1261_v4, %v1261_v4 }
 0x5e4   : > { %v4414_v8 = vpop.f32.mrf.mxu1 }
 0x5e5   : > { %4441 = vmatmul.mubr.msk.bf16.vlgmr.msra.gmra.mxu1 %vm1160_vm2, %v1267_v7 }
 0x5e6   : > { %v1264_v9 = vpop.f32.mrf.mxu1  ;;  %4452 = vmatprep.mubr.msk.bf16.mxu1 %vm5550_vm0, %v5548_v27 }
 0x5e8   : > { %v4415_v10 = vpop.f32.mrf.mxu1 }
 0x655   : > { %v1379_v12 = vpop.f32.mrf.mxu1 }
 0x656   : > { %v1385_v13 = vpack.c.bf16 %v1379_v12, %v1379_v12 }
 0x657   : > { %v4426_v14 = vpop.f32.mrf.mxu1 }
 0x658   : > { %4433 = vmatmul.mubr.msk.bf16.vlgmr.msra.gmra.mxu0 %vm1160_vm2, %v1385_v13 }
 0x659   : > { %4445 = vmatpush3.bf16.xpose.msra.mxu0 %v1508_v16  ;;  %v1382_v17 = vpop.f32.mrf.mxu1  ;;  %4446 = vmatprep.mubr.msk.bf16.mxu0 %vm5550_vm0, %v5548_v27 }
 0x65a   : > { %4456 = vmatprep.subr.bf16.mxu0 %v5548_v27 }
 0x65b   : > { %v4427_v18 = vpop.f32.mrf.mxu1 }
 0x660   : > { %4447 = vmatmul.mubr.msk.bf16.vlgmr.msra.gmra.mxu0 %vm1160_vm2, %v1501_v19 }
 0x661   : > { %4460 = vmatprep.mubr.msk.bf16.mxu0 %vm5550_vm0, %v5548_v27  ;;  %4457 = vmatpush3.bf16.msra.mxu0 %v4859_v43 }
 0x662   : > { %4458 = vmatprep.subr.bf16.mxu0 %v5548_v27 }
 0x665   : > { %4459 = vmatpush3.bf16.msra.mxu0 %v4860_v50  ;;  %v4878_v50 = vld [vmem:[#allocation16 + $0x20] ss:$8 sps:$4 sm:$0xff]  }
 0x666   : > { %4470 = vmatprep.subr.bf16.mxu0 %v5548_v27 }
 0x6a5   : > { %v5996_v21 = vpop.f32.mrf.mxu1 }
 0x6a7   : > { %v4442_v22 = vpop.f32.mrf.mxu1 }
 0x6a8   : > { %v4862_v22 = vld [vmem:[#allocation13 + $0x30] sm:$0xff]  }
 0x6a9   : > { %v1497_v23 = vpop.f32.mrf.mxu1 }
 0x6ab   : > { %v4443_v24 = vpop.f32.mrf.mxu1 }
 0x718   : > { %v5998_v26 = vpop.f32.mrf.mxu0 }
 0x719   : > { %v1495_v9 = vadd.f32 %v5996_v21, %v5998_v26 }
 0x71a   : > { %v4434_v28 = vpop.f32.mrf.mxu0 }
 0x71c   : > { %v1442_v29 = vpop.f32.mrf.mxu0 }
 0x71e   : > { %v4435_v30 = vpop.f32.mrf.mxu0 }
 0x71f   : > { %v4105_v30 = vld [vmem:[#allocation14] ss:$0 sm:$0xff] }
 0x720   : > { %v1544_v31 = vpop.f32.mrf.mxu0 }
 0x721   : > { %v1550_v32 = vsel %vm1207_vm3, %v1544_v31, -inf }
 0x722   : > { %1551 = vmax.xlane.f32.xlu0 %v1550_v32  ;;  %v4448_v33 = vpop.f32.mrf.mxu0 }
 0x724   : > { %v1547_v34 = vpop.f32.mrf.mxu0 }
 0x726   : > { %v4449_v35 = vpop.f32.mrf.mxu0 }
 0x738   : > { %1562 = vrot.lane.b32.xlu0 %v5938_v15, %s5552_s28 }
 0x73c   : > { %1671 = vrot.lane.b32.xlu0 %v5949_v25, %s5553_s22 }
 0x7ab   : > { %v1552_v36 = vpop.xlane.xlu0 %1551 }
 0x7ac   : > { %v1553_v37 = vsub.f32 %v1544_v31, %v1552_v36 }
 0x7ae   : > { %v1554_v38 = vmul.f32 1.442695, %v1553_v37  ;;  %v4863_v37 = vld [vmem:[#allocation16 + $0x70] ss:$8 sps:$4 sm:$0xff]  }
 0x7af   : > { %v1563_v39 = vpop.permute.xlu0 %1562 }
 0x7b0   : > { %5009 = vpow2.f32 %v1554_v38  ;;  %v1568_v40 = vsel %vm1223_vm1, %v1563_v39, 0  ;;  %v4865_v38 = vld [vmem:[#allocation16 + $0x74] ss:$8 sps:$4 sm:$0xff]   ;;  %v4868_v39 = vld [vmem:[#allocation16 + $0x64] ss:$8 sps:$4 sm:$0xff]  }
 0x7b1   : > { %4451 = vmatpush3.bf16.msra.mxu1 %v1568_v40  ;;  %v4866_v40 = vld [vmem:[#allocation16 + $0x60] ss:$8 sps:$4 sm:$0xff]  }
 0x7b2   : > { %4464 = vmatprep.subr.bf16.mxu1 %v5548_v27 }
 0x7bd   : > { %v5010_v41 = vpop.eup %5009 }
 0x7be   : > { %v1556_v42 = vsel %vm1207_vm3, %v5010_v41, 0.0 }
 0x7bf   : > { %1557 = vadd.xlane.f32.xlu1 %v1556_v42 }
 0x7d0   : > { %1673 = vrot.lane.b32.xlu1 %v5940_v20, %s5553_s22  ;;  %v1672_v20 = vpop.permute.xlu0 %1671 }
 0x848   : > { %v1558_v25 = vpop.xlane.xlu1 %1557 }
 0x849   : > { %5011 = vrcp.f32 %v1558_v25 }
 0x84c   : > { %v1674_v47 = vpop.permute.xlu1 %1673 }
 0x84d   : > { %v1679_v49 = vsel %vm1160_vm2, %v1674_v47, 0  ;;  %v4874_v47 = vld [vmem:[#allocation16 + $0x44] ss:$8 sps:$4 sm:$0xff]  }
 0x856   : > { %v5012_v44 = vpop.eup %5011 }
 0x857   : > { %v1560_v45 = vmul.f32 %v5012_v44, %v5010_v41  ;;  %v4871_v44 = vld [vmem:[#allocation16 + $0x54] ss:$8 sps:$4 sm:$0xff]  }
 0x859   : > { %v1561_v48 = vpack.c.bf16 %v1560_v45, %v1560_v45  ;;  %v4869_v45 = vld [vmem:[#allocation16 + $0x50] ss:$8 sps:$4 sm:$0xff]  }
 0x85b   : > { %4453 = vmatmul.mubr.msk.bf16.vlgmr.msra.gmra.mxu1 %vm1207_vm3, %v1561_v48  ;;  %v4877_v48 = vld [vmem:[#allocation16 + $0x34] ss:$8 sps:$4 sm:$0xff]  }
 0x85c   : > { %4465 = vmatpush3.bf16.xpose.msra.mxu1 %v1679_v49  ;;  %4466 = vmatprep.mubr.msk.bf16.mxu1 %vm5550_vm0, %v5548_v27  ;;  %v4875_v49 = vld [vmem:[#allocation16 + $0x30] ss:$8 sps:$4 sm:$0xff]  }
 0x85d   : > { %4476 = vmatprep.subr.bf16.mxu1 %v5548_v27 }
 0x863   : > { %4467 = vmatmul.mubr.msk.bf16.vlgmr.msra.gmra.mxu1 %vm1160_vm2, %v1672_v20  ;;  %v4880_v20 = vld [vmem:[#allocation16 + $0x24] ss:$8 sps:$4 sm:$0xff]  }
 0x864   : > { %4480 = vmatprep.mubr.msk.bf16.mxu1 %vm5550_vm0, %v5548_v27  ;;  %4477 = vmatpush3.bf16.msra.mxu1 %v4861_v11  ;;  %v4892_v11 = vld [vmem:[#allocation19 + $0x28] sm:$0xff]  }
 0x865   : > { %4478 = vmatprep.subr.bf16.mxu1 %v5548_v27 }
 0x868   : > { %4479 = vmatpush3.bf16.msra.mxu1 %v4862_v22  ;;  %v4901_v22 = vld [vmem:[#allocation19 + $0x40] sm:$0xff]  }
 0x91b   : > { %v1604_v51 = vpop.f32.mrf.mxu1 }
 0x91c   : > { %v1610_v52 = vpack.c.bf16 %v1604_v51, %v1604_v51  ;;  %v4883_v51 = vld [vmem:[#allocation16 + $0x14] ss:$8 sps:$4 sm:$0xff]  }
 0x91d   : > { %v4454_v53 = vpop.f32.mrf.mxu1 }
 0x91e   : > { %4461 = vmatmul.mubr.msk.bf16.vlgmr.msra.gmra.mxu0 %vm1160_vm2, %v1610_v52  ;;  %v4881_v52 = vld [vmem:[#allocation16 + $0x10] ss:$8 sps:$4 sm:$0xff]   ;;  %v4886_v53 = vld [vmem:[#allocation16 + $0x4] ss:$8 sps:$4 sm:$0xff]  }
 0x91f   : > { %v1607_v54 = vpop.f32.mrf.mxu1  ;;  %4472 = vmatprep.mubr.msk.bf16.mxu0 %vm5550_vm0, %v5548_v27 }
 0x920   : > { %v4884_v54 = vld [vmem:[#allocation16] ss:$8 sps:$4 sm:$0xff]  }
 0x921   : > { %v4455_v55 = vpop.f32.mrf.mxu1 }
 0x923   : > { %v1715_v56 = vpop.f32.mrf.mxu1 }
 0x924   : > { %v1721_v57 = vsel %vm1207_vm3, %v1715_v56, -inf }
 0x925   : > { %1722 = vmax.xlane.f32.xlu0 %v1721_v57  ;;  %v4468_v58 = vpop.f32.mrf.mxu1 }
 0x927   : > { %v1718_v59 = vpop.f32.mrf.mxu1 }
 0x928   : > { %v4106_v59 = vld [vmem:[%s6270_s9] ss:$0 sm:$0xff] }
 0x929   : > { %v4469_v60 = vpop.f32.mrf.mxu1 }
 0x93b   : > { %1733 = vrot.lane.b32.xlu0 %v5938_v15, %s5553_s22 }
 0x9ae   : > { %v1723_v61 = vpop.xlane.xlu0 %1722 }
 0x9af   : > { %v1724_v62 = vsub.f32 %v1715_v56, %v1723_v61  ;;  %v4107_v61 = vld [vmem:[%s6271_s10] ss:$0 sm:$0xff] }
 0x9b1   : > { %v1725_v0 = vmul.f32 1.442695, %v1724_v62 }
 0x9b2   : > { %v1734_v1 = vpop.permute.xlu0 %1733 }
 0x9b3   : > { %5013 = vpow2.f32 %v1725_v0  ;;  %v1739_v4 = vsel %vm1223_vm1, %v1734_v1, 0 }
 0x9b4   : > { %4471 = vmatpush3.bf16.msra.mxu0 %v1739_v4  ;;  %v4887_v4 = vld [vmem:[#allocation19 + $0x78] sm:$0xff]  }
 0x9b5   : > { %1987 = vmatprep.subr.bf16.mxu0 %v4865_v38  ;;  %4285 = vmatprep.subr.bf16.mxu1 %v4887_v4  ;;  %v4910_v4 = vld [vmem:[#allocation10 + $0x158] ss:$12 sps:$4 sm:$0xff]  }
 0x9c0   : > { %v5014_v7 = vpop.eup %5013 }
 0x9c1   : > { %v1727_v8 = vsel %vm1207_vm3, %v5014_v7, 0.0 }
 0x9c2   : > { %1728 = vadd.xlane.f32.xlu1 %v1727_v8  ;;  %v4889_v8 = vld [vmem:[#allocation19 + $0x70] sm:$0xff]  }
 0x9de   : > { %v1664_v10 = vpop.f32.mrf.mxu0 }
 0x9df   : > { %v1670_v12 = vadd.f32 %v1664_v10, %v1495_v9  ;;  %v4890_v9 = vld [vmem:[#allocation19 + $0x30] sm:$0xff]   ;;  %v4891_v10 = vld [vmem:[#allocation19 + $0x68] sm:$0xff]  }
 0x9e0   : > { %v4462_v13 = vpop.f32.mrf.mxu0 }
 0x9e1   : > { %v4894_v13 = vld [vmem:[#allocation19 + $0x20] sm:$0xff]  }
 0x9e2   : > { %v1667_v15 = vpop.f32.mrf.mxu0 }
 0x9e3   : > { %v4895_v15 = vld [vmem:[#allocation19 + $0x58] sm:$0xff]  }
 0x9e4   : > { %v4463_v14 = vpop.f32.mrf.mxu0 }
 0x9e5   : > { %v4896_v14 = vld [vmem:[#allocation19 + $0x18] sm:$0xff]  }
 0xa4b   : > { %v1729_v16 = vpop.xlane.xlu1 %1728 }
 0xa4c   : > { %5015 = vrcp.f32 %v1729_v16  ;;  %v4897_v16 = vld [vmem:[#allocation19 + $0x50] sm:$0xff]  }
 0xa59   : > { %v5016_v17 = vpop.eup %5015 }
 0xa5a   : > { %v1731_v18 = vmul.f32 %v5016_v17, %v5014_v7  ;;  %v4888_v7 = vld [vmem:[#allocation19 + $0x38] sm:$0xff]   ;;  %v4898_v17 = vld [vmem:[#allocation19 + $0x10] sm:$0xff]  }
 0xa5c   : > { %v1732_v19 = vpack.c.bf16 %v1731_v18, %v1731_v18  ;;  %v4899_v18 = vld [vmem:[#allocation19 + $0x48] sm:$0xff]  }
 0xa5e   : > { %4473 = vmatmul.mubr.msk.bf16.vlgmr.msra.gmra.mxu0 %vm1207_vm3, %v1732_v19  ;;  %v4900_v19 = vld [vmem:[#allocation19 + $0x8] sm:$0xff]  }
 0xa5f   : > { %2019 = vmatprep.mubr.bf16.mxu0 %v5549_v46  ;;  %1988 = vmatpush1.bf16.msra.mxu0 %v4863_v37 }
 0xa60   : > { %1989 = vmatprep.subr.bf16.mxu0 %v4868_v39 }
 0xa63   : > { %1990 = vmatpush1.bf16.msra.mxu0 %v4866_v40 }
 0xa64   : > { %1991 = vmatprep.subr.bf16.mxu0 %v4871_v44 }
 0xa67   : > { %1992 = vmatpush1.bf16.msra.mxu0 %v4869_v45 }
 0xa68   : > { %1993 = vmatprep.subr.bf16.mxu0 %v4874_v47 }
 0xb1e   : > { %v1775_v21 = vpop.f32.mrf.mxu0 }
 0xb1f   : > { %v1781_v23 = vpack.c.bf16 %v1775_v21, %v1775_v21  ;;  %v4902_v21 = vld [vmem:[#allocation19] sm:$0xff]  }
 0xb20   : > { %v4474_v24 = vpop.f32.mrf.mxu0 }
 0xb21   : > { %4481 = vmatmul.mubr.msk.bf16.vlgmr.msra.gmra.mxu1 %vm1160_vm2, %v1781_v23  ;;  %v1895_v23 = vld [vmem:[#allocation17] sm:$0x3] }
 0xb22   : > { %v1778_v26 = vpop.f32.mrf.mxu0  ;;  %4286 = vmatpush3.bf16.msra.mxu1 %v4888_v7  ;;  %v1900_v24 = vrot.slane %v1895_v23, %v5932_v6  ;;  %v4907_v7 = vld [vmem:[#allocation10 + $0x150] ss:$12 sps:$4 sm:$0xff]  }
 0xb23   : > { %4287 = vmatprep.subr.bf16.mxu1 %v4889_v8  ;;  %v1904_v26 = vrot.slane %v1895_v23, %v5929_v5  ;;  %v4926_v23 = vld [vmem:[#allocation10 + $0xf8] ss:$12 sps:$4 sm:$0xff]  }
 0xb24   : > { %v4475_v28 = vpop.f32.mrf.mxu0 }
 0xb26   : > { %4288 = vmatpush3.bf16.msra.mxu1 %v4890_v9 }
 0xb27   : > { %4289 = vmatprep.subr.bf16.mxu1 %v4891_v10 }
 0xb2a   : > { %4290 = vmatpush3.bf16.msra.mxu1 %v4892_v11  ;;  %v4913_v11 = vld [vmem:[#allocation10 + $0x13c] ss:$12 sps:$4 sm:$0xff]  }
 0xbe1   : > { %v1835_v29 = vpop.f32.mrf.mxu1 }
 0xbe2   : > { %v1841_v31 = vadd.f32 %v1835_v29, %v1670_v12  ;;  %v4893_v12 = vld [vmem:[#allocation19 + $0x60] sm:$0xff]  }
 0xbe3   : > { %v4482_v32 = vpop.f32.mrf.mxu1  ;;  %4291 = vmatprep.subr.bf16.mxu1 %v4893_v12  ;;  %v4911_v12 = vld [vmem:[#allocation10 + $0x138] ss:$12 sps:$4 sm:$0xff]  }
 0xbe4   : > { %v1849_v33 = vadd.f32 %v4105_v30, %v1841_v31  ;;  %4292 = vmatpush3.bf16.msra.mxu1 %v4894_v13  ;;  %v4914_v13 = vld [vmem:[#allocation10 + $0x140] ss:$12 sps:$4 sm:$0xff]  }
 0xbe5   : > { %v1838_v34 = vpop.f32.mrf.mxu1  ;;  %4293 = vmatprep.subr.bf16.mxu1 %v4895_v15  ;;  %v4915_v15 = vld [vmem:[#allocation10 + $0x120] ss:$12 sps:$4 sm:$0xff]  }
 0xbe6   : > { %v1850_v35 = vadd.f32 %v1849_v33, %v5917_v63  ;;  %v4872_v63 = vld [vmem:[#allocation16 + $0x40] ss:$8 sps:$4 sm:$0xff]  }
 0xbe7   : > { %v4483_v36 = vpop.f32.mrf.mxu1  ;;  %1994 = vmatpush1.bf16.msra.mxu0 %v4872_v63 }
 0xbe8   : > { %1853 = vadd.xlane.f32.xlu1 %v1850_v35  ;;  %1995 = vmatprep.subr.bf16.mxu0 %v4877_v48 }
 0xbe9   : > { %4294 = vmatpush3.bf16.msra.mxu1 %v4896_v14  ;;  %v4917_v14 = vld [vmem:[#allocation10 + $0x124] ss:$12 sps:$4 sm:$0xff]  }
 0xbea   : > { %4295 = vmatprep.subr.bf16.mxu1 %v4897_v16  ;;  %v4918_v16 = vld [vmem:[#allocation10 + $0x128] ss:$12 sps:$4 sm:$0xff]  }
 0xbeb   : > { %1996 = vmatpush1.bf16.msra.mxu0 %v4875_v49 }
 0xbec   : > { %1997 = vmatprep.subr.bf16.mxu0 %v4880_v20 }
 0xbed   : > { %4296 = vmatpush3.bf16.msra.mxu1 %v4898_v17  ;;  %v4921_v17 = vld [vmem:[#allocation10 + $0x10c] ss:$12 sps:$4 sm:$0xff]  }
 0xbee   : > { %4297 = vmatprep.subr.bf16.mxu1 %v4899_v18  ;;  %v4919_v18 = vld [vmem:[#allocation10 + $0x108] ss:$12 sps:$4 sm:$0xff]  }
 0xbef   : > { %1998 = vmatpush1.bf16.msra.mxu0 %v4878_v50 }
 0xbf0   : > { %1999 = vmatprep.subr.bf16.mxu0 %v4883_v51 }
 0xbf1   : > { %4298 = vmatpush3.bf16.msra.mxu1 %v4900_v19  ;;  %v4922_v19 = vld [vmem:[#allocation10 + $0x110] ss:$12 sps:$4 sm:$0xff]  }
 0xbf2   : > { %4299 = vmatprep.subr.bf16.mxu1 %v4901_v22  ;;  %v4925_v22 = vld [vmem:[#allocation10 + $0xf4] ss:$12 sps:$4 sm:$0xff]  }
 0xbf3   : > { %2000 = vmatpush1.bf16.msra.mxu0 %v4881_v52 }
 0xbf4   : > { %2001 = vmatprep.subr.bf16.mxu0 %v4886_v53  ;;  %v4124_v53 = vld [vmem:[#allocation20] ss:$0 sm:$0xff] }
 0xbf5   : > { %4300 = vmatpush3.bf16.msra.mxu1 %v4902_v21  ;;  %v4923_v21 = vld [vmem:[#allocation10 + $0xf0] ss:$12 sps:$4 sm:$0xff]  }
 0xbf6   : > { %4484 = vmatprep.subr.bf16.mxu1 %v5548_v27 }
 0xbf7   : > { %2002 = vmatpush1.bf16.msra.mxu0 %v4884_v54 }
 0xc71   : > { %v1854_v41 = vpop.xlane.xlu1 %1853 }
 0xc72   : > { %v1855_v42 = vmul.f32 0.0078125, %v1854_v41 }
 0xc74   : > { %v1856_v43 = vsub.f32 %v1850_v35, %v1855_v42 }
 0xc76   : > { %v1857_v25 = vmul.f32 %v1856_v43, %v1856_v43 }
 0xc78   : > { %1858 = vadd.xlane.f32.xlu1 %v1857_v25 }
 0xd01   : > { %v1859_v55 = vpop.xlane.xlu1 %1858 }
 0xd02   : > { %v1860_v56 = vmul.f32 0.0078125, %v1859_v55 }
 0xd04   : > { %v1861_v57 = vadd.f32 1e-12, %v1860_v56 }
 0xd06   : > { %5017 = vrsqrt.f32 %v1861_v57 }
 0xd13   : > { %v5018_v58 = vpop.eup %5017 }
 0xd14   : > { %v1863_v60 = vmul.f32 %v5018_v58, %v1856_v43 }
 0xd16   : > { %v1870_v62 = vmul.f32 %v4106_v59, %v1863_v60  ;;  %v4903_v60 = vld [vmem:[#allocation10 + $0x168] ss:$12 sps:$4 sm:$0xff]  }
 0xd18   : > { %v6041_v0 = vadd.f32 %v4107_v61, %v1870_v62  ;;  %v4905_v61 = vld [vmem:[#allocation10 + $0x16c] ss:$12 sps:$4 sm:$0xff]   ;;  %v4906_v62 = vld [vmem:[#allocation10 + $0x170] ss:$12 sps:$4 sm:$0xff]  }
 0xd19   : > { %2431 = vmatprep.subr.bf16.mxu0 %v4905_v61 }
 0xd1a   : > { %v1878_v1 = vpack.c.bf16 %v6041_v0, %v6041_v0 }
 0xd1c   : > { %2020 = vmatmul.mubr.bf16.vlgmr.msra.gmra.mxu0 %v1878_v1  ;;  %v4909_v1 = vld [vmem:[#allocation10 + $0x154] ss:$12 sps:$4 sm:$0xff]  }
 0xd1d   : > { %2463 = vmatprep.mubr.bf16.mxu0 %v5549_v46  ;;  %2432 = vmatpush1.bf16.msra.mxu0 %v4903_v60 }
 0xd1e   : > { %2433 = vmatprep.subr.bf16.mxu0 %v4909_v1 }
 0xd21   : > { %2434 = vmatpush1.bf16.msra.mxu0 %v4907_v7 }
 0xd22   : > { %2435 = vmatprep.subr.bf16.mxu0 %v4913_v11 }
 0xd25   : > { %2436 = vmatpush1.bf16.msra.mxu0 %v4911_v12 }
 0xd26   : > { %2437 = vmatprep.subr.bf16.mxu0 %v4917_v14 }
 0xd29   : > { %2438 = vmatpush1.bf16.msra.mxu0 %v4915_v15 }
 0xd2a   : > { %2439 = vmatprep.subr.bf16.mxu0 %v4921_v17 }
 0xd2d   : > { %2440 = vmatpush1.bf16.msra.mxu0 %v4919_v18 }
 0xd2e   : > { %2441 = vmatprep.subr.bf16.mxu0 %v4925_v22 }
 0xd31   : > { %2442 = vmatpush1.bf16.msra.mxu0 %v4923_v21 }
 0xddc   : > { %v2021_v28 = vpop.f32.mrf.mxu0 }
 0xddd   : > { %v2022_v29 = vadd.f32 %v2021_v28, %v1900_v24  ;;  %v4929_v24 = vld [vmem:[#allocation10 + $0xdc] ss:$12 sps:$4 sm:$0xff]   ;;  %v4930_v28 = vld [vmem:[#allocation10 + $0xe0] ss:$12 sps:$4 sm:$0xff]  }
 0xdde   : > { %v2023_v30 = vpop.f32.mrf.mxu0  ;;  %2443 = vmatprep.subr.bf16.mxu0 %v4929_v24 }
 0xddf   : > { %v2030_v31 = vmul.f32 0.044715, %v2022_v29  ;;  %v2024_v32 = vadd.f32 %v2023_v30, %v1904_v26  ;;  %v2028_v63 = vmul.f32 0.5, %v2022_v29  ;;  %v4927_v26 = vld [vmem:[#allocation10 + $0xd8] ss:$12 sps:$4 sm:$0xff]  }
 0xde0   : > { %v2025_v33 = vpop.f32.mrf.mxu0  ;;  %2444 = vmatpush1.bf16.msra.mxu0 %v4927_v26  ;;  %v4931_v30 = vld [vmem:[#allocation10 + $0xc0] ss:$12 sps:$4 sm:$0xff]  }
 0xde1   : > { %v2032_v34 = vmul.f32 %v2030_v31, %v2022_v29  ;;  %v2031_v35 = vmul.f32 0.044715, %v2024_v32  ;;  %v2029_v47 = vmul.f32 0.5, %v2024_v32  ;;  %v4934_v31 = vld [vmem:[#allocation10 + $0xc8] ss:$12 sps:$4 sm:$0xff]  }
 0xde2   : > { %v2026_v36 = vpop.f32.mrf.mxu0 }
 0xde3   : > { %v2034_v37 = vmul.f32 %v2032_v34, %v2022_v29  ;;  %v2033_v38 = vmul.f32 %v2031_v35, %v2024_v32  ;;  %v4141_v36 = vld [vmem:[%s6348_s25] ss:$0 sm:$0xff] }
 0xde5   : > { %v2036_v39 = vadd.f32 %v2034_v37, %v2022_v29  ;;  %v2035_v40 = vmul.f32 %v2033_v38, %v2024_v32  ;;  %v4933_v29 = vld [vmem:[#allocation10 + $0xc4] ss:$12 sps:$4 sm:$0xff]  }
 0xde6   : > { %2445 = vmatprep.subr.bf16.mxu0 %v4933_v29  ;;  %v4142_v38 = vld [vmem:[%s6277_s16] ss:$0 sm:$0xff]  ;;  %v4937_v29 = vld [vmem:[#allocation13 + $0x58] sm:$0xff]  }
 0xde7   : > { %v2038_v41 = vmul.f32 0.7978846, %v2036_v39  ;;  %v2037_v42 = vadd.f32 %v2035_v40, %v2024_v32  ;;  %2446 = vmatpush1.bf16.msra.mxu0 %v4931_v30  ;;  %v4938_v30 = vld [vmem:[#allocation13 + $0x50] sm:$0xff]  }
 0xde8   : > { %4504 = vmatprep.subr.bf16.mxu0 %v5548_v27 }
 0xde9   : > { %v2039_v43 = vmul.f32 0.7978846, %v2037_v42  ;;  %5019 = vtanh.f32 %v2038_v41  ;;  %v2286_v42 = vld [vmem:[#allocation11 + $0x3] sm:$0x7] }
 0xdeb   : > { %5021 = vtanh.f32 %v2039_v43  ;;  %v2299_v43 = vrot.slane %v2286_v42, %v943_v3 }
 0xdf6   : > { %v5020_v25 = vpop.eup %5019 }
 0xdf7   : > { %v2042_v44 = vadd.f32 1.0, %v5020_v25  ;;  %v2295_v25 = vrot.slane %v2286_v42, %v5929_v5 }
 0xdf8   : > { %v5022_v45 = vpop.eup %5021 }
 0xdf9   : > { %v2043_v48 = vadd.f32 1.0, %v5022_v45  ;;  %v2044_v49 = vmul.f32 %v2042_v44, %v2028_v63  ;;  %v2291_v63 = vrot.slane %v2286_v42, %v5932_v6 }
 0xdfb   : > { %v2045_v20 = vmul.f32 %v2043_v48, %v2029_v47  ;;  %v2046_v51 = vpack.c.bf16 %v2044_v49, %v2044_v49 }
 0xdfd   : > { %v2047_v50 = vpack.c.bf16 %v2045_v20, %v2045_v20 }
 0xdff   : > { %2215 = vmatprep.mubr.bf16.mxu1 %v2047_v50 }
 0xe00   : > { %2216 = vmatmul.mubr.bf16.vlgmr.msra.gmra.mxu1 %v2046_v51 }
 0xe01   : > { %4500 = vmatprep.mubr.msk.bf16.mxu1 %vm5550_vm0, %v5548_v27  ;;  %4485 = vmatpush3.bf16.msra.mxu1 %v4906_v62 }
 0xe02   : > { %4486 = vmatprep.subr.bf16.mxu1 %v5548_v27 }
 0xe05   : > { %4487 = vmatpush3.bf16.msra.mxu1 %v4910_v4 }
 0xe06   : > { %4488 = vmatprep.subr.bf16.mxu1 %v5548_v27 }
 0xe09   : > { %4489 = vmatpush3.bf16.msra.mxu1 %v4914_v13 }
 0xe0a   : > { %4490 = vmatprep.subr.bf16.mxu1 %v5548_v27 }
 0xe0d   : > { %4491 = vmatpush3.bf16.msra.mxu1 %v4918_v16 }
 0xe0e   : > { %4492 = vmatprep.subr.bf16.mxu1 %v5548_v27 }
 0xe11   : > { %4493 = vmatpush3.bf16.msra.mxu1 %v4922_v19 }
 0xe12   : > { %4494 = vmatprep.subr.bf16.mxu1 %v5548_v27 }
 0xe15   : > { %4495 = vmatpush3.bf16.msra.mxu1 %v4926_v23 }
 0xe16   : > { %4496 = vmatprep.subr.bf16.mxu1 %v5548_v27 }
 0xe19   : > { %4497 = vmatpush3.bf16.msra.mxu1 %v4930_v28 }
 0xe1a   : > { %4498 = vmatprep.subr.bf16.mxu1 %v5548_v27 }
 0xe1d   : > { %4499 = vmatpush3.bf16.msra.mxu1 %v4934_v31 }
 0xe1e   : > { %4510 = vmatprep.subr.bf16.mxu1 %v5548_v27 }
 0xec0   : > { %v4301_v52 = vpop.f32.mrf.mxu1 }
 0xec2   : > { %v4302_v54 = vpop.f32.mrf.mxu1 }
 0xec3   : > { %v4303_v55 = vadd.f32 %v4302_v54, %v4301_v52 }
 0xec4   : > { %v4304_v56 = vpop.f32.mrf.mxu1 }
 0xec5   : > { %v2218_v57 = vadd.f32 %v4303_v55, %v4124_v53 }
 0xec6   : > { %v4305_v58 = vpop.f32.mrf.mxu1 }
 0xec7   : > { %v2223_v59 = vadd.f32 %v2218_v57, %v6041_v0 }
 0xec9   : > { %2226 = vadd.xlane.f32.xlu0 %v2223_v59 }
 0xf52   : > { %v2227_v8 = vpop.xlane.xlu0 %2226 }
 0xf53   : > { %v2228_v9 = vmul.f32 0.0078125, %v2227_v8 }
 0xf55   : > { %v2229_v0 = vsub.f32 %v2223_v59, %v2228_v9 }
 0xf57   : > { %v2230_v10 = vmul.f32 %v2229_v0, %v2229_v0 }
 0xf59   : > { %2231 = vadd.xlane.f32.xlu1 %v2230_v10 }
 0xfe2   : > { %v2232_v32 = vpop.xlane.xlu1 %2231 }
 0xfe3   : > { %v2233_v33 = vmul.f32 0.0078125, %v2232_v32 }
 0xfe5   : > { %v2234_v34 = vadd.f32 1e-12, %v2233_v33 }
 0xfe7   : > { %5023 = vrsqrt.f32 %v2234_v34 }
 0xff4   : > { %v5024_v35 = vpop.eup %5023 }
 0xff5   : > { %v2236_v37 = vmul.f32 %v5024_v35, %v2229_v0 }
 0xff7   : > { %v2243_v39 = vmul.f32 %v4141_v36, %v2236_v37  ;;  %v4935_v36 = vld [vmem:[#allocation13 + $0x48] sm:$0xff]  }
 0xff9   : > { %v6067_v40 = vadd.f32 %v4142_v38, %v2243_v39  ;;  %v4936_v38 = vld [vmem:[#allocation13 + $0x40] sm:$0xff]  }
 0xffb   : > { %v2251_v41 = vpack.c.bf16 %v6067_v40, %v6067_v40 }
 0xffd   : > { %2464 = vmatmul.mubr.bf16.vlgmr.msra.gmra.mxu0 %v2251_v41  ;;  %4501 = vmatmul.mubr.bf16.vlgmr.msra.gmra.mxu1 %v2251_v41 }
 0xffe   : > { %4506 = vmatprep.mubr.msk.bf16.mxu0 %vm5550_vm0, %v5548_v27  ;;  %4512 = vmatprep.mubr.msk.bf16.mxu1 %vm5550_vm0, %v5548_v27 }
0x10bd   : > { %v2465_v44 = vpop.f32.mrf.mxu0  ;;  %v2506_v45 = vpop.f32.mrf.mxu1 }
0x10be   : > { %v2507_v47 = vadd.f32 %v2506_v45, %v2299_v43  ;;  %v2466_v53 = vadd.f32 %v2465_v44, %v2291_v63 }
0x10bf   : > { %v2467_v48 = vpop.f32.mrf.mxu0  ;;  %v4502_v49 = vpop.f32.mrf.mxu1 }
0x10c0   : > { %v6079_v20 = vpack.c.bf16 %v2507_v47, %v2507_v47  ;;  %v2468_v50 = vadd.f32 %v2467_v48, %v2295_v25  ;;  %v6090_v57 = vpack.c.bf16 %v2466_v53, %v2466_v53 }
0x10c1   : > { %v2469_v51 = vpop.f32.mrf.mxu0  ;;  %v2509_v52 = vpop.f32.mrf.mxu1 }
0x10c2   : > { %v6081_v54 = vpack.c.bf16 %v2468_v50, %v2468_v50  ;;  %v2577_v2 = vsel %vm1223_vm1, %v6079_v20, 0 }
0x10c3   : > { %v2470_v3 = vpop.f32.mrf.mxu0  ;;  %v4503_v55 = vpop.f32.mrf.mxu1  ;;  %4511 = vmatpush3.bf16.msra.mxu1 %v2577_v2 }
0x10c4   : > { %2629 = vrot.lane.b32.xlu1 %v6081_v54, %s5551_s3  ;;  %v2519_v56 = vsel %vm1160_vm2, %v6081_v54, 0  ;;  %4522 = vmatprep.subr.bf16.mxu1 %v5548_v27 }
0x10c5   : > { %4505 = vmatpush3.bf16.xpose.msra.mxu0 %v2519_v56 }
0x10c6   : > { %4516 = vmatprep.subr.bf16.mxu0 %v5548_v27 }
0x10c8   : > { %2626 = vrot.lane.b32.xlu1 %v6090_v57, %s5551_s3 }
0x10cc   : > { %4507 = vmatmul.mubr.msk.bf16.vlgmr.msra.gmra.mxu0 %vm1160_vm2, %v6090_v57 }
0x10cd   : > { %4518 = vmatprep.mubr.msk.bf16.mxu0 %vm5550_vm0, %v5548_v27 }
0x1136   : > { %v2630_v58 = vpop.permute.xlu1 %2629 }
0x1137   : > { %v2635_v59 = vsel %vm1160_vm2, %v2630_v58, 0 }
0x1138   : > { %4517 = vmatpush3.bf16.xpose.msra.mxu0 %v2635_v59 }
0x1139   : > { %4528 = vmatprep.subr.bf16.mxu0 %v5548_v27 }
0x113a   : > { %v2627_v60 = vpop.permute.xlu1 %2626 }
0x113f   : > { %4519 = vmatmul.mubr.msk.bf16.vlgmr.msra.gmra.mxu0 %vm1160_vm2, %v2627_v60 }
0x1140   : > { %4532 = vmatprep.mubr.msk.bf16.mxu0 %vm5550_vm0, %v5548_v27  ;;  %4529 = vmatpush3.bf16.msra.mxu0 %v4937_v29 }
0x1141   : > { %4530 = vmatprep.subr.bf16.mxu0 %v5548_v27 }
0x1144   : > { %4531 = vmatpush3.bf16.msra.mxu0 %v4938_v30 }
0x1145   : > { %4544 = vmatprep.subr.bf16.mxu0 %v5548_v27 }
0x118c   : > { %v2555_v61 = vpop.f32.mrf.mxu0 }
0x118d   : > { %v2561_v62 = vsel %vm1207_vm3, %v2555_v61, -inf }
0x118e   : > { %2562 = vmax.xlane.f32.xlu1 %v2561_v62  ;;  %v4508_v1 = vpop.f32.mrf.mxu0 }
0x1190   : > { %v2558_v4 = vpop.f32.mrf.mxu0 }
0x1192   : > { %v4509_v7 = vpop.f32.mrf.mxu0 }
0x119f   : > { %2855 = vrot.lane.b32.xlu1 %v6081_v54, %s5552_s28 }
0x11ff   : > { %v2671_v8 = vpop.f32.mrf.mxu0 }
0x1200   : > { %v2677_v9 = vsel %vm1207_vm3, %v2671_v8, -inf }
0x1201   : > { %2678 = vmax.xlane.f32.xlu0 %v2677_v9  ;;  %v4520_v0 = vpop.f32.mrf.mxu0 }
0x1203   : > { %v2674_v10 = vpop.f32.mrf.mxu0 }
0x1205   : > { %v4521_v11 = vpop.f32.mrf.mxu0 }
0x1217   : > { %v2563_v12 = vpop.xlane.xlu1 %2562 }
0x1218   : > { %v2564_v13 = vsub.f32 %v2555_v61, %v2563_v12 }
0x121a   : > { %v2565_v15 = vmul.f32 1.442695, %v2564_v13  ;;  %v4939_v13 = vld [vmem:[#allocation13 + $0x68] sm:$0xff]  }
0x121b   : > { %v2856_v44 = vpop.permute.xlu1 %2855 }
0x121c   : > { %5025 = vpow2.f32 %v2565_v15  ;;  %v2861_v48 = vsel %vm1160_vm2, %v2856_v44, 0 }
0x1229   : > { %v5026_v14 = vpop.eup %5025 }
0x122a   : > { %v2567_v16 = vsel %vm1207_vm3, %v5026_v14, 0.0 }
0x122b   : > { %2568 = vadd.xlane.f32.xlu0 %v2567_v16 }
0x128a   : > { %v2679_v17 = vpop.xlane.xlu0 %2678 }
0x128b   : > { %v2680_v18 = vsub.f32 %v2671_v8, %v2679_v17 }
0x128d   : > { %v2681_v19 = vmul.f32 1.442695, %v2680_v18 }
0x128f   : > { %5027 = vpow2.f32 %v2681_v19  ;;  %v4940_v19 = vld [vmem:[#allocation13 + $0x60] sm:$0xff]  }
0x129c   : > { %v5028_v22 = vpop.eup %5027 }
0x129d   : > { %v2683_v21 = vsel %vm1207_vm3, %v5028_v22, 0.0 }
0x129e   : > { %2684 = vadd.xlane.f32.xlu0 %v2683_v21 }
0x12b4   : > { %2690 = vrot.lane.b32.xlu0 %v6079_v20, %s5551_s3  ;;  %v2569_v23 = vpop.xlane.xlu0 %2568  ;;  %s5431_s3 = scalar_lea.vmem %s5430_s30, 32 }
0x12b5   : > { %5029 = vrcp.f32 %v2569_v23  ;;  %p5433_p11 = scmp.lt.s32.totalorder %s5431_s3, %s5425_s15 }
0x12b7   : > { %p5434_p1 = por %p5433_p11, %p5432_p10 }
0x12b8   : > { %2853 = vrot.lane.b32.xlu0 %v6090_v57, %s5552_s28 }
0x12b9   : > { %p5435_p13 = pnand %p5434_p1, %p5428_p3 }
0x12c2   : > { %v5030_v24 = vpop.eup %5029 }
0x12c3   : > { %v2571_v26 = vmul.f32 %v5030_v24, %v5026_v14 }
0x12c5   : > { %v2572_v28 = vpack.c.bf16 %v2571_v26, %v2571_v26 }
0x12c7   : > { %4513 = vmatmul.mubr.msk.bf16.vlgmr.msra.gmra.mxu1 %vm1207_vm3, %v2572_v28 }
0x12c8   : > { %4524 = vmatprep.mubr.msk.bf16.mxu1 %vm5550_vm0, %v5548_v27 }
0x1327   : > { %v2685_v31 = vpop.xlane.xlu0 %2684 }
0x1328   : > { %5031 = vrcp.f32 %v2685_v31 }
0x132b   : > { %v2691_v32 = vpop.permute.xlu0 %2690 }
0x132c   : > { %v2696_v33 = vsel %vm1223_vm1, %v2691_v32, 0 }
0x132d   : > { %4523 = vmatpush3.bf16.msra.mxu1 %v2696_v33 }
0x132e   : > { %4536 = vmatprep.subr.bf16.mxu1 %v5548_v27 }
0x132f   : > { %v2854_v51 = vpop.permute.xlu0 %2853 }
0x1335   : > { %v5032_v34 = vpop.eup %5031 }
0x1336   : > { %v2687_v35 = vmul.f32 %v5032_v34, %v5028_v22 }
0x1338   : > { %v2688_v37 = vpack.c.bf16 %v2687_v35, %v2687_v35 }
0x133a   : > { %4525 = vmatmul.mubr.msk.bf16.vlgmr.msra.gmra.mxu1 %vm1207_vm3, %v2688_v37 }
0x133b   : > { %4537 = vmatpush3.bf16.msra.mxu1 %v4935_v36  ;;  %4540 = vmatprep.mubr.msk.bf16.mxu1 %vm5550_vm0, %v5548_v27 }
0x133c   : > { %4538 = vmatprep.subr.bf16.mxu1 %v5548_v27 }
0x133f   : > { %4539 = vmatpush3.bf16.msra.mxu1 %v4936_v38 }
0x1340   : > { %4550 = vmatprep.subr.bf16.mxu1 %v5548_v27 }
0x1387   : > { %v2613_v39 = vpop.f32.mrf.mxu1 }
0x1388   : > { %v2619_v41 = vpack.c.bf16 %v2613_v39, %v2613_v39 }
0x1389   : > { %v4514_v42 = vpop.f32.mrf.mxu1 }
0x138a   : > { %4541 = vmatmul.mubr.msk.bf16.vlgmr.msra.gmra.mxu1 %vm1160_vm2, %v2619_v41 }
0x138b   : > { %v2616_v43 = vpop.f32.mrf.mxu1  ;;  %4552 = vmatprep.mubr.msk.bf16.mxu1 %vm5550_vm0, %v5548_v27 }
0x138c   : > { %v4941_v43 = vld [vmem:[#allocation13 + $0x78] sm:$0xff]  }
0x138d   : > { %v4515_v25 = vpop.f32.mrf.mxu1 }
0x13fa   : > { %v2732_v45 = vpop.f32.mrf.mxu1 }
0x13fb   : > { %v2738_v63 = vpack.c.bf16 %v2732_v45, %v2732_v45 }
0x13fc   : > { %v4526_v47 = vpop.f32.mrf.mxu1 }
0x13fd   : > { %4533 = vmatmul.mubr.msk.bf16.vlgmr.msra.gmra.mxu0 %vm1160_vm2, %v2738_v63 }
0x13fe   : > { %4545 = vmatpush3.bf16.xpose.msra.mxu0 %v2861_v48  ;;  %v2735_v49 = vpop.f32.mrf.mxu1  ;;  %4546 = vmatprep.mubr.msk.bf16.mxu0 %vm5550_vm0, %v5548_v27 }
0x13ff   : > { %4556 = vmatprep.subr.bf16.mxu0 %v5548_v27 }
0x1400   : > { %v4527_v50 = vpop.f32.mrf.mxu1 }
0x1401   : > { %v4942_v50 = vld [vmem:[#allocation13 + $0x70] sm:$0xff]  }
0x1405   : > { %4547 = vmatmul.mubr.msk.bf16.vlgmr.msra.gmra.mxu0 %vm1160_vm2, %v2854_v51 }
0x1406   : > { %4560 = vmatprep.mubr.msk.bf16.mxu0 %vm5550_vm0, %v5548_v27  ;;  %4557 = vmatpush3.bf16.msra.mxu0 %v4939_v13  ;;  %v4949_v13 = vld [vmem:[#allocation16 + $0xd0] ss:$8 sps:$4 sm:$0xff]  }
0x1407   : > { %4558 = vmatprep.subr.bf16.mxu0 %v5548_v27 }
0x140a   : > { %4559 = vmatpush3.bf16.msra.mxu0 %v4940_v19  ;;  %v4966_v19 = vld [vmem:[#allocation16 + $0x84] ss:$8 sps:$4 sm:$0xff]  }
0x140b   : > { %4570 = vmatprep.subr.bf16.mxu0 %v5548_v27 }
0x144a   : > { %v6137_v52 = vpop.f32.mrf.mxu1 }
0x144c   : > { %v4542_v53 = vpop.f32.mrf.mxu1 }
0x144e   : > { %v2850_v2 = vpop.f32.mrf.mxu1 }
0x1450   : > { %v4543_v3 = vpop.f32.mrf.mxu1 }
0x14bd   : > { %v6139_v55 = vpop.f32.mrf.mxu0 }
0x14be   : > { %v2848_v41 = vadd.f32 %v6137_v52, %v6139_v55 }
0x14bf   : > { %v4534_v56 = vpop.f32.mrf.mxu0 }
0x14c0   : > { %v4187_v56 = vld [vmem:[#allocation14 + $0x1] ss:$0 sm:$0xff] }
0x14c1   : > { %v2795_v58 = vpop.f32.mrf.mxu0 }
0x14c3   : > { %v4535_v59 = vpop.f32.mrf.mxu0 }
0x14c5   : > { %v2897_v60 = vpop.f32.mrf.mxu0 }
0x14c6   : > { %v2903_v61 = vsel %vm1207_vm3, %v2897_v60, -inf }
0x14c7   : > { %2904 = vmax.xlane.f32.xlu0 %v2903_v61  ;;  %v4548_v62 = vpop.f32.mrf.mxu0 }
0x14c9   : > { %v2900_v1 = vpop.f32.mrf.mxu0 }
0x14cb   : > { %v4549_v4 = vpop.f32.mrf.mxu0 }
0x14cc   : > { %v4945_v4 = vld [vmem:[#allocation16 + $0xf4] ss:$8 sps:$4 sm:$0xff]  }
0x14dd   : > { %2915 = vrot.lane.b32.xlu0 %v6079_v20, %s5552_s28 }
0x14e1   : > { %3024 = vrot.lane.b32.xlu0 %v6090_v57, %s5553_s22 }
0x1550   : > { %v2905_v7 = vpop.xlane.xlu0 %2904 }
0x1551   : > { %v2906_v8 = vsub.f32 %v2897_v60, %v2905_v7  ;;  %v4948_v7 = vld [vmem:[#allocation16 + $0xe4] ss:$8 sps:$4 sm:$0xff]  }
0x1553   : > { %v2907_v9 = vmul.f32 1.442695, %v2906_v8  ;;  %v4946_v8 = vld [vmem:[#allocation16 + $0xe0] ss:$8 sps:$4 sm:$0xff]  }
0x1554   : > { %v2916_v0 = vpop.permute.xlu0 %2915 }
0x1555   : > { %5033 = vpow2.f32 %v2907_v9  ;;  %v2921_v10 = vsel %vm1223_vm1, %v2916_v0, 0 }
0x1556   : > { %4551 = vmatpush3.bf16.msra.mxu1 %v2921_v10 }
0x1557   : > { %4564 = vmatprep.subr.bf16.mxu1 %v5548_v27 }
0x1562   : > { %v5034_v11 = vpop.eup %5033 }
0x1563   : > { %v2909_v12 = vsel %vm1207_vm3, %v5034_v11, 0.0 }
0x1564   : > { %2910 = vadd.xlane.f32.xlu1 %v2909_v12  ;;  %v4951_v12 = vld [vmem:[#allocation16 + $0xd4] ss:$8 sps:$4 sm:$0xff]  }
0x1575   : > { %3026 = vrot.lane.b32.xlu1 %v6081_v54, %s5553_s22  ;;  %v3025_v54 = vpop.permute.xlu0 %3024 }
0x15ed   : > { %v2911_v57 = vpop.xlane.xlu1 %2910 }
0x15ee   : > { %5035 = vrcp.f32 %v2911_v57  ;;  %v4954_v57 = vld [vmem:[#allocation16 + $0xc4] ss:$8 sps:$4 sm:$0xff]  }
0x15f1   : > { %v3027_v16 = vpop.permute.xlu1 %3026 }
0x15f2   : > { %v3032_v18 = vsel %vm1160_vm2, %v3027_v16, 0  ;;  %v4960_v16 = vld [vmem:[#allocation16 + $0xa4] ss:$8 sps:$4 sm:$0xff]  }
0x15fb   : > { %v5036_v15 = vpop.eup %5035 }
0x15fc   : > { %v2913_v14 = vmul.f32 %v5036_v15, %v5034_v11  ;;  %v4957_v15 = vld [vmem:[#allocation16 + $0xb4] ss:$8 sps:$4 sm:$0xff]  }
0x15fe   : > { %v2914_v17 = vpack.c.bf16 %v2913_v14, %v2913_v14  ;;  %v4955_v14 = vld [vmem:[#allocation16 + $0xb0] ss:$8 sps:$4 sm:$0xff]  }
0x1600   : > { %4553 = vmatmul.mubr.msk.bf16.vlgmr.msra.gmra.mxu1 %vm1207_vm3, %v2914_v17  ;;  %v4958_v17 = vld [vmem:[#allocation16 + $0xa0] ss:$8 sps:$4 sm:$0xff]  }
0x1601   : > { %4565 = vmatpush3.bf16.xpose.msra.mxu1 %v3032_v18  ;;  %4566 = vmatprep.mubr.msk.bf16.mxu1 %vm5550_vm0, %v5548_v27  ;;  %v4963_v18 = vld [vmem:[#allocation16 + $0x94] ss:$8 sps:$4 sm:$0xff]  }
0x1602   : > { %4576 = vmatprep.subr.bf16.mxu1 %v5548_v27 }
0x1608   : > { %4567 = vmatmul.mubr.msk.bf16.vlgmr.msra.gmra.mxu1 %vm1160_vm2, %v3025_v54  ;;  %v4961_v54 = vld [vmem:[#allocation16 + $0x90] ss:$8 sps:$4 sm:$0xff]  }
0x1609   : > { %4580 = vmatprep.mubr.msk.bf16.mxu1 %vm5550_vm0, %v5548_v27  ;;  %4577 = vmatpush3.bf16.msra.mxu1 %v4941_v43  ;;  %v4975_v43 = vld [vmem:[#allocation19 + $0xd8] sm:$0xff]  }
0x160a   : > { %4578 = vmatprep.subr.bf16.mxu1 %v5548_v27 }
0x160d   : > { %4579 = vmatpush3.bf16.msra.mxu1 %v4942_v50 }
0x16c0   : > { %v2957_v22 = vpop.f32.mrf.mxu1 }
0x16c1   : > { %v2963_v21 = vpack.c.bf16 %v2957_v22, %v2957_v22  ;;  %v4964_v22 = vld [vmem:[#allocation16 + $0x80] ss:$8 sps:$4 sm:$0xff]  }
0x16c2   : > { %v4554_v23 = vpop.f32.mrf.mxu1 }
0x16c3   : > { %4561 = vmatmul.mubr.msk.bf16.vlgmr.msra.gmra.mxu0 %vm1160_vm2, %v2963_v21 }
0x16c4   : > { %v2960_v24 = vpop.f32.mrf.mxu1  ;;  %4572 = vmatprep.mubr.msk.bf16.mxu0 %vm5550_vm0, %v5548_v27 }
0x16c6   : > { %v4555_v26 = vpop.f32.mrf.mxu1 }
0x16c8   : > { %v3068_v28 = vpop.f32.mrf.mxu1 }
0x16c9   : > { %v3074_v29 = vsel %vm1207_vm3, %v3068_v28, -inf }
0x16ca   : > { %3075 = vmax.xlane.f32.xlu0 %v3074_v29  ;;  %v4568_v30 = vpop.f32.mrf.mxu1 }
0x16cb   : > { %v4191_v30 = vld [vmem:[%s6271_s10 + $0x1] ss:$0 sm:$0xff] }
0x16cc   : > { %v3071_v31 = vpop.f32.mrf.mxu1 }
0x16ce   : > { %v4569_v32 = vpop.f32.mrf.mxu1 }
0x16e0   : > { %3086 = vrot.lane.b32.xlu0 %v6079_v20, %s5553_s22 }
0x1753   : > { %v3076_v33 = vpop.xlane.xlu0 %3075 }
0x1754   : > { %v3077_v34 = vsub.f32 %v3068_v28, %v3076_v33  ;;  %v4190_v28 = vld [vmem:[%s6270_s9 + $0x1] ss:$0 sm:$0xff] }
0x1756   : > { %v3078_v35 = vmul.f32 1.442695, %v3077_v34  ;;  %v4967_v34 = vld [vmem:[#allocation19 + $0xf8] sm:$0xff]  }
0x1757   : > { %v3087_v36 = vpop.permute.xlu0 %3086  ;;  %4344 = vmatprep.subr.bf16.mxu1 %v4967_v34  ;;  %v4989_v34 = vld [vmem:[#allocation22 + $0x8] sm:$0xff]  }
0x1758   : > { %5037 = vpow2.f32 %v3078_v35  ;;  %v3092_v37 = vsel %vm1223_vm1, %v3087_v36, 0  ;;  %v4968_v35 = vld [vmem:[#allocation19 + $0xb8] sm:$0xff]   ;;  %v4969_v36 = vld [vmem:[#allocation19 + $0xf0] sm:$0xff]  }
0x1759   : > { %4571 = vmatpush3.bf16.msra.mxu0 %v3092_v37  ;;  %v4970_v37 = vld [vmem:[#allocation19 + $0xb0] sm:$0xff]  }
0x175a   : > { %3345 = vmatprep.subr.bf16.mxu0 %v4945_v4 }
0x1765   : > { %v5038_v38 = vpop.eup %5037 }
0x1766   : > { %v3080_v39 = vsel %vm1207_vm3, %v5038_v38, 0.0 }
0x1767   : > { %3081 = vadd.xlane.f32.xlu1 %v3080_v39  ;;  %v4972_v39 = vld [vmem:[#allocation19 + $0xa8] sm:$0xff]  }
0x1783   : > { %v3017_v42 = vpop.f32.mrf.mxu0 }
0x1784   : > { %v3023_v25 = vadd.f32 %v3017_v42, %v2848_v41  ;;  %v4973_v41 = vld [vmem:[#allocation19 + $0xe0] sm:$0xff]  }
0x1785   : > { %v4562_v44 = vpop.f32.mrf.mxu0  ;;  %v4974_v42 = vld [vmem:[#allocation19 + $0xa0] sm:$0xff]  }
0x1786   : > { %v4977_v44 = vld [vmem:[#allocation19 + $0xd0] sm:$0xff]  }
0x1787   : > { %v3020_v20 = vpop.f32.mrf.mxu0 }
0x1788   : > { %v4978_v20 = vld [vmem:[#allocation19 + $0x90] sm:$0xff]  }
0x1789   : > { %v4563_v45 = vpop.f32.mrf.mxu0 }
0x178a   : > { %v4979_v45 = vld [vmem:[#allocation19 + $0xc8] sm:$0xff]  }
0x17f0   : > { %v3082_v63 = vpop.xlane.xlu1 %3081 }
0x17f1   : > { %5039 = vrcp.f32 %v3082_v63  ;;  %v4980_v63 = vld [vmem:[#allocation19 + $0x88] sm:$0xff]  }
0x17fe   : > { %v5040_v47 = vpop.eup %5039 }
0x17ff   : > { %v3084_v48 = vmul.f32 %v5040_v47, %v5038_v38  ;;  %v4971_v38 = vld [vmem:[#allocation19 + $0xe8] sm:$0xff]   ;;  %v4981_v47 = vld [vmem:[#allocation19 + $0xc0] sm:$0xff]  }
0x1801   : > { %v3085_v49 = vpack.c.bf16 %v3084_v48, %v3084_v48  ;;  %v4982_v48 = vld [vmem:[#allocation19 + $0x80] sm:$0xff]  }
0x1803   : > { %4573 = vmatmul.mubr.msk.bf16.vlgmr.msra.gmra.mxu0 %vm1207_vm3, %v3085_v49  ;;  %v3253_v49 = vld [vmem:[#allocation17 + $0x2] sm:$0x3] }
0x1804   : > { %3377 = vmatprep.mubr.bf16.mxu0 %v5549_v46  ;;  %v4943_v46 = vld [vmem:[#allocation16 + $0xf0] ss:$8 sps:$4 sm:$0xff]   ;;  %v3258_v50 = vrot.slane %v3253_v49, %v5932_v6 }
0x1805   : > { %3346 = vmatpush1.bf16.msra.mxu0 %v4943_v46 }
0x1806   : > { %3347 = vmatprep.subr.bf16.mxu0 %v4948_v7 }
0x1809   : > { %3348 = vmatpush1.bf16.msra.mxu0 %v4946_v8 }
0x180a   : > { %3349 = vmatprep.subr.bf16.mxu0 %v4951_v12 }
0x180d   : > { %3350 = vmatpush1.bf16.msra.mxu0 %v4949_v13 }
0x180e   : > { %3351 = vmatprep.subr.bf16.mxu0 %v4954_v57 }
0x18c3   : > { %v3128_v51 = vpop.f32.mrf.mxu0 }
0x18c4   : > { %v3134_v52 = vpack.c.bf16 %v3128_v51, %v3128_v51  ;;  %v3262_v51 = vrot.slane %v3253_v49, %v5929_v5 }
0x18c5   : > { %v4574_v53 = vpop.f32.mrf.mxu0 }
0x18c6   : > { %4581 = vmatmul.mubr.msk.bf16.vlgmr.msra.gmra.mxu1 %vm1160_vm2, %v3134_v52 }
0x18c7   : > { %v3131_v2 = vpop.f32.mrf.mxu0  ;;  %4345 = vmatpush3.bf16.msra.mxu1 %v4968_v35  ;;  %v4990_v35 = vld [vmem:[#allocation22] sm:$0xff]  }
0x18c8   : > { %4346 = vmatprep.subr.bf16.mxu1 %v4969_v36  ;;  %v4991_v36 = vld [vmem:[#allocation25 + $0x38] sm:$0xff]  }
0x18c9   : > { %v4575_v3 = vpop.f32.mrf.mxu0 }
0x18cb   : > { %4347 = vmatpush3.bf16.msra.mxu1 %v4970_v37  ;;  %v4992_v37 = vld [vmem:[#allocation25 + $0x30] sm:$0xff]  }
0x18cc   : > { %4348 = vmatprep.subr.bf16.mxu1 %v4971_v38  ;;  %v4993_v38 = vld [vmem:[#allocation25 + $0x28] sm:$0xff]  }
0x18cf   : > { %4349 = vmatpush3.bf16.msra.mxu1 %v4972_v39  ;;  %v4994_v39 = vld [vmem:[#allocation25 + $0x20] sm:$0xff]  }
0x18d0   : > { %4350 = vmatprep.subr.bf16.mxu1 %v4973_v41  ;;  %v4995_v41 = vld [vmem:[#allocation25 + $0x18] sm:$0xff]  }
0x18d3   : > { %4351 = vmatpush3.bf16.msra.mxu1 %v4974_v42  ;;  %v4996_v42 = vld [vmem:[#allocation25 + $0x10] sm:$0xff]  }
0x18d4   : > { %4352 = vmatprep.subr.bf16.mxu1 %v4975_v43 }
0x1986   : > { %v3188_v55 = vpop.f32.mrf.mxu1 }
0x1987   : > { %v3194_v58 = vadd.f32 %v3188_v55, %v3023_v25  ;;  %v4976_v25 = vld [vmem:[#allocation19 + $0x98] sm:$0xff]  }
0x1988   : > { %v4582_v59 = vpop.f32.mrf.mxu1  ;;  %4353 = vmatpush3.bf16.msra.mxu1 %v4976_v25 }
0x1989   : > { %v3203_v60 = vadd.f32 %v4187_v56, %v3194_v58  ;;  %4354 = vmatprep.subr.bf16.mxu1 %v4977_v44 }
0x198a   : > { %v3191_v61 = vpop.f32.mrf.mxu1 }
0x198b   : > { %v3204_v62 = vadd.f32 %v3203_v60, %v6067_v40  ;;  %v4952_v40 = vld [vmem:[#allocation16 + $0xc0] ss:$8 sps:$4 sm:$0xff]  }
0x198c   : > { %v4583_v1 = vpop.f32.mrf.mxu1  ;;  %3352 = vmatpush1.bf16.msra.mxu0 %v4952_v40  ;;  %4355 = vmatpush3.bf16.msra.mxu1 %v4978_v20 }
0x198d   : > { %3209 = vadd.xlane.f32.xlu1 %v3204_v62  ;;  %3353 = vmatprep.subr.bf16.mxu0 %v4957_v15 }
0x198e   : > { %4356 = vmatprep.subr.bf16.mxu1 %v4979_v45  ;;  %v4227_v45 = vld [vmem:[%s6348_s25 + $0x1] ss:$0 sm:$0xff] }
0x1990   : > { %3354 = vmatpush1.bf16.msra.mxu0 %v4955_v14  ;;  %4357 = vmatpush3.bf16.msra.mxu1 %v4980_v63  ;;  %v4208_v14 = vld [vmem:[#allocation20 + $0x1] ss:$0 sm:$0xff] }
0x1991   : > { %3355 = vmatprep.subr.bf16.mxu0 %v4960_v16  ;;  %4358 = vmatprep.subr.bf16.mxu1 %v4981_v47  ;;  %v4228_v47 = vld [vmem:[%s6277_s16 + $0x1] ss:$0 sm:$0xff] }
0x1994   : > { %3356 = vmatpush1.bf16.msra.mxu0 %v4958_v17  ;;  %4359 = vmatpush3.bf16.msra.mxu1 %v4982_v48 }
0x1995   : > { %3357 = vmatprep.subr.bf16.mxu0 %v4963_v18  ;;  %4604 = vmatprep.subr.bf16.mxu1 %v5548_v27 }
0x1998   : > { %3358 = vmatpush1.bf16.msra.mxu0 %v4961_v54 }
0x1999   : > { %3359 = vmatprep.subr.bf16.mxu0 %v4966_v19 }
0x199c   : > { %3360 = vmatpush1.bf16.msra.mxu0 %v4964_v22 }
0x199d   : > { %4584 = vmatprep.subr.bf16.mxu0 %v5548_v27 }
0x1a16   : > { %v3210_v9 = vpop.xlane.xlu1 %3209 }
0x1a17   : > { %v3211_v0 = vmul.f32 0.0078125, %v3210_v9 }
0x1a19   : > { %v3212_v10 = vsub.f32 %v3204_v62, %v3211_v0 }
0x1a1b   : > { %v3213_v11 = vmul.f32 %v3212_v10, %v3212_v10 }
0x1a1d   : > { %3214 = vadd.xlane.f32.xlu1 %v3213_v11 }
0x1aa6   : > { %v3215_v21 = vpop.xlane.xlu1 %3214 }
0x1aa7   : > { %v3216_v23 = vmul.f32 0.0078125, %v3215_v21  ;;  %v4983_v21 = vld [vmem:[#allocation22 + $0x38] sm:$0xff]  }
0x1aa9   : > { %v3217_v24 = vadd.f32 1e-12, %v3216_v23  ;;  %v4984_v23 = vld [vmem:[#allocation22 + $0x30] sm:$0xff]  }
0x1aab   : > { %5041 = vrsqrt.f32 %v3217_v24 }
0x1ab8   : > { %v5042_v26 = vpop.eup %5041 }
0x1ab9   : > { %v3219_v29 = vmul.f32 %v5042_v26, %v3212_v10 }
0x1abb   : > { %v3226_v31 = vmul.f32 %v4190_v28, %v3219_v29 }
0x1abd   : > { %v6183_v32 = vadd.f32 %v4191_v30, %v3226_v31  ;;  %v4985_v30 = vld [vmem:[#allocation22 + $0x28] sm:$0xff]   ;;  %v4986_v31 = vld [vmem:[#allocation22 + $0x20] sm:$0xff]  }
0x1abf   : > { %v3234_v33 = vpack.c.bf16 %v6183_v32, %v6183_v32 }
0x1ac1   : > { %3378 = vmatmul.mubr.bf16.vlgmr.msra.gmra.mxu0 %v3234_v33  ;;  %v4988_v33 = vld [vmem:[#allocation22 + $0x10] sm:$0xff]  }
0x1ac2   : > { %4600 = vmatprep.mubr.msk.bf16.mxu0 %vm5550_vm0, %v5548_v27  ;;  %4585 = vmatpush3.bf16.msra.mxu0 %v4983_v21 }
0x1ac3   : > { %4586 = vmatprep.subr.bf16.mxu0 %v5548_v27 }
0x1ac6   : > { %4587 = vmatpush3.bf16.msra.mxu0 %v4984_v23 }
0x1ac7   : > { %4588 = vmatprep.subr.bf16.mxu0 %v5548_v27 }
0x1aca   : > { %4589 = vmatpush3.bf16.msra.mxu0 %v4985_v30 }
0x1acb   : > { %4590 = vmatprep.subr.bf16.mxu0 %v5548_v27 }
0x1ace   : > { %4591 = vmatpush3.bf16.msra.mxu0 %v4986_v31 }
0x1acf   : > { %4592 = vmatprep.subr.bf16.mxu0 %v5548_v27 }
0x1b81   : > { %v3379_v52 = vpop.f32.mrf.mxu0 }
0x1b82   : > { %v3380_v53 = vadd.f32 %v3379_v52, %v3258_v50  ;;  %v4998_v52 = vld [vmem:[#allocation25] sm:$0xff]  }
0x1b83   : > { %v3381_v2 = vpop.f32.mrf.mxu0 }
0x1b84   : > { %v3388_v3 = vmul.f32 0.044715, %v3380_v53  ;;  %v3382_v55 = vadd.f32 %v3381_v2, %v3262_v51  ;;  %v3386_v0 = vmul.f32 0.5, %v3380_v53  ;;  %v4997_v51 = vld [vmem:[#allocation25 + $0x8] sm:$0xff]  }
0x1b85   : > { %v3383_v56 = vpop.f32.mrf.mxu0 }
0x1b86   : > { %v3390_v58 = vmul.f32 %v3388_v3, %v3380_v53  ;;  %v3389_v59 = vmul.f32 0.044715, %v3382_v55  ;;  %v3387_v10 = vmul.f32 0.5, %v3382_v55 }
0x1b87   : > { %v3384_v60 = vpop.f32.mrf.mxu0 }
0x1b88   : > { %v3392_v61 = vmul.f32 %v3390_v58, %v3380_v53  ;;  %v3391_v62 = vmul.f32 %v3389_v59, %v3382_v55 }
0x1b8a   : > { %v3394_v1 = vadd.f32 %v3392_v61, %v3380_v53  ;;  %v3393_v46 = vmul.f32 %v3391_v62, %v3382_v55  ;;  %v3630_v53 = vld [vmem:[#allocation23] sm:$0x1]  ;;  %v3737_v61 = vld [vmem:[#allocation26] sm:$0x1] }
0x1b8c   : > { %v3396_v4 = vmul.f32 0.7978846, %v3394_v1  ;;  %v3395_v7 = vadd.f32 %v3393_v46, %v3382_v55 }
0x1b8e   : > { %v3397_v8 = vmul.f32 0.7978846, %v3395_v7  ;;  %5043 = vtanh.f32 %v3396_v4 }
0x1b90   : > { %5045 = vtanh.f32 %v3397_v8 }
0x1b9b   : > { %v5044_v6 = vpop.eup %5043 }
0x1b9c   : > { %v3400_v5 = vadd.f32 1.0, %v5044_v6 }
0x1b9d   : > { %v5046_v9 = vpop.eup %5045 }
0x1b9e   : > { %v3401_v11 = vadd.f32 1.0, %v5046_v9  ;;  %v3402_v12 = vmul.f32 %v3400_v5, %v3386_v0 }
0x1ba0   : > { %v3403_v13 = vmul.f32 %v3401_v11, %v3387_v10  ;;  %v3404_v57 = vpack.c.bf16 %v3402_v12, %v3402_v12 }
0x1ba2   : > { %v3405_v40 = vpack.c.bf16 %v3403_v13, %v3403_v13 }
0x1ba4   : > { %3575 = vmatprep.mubr.bf16.mxu1 %v3405_v40 }
0x1ba5   : > { %3576 = vmatmul.mubr.bf16.vlgmr.msra.gmra.mxu1 %v3404_v57 }
0x1ba6   : > { %4620 = vmatprep.mubr.msk.bf16.mxu1 %vm5550_vm0, %v5548_v27  ;;  %4605 = vmatpush3.bf16.msra.mxu1 %v4991_v36 }
0x1ba7   : > { %4606 = vmatprep.subr.bf16.mxu1 %v5548_v27 }
0x1baa   : > { %4607 = vmatpush3.bf16.msra.mxu1 %v4992_v37 }
0x1bab   : > { %4608 = vmatprep.subr.bf16.mxu1 %v5548_v27 }
0x1bae   : > { %4609 = vmatpush3.bf16.msra.mxu1 %v4993_v38 }
0x1baf   : > { %4610 = vmatprep.subr.bf16.mxu1 %v5548_v27 }
0x1bb2   : > { %4611 = vmatpush3.bf16.msra.mxu1 %v4994_v39 }
0x1bb3   : > { %4612 = vmatprep.subr.bf16.mxu1 %v5548_v27 }
0x1bb6   : > { %4613 = vmatpush3.bf16.msra.mxu1 %v4995_v41 }
0x1bb7   : > { %4614 = vmatprep.subr.bf16.mxu1 %v5548_v27 }
0x1bba   : > { %4615 = vmatpush3.bf16.msra.mxu1 %v4996_v42 }
0x1bbb   : > { %4616 = vmatprep.subr.bf16.mxu1 %v5548_v27 }
0x1bbe   : > { %4617 = vmatpush3.bf16.msra.mxu1 %v4997_v51 }
0x1bbf   : > { %4618 = vmatprep.subr.bf16.mxu1 %v5548_v27 }
0x1bc2   : > { %4619 = vmatpush3.bf16.msra.mxu1 %v4998_v52 }
0x1c65   : > { %v4360_v15 = vpop.f32.mrf.mxu1 }
0x1c67   : > { %v4361_v16 = vpop.f32.mrf.mxu1 }
0x1c68   : > { %v4362_v17 = vadd.f32 %v4361_v16, %v4360_v15 }
0x1c69   : > { %v4363_v18 = vpop.f32.mrf.mxu1 }
0x1c6a   : > { %v3578_v54 = vadd.f32 %v4362_v17, %v4208_v14 }
0x1c6b   : > { %v4364_v19 = vpop.f32.mrf.mxu1 }
0x1c6c   : > { %v3583_v22 = vadd.f32 %v3578_v54, %v6183_v32  ;;  %v4987_v32 = vld [vmem:[#allocation22 + $0x18] sm:$0xff]  }
0x1c6d   : > { %4593 = vmatpush3.bf16.msra.mxu0 %v4987_v32 }
0x1c6e   : > { %3588 = vadd.xlane.f32.xlu1 %v3583_v22  ;;  %4594 = vmatprep.subr.bf16.mxu0 %v5548_v27 }
0x1c71   : > { %4595 = vmatpush3.bf16.msra.mxu0 %v4988_v33 }
0x1c72   : > { %4596 = vmatprep.subr.bf16.mxu0 %v5548_v27 }
0x1c75   : > { %4597 = vmatpush3.bf16.msra.mxu0 %v4989_v34 }
0x1c76   : > { %4598 = vmatprep.subr.bf16.mxu0 %v5548_v27 }
0x1c79   : > { %4599 = vmatpush3.bf16.msra.mxu0 %v4990_v35 }
0x1cf7   : > { %v3589_v24 = vpop.xlane.xlu1 %3588 }
0x1cf8   : > { %v3590_v26 = vmul.f32 0.0078125, %v3589_v24 }
0x1cfa   : > { %v3591_v28 = vsub.f32 %v3583_v22, %v3590_v26 }
0x1cfc   : > { %v3592_v29 = vmul.f32 %v3591_v28, %v3591_v28 }
0x1cfe   : > { %3593 = vadd.xlane.f32.xlu0 %v3592_v29 }
0x1d87   : > { %v3594_v43 = vpop.xlane.xlu0 %3593 }
0x1d88   : > { %v3595_v25 = vmul.f32 0.0078125, %v3594_v43 }
0x1d8a   : > { %v3596_v44 = vadd.f32 1e-12, %v3595_v25 }
0x1d8c   : > { %5047 = vrsqrt.f32 %v3596_v44 }
0x1d99   : > { %v5048_v20 = vpop.eup %5047 }
0x1d9a   : > { %v3598_v63 = vmul.f32 %v5048_v20, %v3591_v28 }
0x1d9c   : > { %v3605_v48 = vmul.f32 %v4227_v45, %v3598_v63 }
0x1d9e   : > { %v3612_v49 = vadd.f32 %v4228_v47, %v3605_v48 }
0x1da0   : > { %v3613_v50 = vpack.c.bf16 %v3612_v49, %v3612_v49 }
0x1da2   : > { %4601 = vmatmul.mubr.bf16.vlgmr.msra.gmra.mxu0 %v3613_v50 }
0x1e62   : > { %v3713_v2 = vpop.f32.mrf.mxu0 }
0x1e63   : > { %v3714_v3 = vadd.f32 %v3713_v2, %v3630_v53 }
0x1e64   : > { %v4602_v55 = vpop.f32.mrf.mxu0 }
0x1e65   : > { %v3719_v56 = vmax.f32 %v3714_v3, 0.0 }
0x1e66   : > { %v3716_v58 = vpop.f32.mrf.mxu0 }
0x1e67   : > { %v3720_v59 = vpack.c.bf16 %v3719_v56, %v3719_v56 }
0x1e68   : > { %v4603_v60 = vpop.f32.mrf.mxu0 }
0x1e69   : > { %4621 = vmatmul.mubr.bf16.vlgmr.msra.gmra.mxu1 %v3720_v59 }
0x1f29   : > { %v3820_v62 = vpop.f32.mrf.mxu1 }
0x1f2a   : > { %v3821_v1 = vadd.f32 %v3820_v62, %v3737_v61 }
0x1f2b   : > { %v4622_v27 = vpop.f32.mrf.mxu1 }
0x1f2c   : > { %3826 = vst [vmem:[%s811_s6] sm:$0x1] %v3821_v1 }
0x1f2d   : > { %v3823_v46 = vpop.f32.mrf.mxu1 }
0x1f2e   : > { %5438 = shalt.err (!%p5435_p13)
}
0x1f2f   : > { %s5439_s28 = scalar_lea.hbm %s6220_s2, 16  ;;  %s5443_s26 = scalar_lea.hbm %s6349_s1, 32 }
0x1f30   : > { %p5440_p2 = scmp.ne.s32.totalorder %s6220_s2, %s5439_s28  ;;  %p5444_p7 = scmp.lt.s32.totalorder %s6220_s2, %s6349_s1 }
0x1f31   : > { %p5445_p8 = scmp.lt.s32.totalorder %s5443_s26, %s5439_s28 }
0x1f32   : > { %p5441_p5 = pnand %p5440_p2, %p6350_p9 }
0x1f33   : > { %p5446_p4 = por %p5445_p8, %p5444_p7 }
0x1f34   : > { %p5442_p6 = pneg %p5441_p5 }
0x1f36   : > { %p5447_p0 = pnand %p5446_p4, %p5442_p6 }
0x1f38   : > { %5450 = shalt.err (!%p5447_p0)
}
0x1f39   : > { %4680 = dma.vmem_to_hbm [thread:$0]  (%p6350_p9), %s6222_s0, 16, %s6220_s2, %s3828_s27   ;;  %v4623_v4 = vpop.f32.mrf.mxu1 }
0x1f3a PF: > { %s6351_s7 = sld [smem:[#allocation41_spill]] }
0x1f3b   : > { %s6352_s23 = sld [smem:[#allocation39_spill]] }
0x1f3c   : > { %s6353_s15 = sld [smem:[#allocation44_spill]] }
0x1f40   : > { %p4757_p12 = scmp.ge.s32.totalorder %s6351_s7, 2 }
0x1f41   : > { %s3852_s4 = sand.u32 1, %s6352_s23  }
0x1f42   : > { %p6354_p3 = scmp.ne.s32.totalorder %s6353_s15, 0  ;;  %s3853_s30 = scalar_lea.sflag [#allocation7], %s3852_s4 }
0x1f44   : > { %p4726_p10 = pnand %p4757_p12, %p6354_p3 }
0x1f46   : > { %p4727_p11 = pneg %p4726_p10 }
0x1f48   : > { %5502 = dma.done.wait (%p4727_p11), %s3853_s30, 16  }
0x1f49   : > { %5504 = vsyncadd (%p4727_p11), %s3853_s30, 4294967280  ;;  %s6355_s15 = sld [smem:[#allocation42_spill]]  ;;  %s6358_s28 = smov %s5511_s29 }
0x1f4a   : > { %s6356_s3 = sld [smem:[#allocation40_spill]] }
0x1f4b   : > { %s6357_s0 = sld [smem:[#allocation43_spill]] }
0x1f4f   : > { %p45_p1 = scmp.ge.s32.totalorder %s6355_s15, 4  }
0x1f50   : > { %s6359_s29 = smov %s6356_s3 }
0x1f51   :  { %47 = sbr.rel (!%p45_p1) target bundleno = 42 (0x2a), region = 209 }
0x1f56   :  { %3857 = vsyncpa [#allocation6], 1 }
0x1f57   :  { %3859 = vsyncpa [#allocation6 + $0x1], 1 }
0x1f58   :  { %3860 = vsyncpa [#allocation9], 1 }
0x1f59   :  { %3861 = vsyncpa [#allocation12], 1 }
0x1f5a   :  { %3862 = vsyncpa [#allocation15], 1 }
0x1f5b   :  { %3863 = vsyncpa [#allocation18], 1 }
0x1f5c   :  { %3864 = vsyncpa [#allocation21], 1 }
0x1f5d   :  { %3865 = vsyncpa [#allocation24], 1 }
0x1f5e   :  { %3866 = vsyncpa [#allocation27], 1 }
0x1f5f   :  { %3867 = vsyncpa [#allocation7], 1 }
0x1f60   :  { %3869 = vsyncpa [#allocation7 + $0x1], 1 }

</bundles_post_ra>
